<compile_context>
chip_gen: v7x
topology: tpu7x:2x2x1
jax: 0.10.0
libtpu: 0.0.40
codegen_flags: <defaults>
</compile_context>

<pallas_src>
import functools

import jax
import jax.numpy as jnp
from jax.experimental import pallas as pl
from jax.experimental.pallas import tpu as pltpu


def _round_up(x, m):
    return ((x + m - 1) // m) * m


# ----------------------------- Pallas kernel -------------------------------

def _fused_conv_pool_fc_kernel(xf_ref, w_ref, cb_ref, mask_ref, fcw_ref,
                               fcb_ref, o_ref, slab_ref, *,
                               b_tile, row_tile, n_row_tiles, wp, cin_pad):
    """Fused conv3x3(same) -> bias -> ReLU -> masked sum-pool -> linear.

    xf_ref  : (B_TILE, R_TOT, cin_pad) f32  zero-padded NHWC image, spatial flat
    w_ref   : (KP=128, CP=128)         bf16 im2col conv weight (rows>=72 zero)
    cb_ref  : (1, CP)                  f32  conv bias (zeros in padded lanes)
    mask_ref: (n_row_tiles, row_tile)  f32  1.0 on interior output rows
    fcw_ref : (CP, FP=128)             f32  fc weight / (H*W), padded with zeros
    fcb_ref : (1, FP)                  f32  fc bias (zeros in padded lanes)
    o_ref   : (B_TILE, FP)             f32  per-image output (lane-dense)
    slab_ref: (row_tile, KP)           f32  im2col scratch (VMEM)
    """
    cp = w_ref.shape[1]
    offs = tuple(ky * wp + kx for ky in range(3) for kx in range(3))

    # Zero once per grid step so lanes >= 9*cin_pad of the slab (which face
    # zero weight rows) are exact zeros rather than stale VMEM (NaN-safe).
    slab_ref[...] = jnp.zeros_like(slab_ref)

    for b in range(b_tile):                         # static: images per step
        pooled = jnp.zeros((1, cp), jnp.float32)
        for rt in range(n_row_tiles):               # static row tiles
            start = rt * row_tile
            # "im2col in VMEM": nine lane-offset copies of shifted row slabs.
            for k in range(9):
                s0 = offs[k] + start                # static start
                slab_ref[:, k * cin_pad:(k + 1) * cin_pad] = (
                    xf_ref[b, s0:s0 + row_tile, :])
            # ONE deep-contraction MXU matmul (bf16 operands, f32 accumulate)
            # instead of nine K=8 dots.
            acc = jnp.dot(slab_ref[...].astype(jnp.bfloat16), w_ref[...],
                          preferred_element_type=jnp.float32)  # (row_tile, CP)
            feat = jnp.maximum(acc + cb_ref[...], 0.0)         # bias+ReLU, f32
            # Masked sum over the interior output rows as an MXU vector-matrix
            # product; out-of-image "wrap" rows contribute exactly zero.
            pooled = pooled + jnp.dot(mask_ref[rt:rt + 1, :], feat,
                                      preferred_element_type=jnp.float32)
        # fc head; the 1/(H*W) pool scale is folded into fcw. Lane-dense store.
        out_b = jnp.dot(pooled, fcw_ref[...],
                        preferred_element_type=jnp.float32) + fcb_ref[...]
        o_ref[b:b + 1, :] = out_b.astype(o_ref.dtype)


# ----------------------------- Model wrapper -------------------------------

def make_params(c_in=4, c_mid=32, feat_dim=64):
    """Deterministic synthetic parameters (stand-in for checkpoint load)."""
    k0, k1, k2, k3 = jax.random.split(jax.random.PRNGKey(42), 4)
    conv_w = jax.random.normal(k0, (c_mid, c_in, 3, 3), jnp.float32) * 0.1   # OIHW
    conv_b = jax.random.normal(k1, (c_mid,), jnp.float32) * 0.01
    fc_w = jax.random.normal(k2, (c_mid, feat_dim), jnp.float32) * 0.1
    fc_b = jax.random.normal(k3, (feat_dim,), jnp.float32) * 0.01
    return dict(conv_w=conv_w, conv_b=conv_b, fc_w=fc_w, fc_b=fc_b)


@jax.jit
def model_forward(x_nchw, params):
    """forward(x): conv3x3(same) -> relu -> global avg pool -> linear."""
    n, c, h, w = x_nchw.shape
    c_mid, feat_dim = params["fc_w"].shape
    hp, wp = h + 2, w + 2

    cp = 128                                     # lane-dense padded conv channels
    fp = 128                                     # lane-dense padded fc features
    cin_pad = _round_up(c, 8)
    kp = 128                                     # padded contraction depth
    assert 9 * cin_pad <= kp, "TODO(synk): tile the contraction for larger cin"

    lq = (h - 1) * wp + w                        # flat rows spanning all outputs
    n_row_tiles = -(-lq // 192)                  # target <= 192 rows per tile
    row_tile = _round_up(-(-lq // n_row_tiles), 8)
    lq_pad = n_row_tiles * row_tile
    r_tot = _round_up(max(hp * wp, 2 * wp + 2 + lq_pad), 8)

    b_tile = min(n, 8)                           # images blocked into one step
    n_pad = _round_up(n, b_tile)

    # --- input: NCHW -> NHWC, zero-pad spatial+channel, flatten, pad rows ---
    x_nhwc = jnp.transpose(x_nchw, (0, 2, 3, 1))
    xp = jnp.pad(x_nhwc, ((0, 0), (1, 1), (1, 1), (0, cin_pad - c)))
    xf = xp.reshape(n, hp * wp, cin_pad)
    xf = jnp.pad(xf, ((0, n_pad - n), (0, r_tot - hp * wp), (0, 0)))

    # --- conv weights: OIHW -> (ky,kx,cin,cout) -> im2col (KP, CP), bf16 ---
    w_t = jnp.transpose(params["conv_w"], (2, 3, 1, 0))          # (3,3,cin,cmid)
    w_t = jnp.pad(w_t, ((0, 0), (0, 0), (0, cin_pad - c), (0, cp - c_mid)))
    wk = jnp.pad(w_t.reshape(9 * cin_pad, cp), ((0, kp - 9 * cin_pad), (0, 0)))
    wk = wk.astype(jnp.bfloat16)
    cb = jnp.pad(params["conv_b"], (0, cp - c_mid))[None, :]     # (1,128), f32

    # --- 0/1 interior mask over the lq_pad processed rows, tiled layout ---
    j = jnp.arange(lq_pad)
    q = wp + 1 + j                         # flat padded coordinate of row j
    r, col = q // wp, q % wp
    mask = (((r >= 1) & (r <= h) & (col >= 1) & (col <= w))
            .astype(jnp.float32)).reshape(n_row_tiles, row_tile)

    # --- fc head: pad to lane-dense (CP, FP), fold in 1/(H*W) pool scale ---
    fcw = jnp.pad(params["fc_w"],
                  ((0, cp - c_mid), (0, fp - feat_dim))) / float(h * w)
    fcb = jnp.pad(params["fc_b"], (0, fp - feat_dim))[None, :]

    kernel = functools.partial(
        _fused_conv_pool_fc_kernel, b_tile=b_tile, row_tile=row_tile,
        n_row_tiles=n_row_tiles, wp=wp, cin_pad=cin_pad)

    flops = int(2 * n_pad * n_row_tiles * row_tile * (kp + 1) * cp
                + 2 * n_pad * cp * fp)
    bytes_accessed = int(4 * xf.size + 2 * wk.size
                         + 4 * (cb.size + mask.size + fcw.size + fcb.size)
                         + 4 * n_pad * fp)

    out = pl.pallas_call(
        kernel,
        out_shape=jax.ShapeDtypeStruct((n_pad, fp), jnp.float32),
        grid=(n_pad // b_tile,),
        in_specs=[
            pl.BlockSpec((b_tile, r_tot, cin_pad), lambda i: (i, 0, 0)),  # images
            pl.BlockSpec((kp, cp), lambda i: (0, 0)),                     # conv w
            pl.BlockSpec((1, cp), lambda i: (0, 0)),                      # conv b
            pl.BlockSpec((n_row_tiles, row_tile), lambda i: (0, 0)),      # mask
            pl.BlockSpec((cp, fp), lambda i: (0, 0)),                     # fc w
            pl.BlockSpec((1, fp), lambda i: (0, 0)),                      # fc b
        ],
        out_specs=pl.BlockSpec((b_tile, fp), lambda i: (i, 0)),
        scratch_shapes=[pltpu.VMEM((row_tile, kp), jnp.float32)],         # im2col
        compiler_params=pltpu.CompilerParams(
            dimension_semantics=("parallel",),
            vmem_limit_bytes=32 * 1024 * 1024),
        cost_estimate=pl.CostEstimate(
            flops=flops, transcendentals=0, bytes_accessed=bytes_accessed),
    )(xf, wk, cb, mask, fcw, fcb)

    return out[:n, :feat_dim]                                     # (N, F)


def reference_forward(x_nchw, params):
    """Pure-JAX reference for correctness checking."""
    out = jax.lax.conv_general_dilated(
        x_nchw, params["conv_w"], window_strides=(1, 1), padding="SAME",
        dimension_numbers=("NCHW", "OIHW", "NCHW"))
    out = out + params["conv_b"][None, :, None, None]
    out = jnp.maximum(out, 0.0)
    pooled = jnp.mean(out, axis=(2, 3))                           # (N, Cmid)
    return pooled @ params["fc_w"] + params["fc_b"][None, :]


# --------------------------------- main -------------------------------------

if __name__ == "__main__":
    key = jax.random.PRNGKey(0)
    x = jax.random.normal(key, (2, 4, 16, 16), jnp.float32)       # NCHW input

    params = make_params(c_in=4, c_mid=32, feat_dim=64)

    out = jax.block_until_ready(model_forward(x, params))
    ref = jax.block_until_ready(reference_forward(x, params))

    assert out.shape == (2, 64), out.shape
    max_err = float(jnp.max(jnp.abs(out - ref)))
    assert jnp.allclose(out, ref, atol=3e-3, rtol=3e-3), (
        f"mismatch vs reference, max_err={max_err}")
    print("KERNEL_OK")
</pallas_src>

<mosaic_0001>
module attributes {stable_mosaic.version = 11 : i64} {
  func.func @_fused_conv_pool_fc_kernel(%arg0: i32, %arg1: memref<2x328x8xf32, #tpu.memory_space<vmem>>, %arg2: memref<128x128xbf16, #tpu.memory_space<vmem>>, %arg3: memref<1x128xf32, #tpu.memory_space<vmem>>, %arg4: memref<2x144xf32, #tpu.memory_space<vmem>>, %arg5: memref<128x128xf32, #tpu.memory_space<vmem>>, %arg6: memref<1x128xf32, #tpu.memory_space<vmem>>, %arg7: memref<2x128xf32, #tpu.memory_space<vmem>>, %arg8: memref<144x128xf32, #tpu.memory_space<vmem>>) attributes {dimension_semantics = [#tpu.dimension_semantics<parallel>], iteration_bounds = array<i64: 1>, scalar_prefetch = 0 : i64, scratch_operands = 1 : i64, tpu.core_type = #tpu.core_type<tc>, window_params = [{transform_indices = @transform_0, window_bounds = array<i64: 2, 328, 8>}, {pipeline_mode = #tpu.pipeline_mode<synchronous>, transform_indices = @transform_1, window_bounds = array<i64: 128, 128>}, {pipeline_mode = #tpu.pipeline_mode<synchronous>, transform_indices = @transform_2, window_bounds = array<i64: 1, 128>}, {pipeline_mode = #tpu.pipeline_mode<synchronous>, transform_indices = @transform_3, window_bounds = array<i64: 2, 144>}, {pipeline_mode = #tpu.pipeline_mode<synchronous>, transform_indices = @transform_4, window_bounds = array<i64: 128, 128>}, {pipeline_mode = #tpu.pipeline_mode<synchronous>, transform_indices = @transform_5, window_bounds = array<i64: 1, 128>}, {transform_indices = @transform_6, window_bounds = array<i64: 2, 128>}]} {
    %cst = arith.constant 0.000000e+00 : f32
    %0 = vector.broadcast %cst : f32 to vector<144x128xf32>
    %c0 = arith.constant 0 : index
    %c0_0 = arith.constant 0 : index
    %1 = vector.load %arg8[%c0, %c0_0] : memref<144x128xf32, #tpu.memory_space<vmem>>, vector<144x128xf32>
    tpu.vector_store %arg8[%c0, %c0_0], %0 {strides = array<i32>} : memref<144x128xf32, #tpu.memory_space<vmem>>, vector<144x128xf32>,
    %cst_1 = arith.constant 0.000000e+00 : f32
    %2 = vector.broadcast %cst_1 : f32 to vector<1x128xf32>
    %c0_2 = arith.constant 0 : index
    %c0_3 = arith.constant 0 : index
    %c0_4 = arith.constant 0 : index
    %3 = vector.load %arg1[%c0_2, %c0_3, %c0_4] : memref<2x328x8xf32, #tpu.memory_space<vmem>>, vector<1x144x8xf32>
    %4 = vector.shape_cast %3 : vector<1x144x8xf32> to vector<144x8xf32>
    %c0_5 = arith.constant 0 : index
    %c0_6 = arith.constant 0 : index
    %5 = vector.load %arg8[%c0_5, %c0_6] : memref<144x128xf32, #tpu.memory_space<vmem>>, vector<144x8xf32>
    tpu.vector_store %arg8[%c0_5, %c0_6], %4 {strides = array<i32>} : memref<144x128xf32, #tpu.memory_space<vmem>>, vector<144x8xf32>,
    %c0_7 = arith.constant 0 : index
    %c1 = arith.constant 1 : index
    %c0_8 = arith.constant 0 : index
    %6 = vector.load %arg1[%c0_7, %c1, %c0_8] : memref<2x328x8xf32, #tpu.memory_space<vmem>>, vector<1x144x8xf32>
    %7 = vector.shape_cast %6 : vector<1x144x8xf32> to vector<144x8xf32>
    %c0_9 = arith.constant 0 : index
    %c8 = arith.constant 8 : index
    %8 = vector.load %arg8[%c0_9, %c8] : memref<144x128xf32, #tpu.memory_space<vmem>>, vector<144x8xf32>
    tpu.vector_store %arg8[%c0_9, %c8], %7 {strides = array<i32>} : memref<144x128xf32, #tpu.memory_space<vmem>>, vector<144x8xf32>,
    %c0_10 = arith.constant 0 : index
    %c2 = arith.constant 2 : index
    %c0_11 = arith.constant 0 : index
    %9 = vector.load %arg1[%c0_10, %c2, %c0_11] : memref<2x328x8xf32, #tpu.memory_space<vmem>>, vector<1x144x8xf32>
    %10 = vector.shape_cast %9 : vector<1x144x8xf32> to vector<144x8xf32>
    %c0_12 = arith.constant 0 : index
    %c16 = arith.constant 16 : index
    %11 = vector.load %arg8[%c0_12, %c16] : memref<144x128xf32, #tpu.memory_space<vmem>>, vector<144x8xf32>
    tpu.vector_store %arg8[%c0_12, %c16], %10 {strides = array<i32>} : memref<144x128xf32, #tpu.memory_space<vmem>>, vector<144x8xf32>,
    %c0_13 = arith.constant 0 : index
    %c18 = arith.constant 18 : index
    %c0_14 = arith.constant 0 : index
    %12 = vector.load %arg1[%c0_13, %c18, %c0_14] : memref<2x328x8xf32, #tpu.memory_space<vmem>>, vector<1x144x8xf32>
    %13 = vector.shape_cast %12 : vector<1x144x8xf32> to vector<144x8xf32>
    %c0_15 = arith.constant 0 : index
    %c24 = arith.constant 24 : index
    %14 = vector.load %arg8[%c0_15, %c24] : memref<144x128xf32, #tpu.memory_space<vmem>>, vector<144x8xf32>
    tpu.vector_store %arg8[%c0_15, %c24], %13 {strides = array<i32>} : memref<144x128xf32, #tpu.memory_space<vmem>>, vector<144x8xf32>,
    %c0_16 = arith.constant 0 : index
    %c19 = arith.constant 19 : index
    %c0_17 = arith.constant 0 : index
    %15 = vector.load %arg1[%c0_16, %c19, %c0_17] : memref<2x328x8xf32, #tpu.memory_space<vmem>>, vector<1x144x8xf32>
    %16 = vector.shape_cast %15 : vector<1x144x8xf32> to vector<144x8xf32>
    %c0_18 = arith.constant 0 : index
    %c32 = arith.constant 32 : index
    %17 = vector.load %arg8[%c0_18, %c32] : memref<144x128xf32, #tpu.memory_space<vmem>>, vector<144x8xf32>
    tpu.vector_store %arg8[%c0_18, %c32], %16 {strides = array<i32>} : memref<144x128xf32, #tpu.memory_space<vmem>>, vector<144x8xf32>,
    %c0_19 = arith.constant 0 : index
    %c20 = arith.constant 20 : index
    %c0_20 = arith.constant 0 : index
    %18 = vector.load %arg1[%c0_19, %c20, %c0_20] : memref<2x328x8xf32, #tpu.memory_space<vmem>>, vector<1x144x8xf32>
    %19 = vector.shape_cast %18 : vector<1x144x8xf32> to vector<144x8xf32>
    %c0_21 = arith.constant 0 : index
    %c40 = arith.constant 40 : index
    %20 = vector.load %arg8[%c0_21, %c40] : memref<144x128xf32, #tpu.memory_space<vmem>>, vector<144x8xf32>
    tpu.vector_store %arg8[%c0_21, %c40], %19 {strides = array<i32>} : memref<144x128xf32, #tpu.memory_space<vmem>>, vector<144x8xf32>,
    %c0_22 = arith.constant 0 : index
    %c36 = arith.constant 36 : index
    %c0_23 = arith.constant 0 : index
    %21 = vector.load %arg1[%c0_22, %c36, %c0_23] : memref<2x328x8xf32, #tpu.memory_space<vmem>>, vector<1x144x8xf32>
    %22 = vector.shape_cast %21 : vector<1x144x8xf32> to vector<144x8xf32>
    %c0_24 = arith.constant 0 : index
    %c48 = arith.constant 48 : index
    %23 = vector.load %arg8[%c0_24, %c48] : memref<144x128xf32, #tpu.memory_space<vmem>>, vector<144x8xf32>
    tpu.vector_store %arg8[%c0_24, %c48], %22 {strides = array<i32>} : memref<144x128xf32, #tpu.memory_space<vmem>>, vector<144x8xf32>,
    %c0_25 = arith.constant 0 : index
    %c37 = arith.constant 37 : index
    %c0_26 = arith.constant 0 : index
    %24 = vector.load %arg1[%c0_25, %c37, %c0_26] : memref<2x328x8xf32, #tpu.memory_space<vmem>>, vector<1x144x8xf32>
    %25 = vector.shape_cast %24 : vector<1x144x8xf32> to vector<144x8xf32>
    %c0_27 = arith.constant 0 : index
    %c56 = arith.constant 56 : index
    %26 = vector.load %arg8[%c0_27, %c56] : memref<144x128xf32, #tpu.memory_space<vmem>>, vector<144x8xf32>
    tpu.vector_store %arg8[%c0_27, %c56], %25 {strides = array<i32>} : memref<144x128xf32, #tpu.memory_space<vmem>>, vector<144x8xf32>,
    %c0_28 = arith.constant 0 : index
    %c38 = arith.constant 38 : index
    %c0_29 = arith.constant 0 : index
    %27 = vector.load %arg1[%c0_28, %c38, %c0_29] : memref<2x328x8xf32, #tpu.memory_space<vmem>>, vector<1x144x8xf32>
    %28 = vector.shape_cast %27 : vector<1x144x8xf32> to vector<144x8xf32>
    %c0_30 = arith.constant 0 : index
    %c64 = arith.constant 64 : index
    %29 = vector.load %arg8[%c0_30, %c64] : memref<144x128xf32, #tpu.memory_space<vmem>>, vector<144x8xf32>
    tpu.vector_store %arg8[%c0_30, %c64], %28 {strides = array<i32>} : memref<144x128xf32, #tpu.memory_space<vmem>>, vector<144x8xf32>,
    %c0_31 = arith.constant 0 : index
    %c0_32 = arith.constant 0 : index
    %30 = vector.load %arg8[%c0_31, %c0_32] : memref<144x128xf32, #tpu.memory_space<vmem>>, vector<144x128xf32>
    %31 = arith.truncf %30 : vector<144x128xf32> to vector<144x128xbf16>
    %c0_33 = arith.constant 0 : index
    %c0_34 = arith.constant 0 : index
    %32 = vector.load %arg2[%c0_33, %c0_34] : memref<128x128xbf16, #tpu.memory_space<vmem>>, vector<128x128xbf16>
    %cst_35 = arith.constant dense<0.000000e+00> : vector<144x128xf32>
    %33 = tpu.matmul %31, %32, %cst_35 {dimension_numbers = #tpu.dot_dimension_numbers<[1], [0], [0], [1], [0, 0, 1, 1], [], []>} : vector<144x128xbf16>, vector<128x128xbf16>, vector<144x128xf32> -> vector<144x128xf32>
    %c0_36 = arith.constant 0 : index
    %c0_37 = arith.constant 0 : index
    %34 = vector.load %arg3[%c0_36, %c0_37] : memref<1x128xf32, #tpu.memory_space<vmem>>, vector<1x128xf32>
    %35 = vector.broadcast %34 : vector<1x128xf32> to vector<144x128xf32>
    %36 = arith.addf %33, %35 : vector<144x128xf32>
    %cst_38 = arith.constant 0.000000e+00 : f32
    %37 = vector.broadcast %cst_38 : f32 to vector<144x128xf32>
    %38 = arith.maximumf %36, %37 : vector<144x128xf32>
    %c0_39 = arith.constant 0 : index
    %c0_40 = arith.constant 0 : index
    %39 = vector.load %arg4[%c0_39, %c0_40] : memref<2x144xf32, #tpu.memory_space<vmem>>, vector<1x144xf32>
    %cst_41 = arith.constant dense<0.000000e+00> : vector<1x128xf32>
    %40 = tpu.matmul %39, %38, %cst_41 {dimension_numbers = #tpu.dot_dimension_numbers<[1], [0], [0], [1], [0, 0, 1, 1], [], []>} : vector<1x144xf32>, vector<144x128xf32>, vector<1x128xf32> -> vector<1x128xf32>
    %41 = arith.addf %2, %40 : vector<1x128xf32>
    %c0_42 = arith.constant 0 : index
    %c144 = arith.constant 144 : index
    %c0_43 = arith.constant 0 : index
    %42 = vector.load %arg1[%c0_42, %c144, %c0_43] : memref<2x328x8xf32, #tpu.memory_space<vmem>>, vector<1x144x8xf32>
    %43 = vector.shape_cast %42 : vector<1x144x8xf32> to vector<144x8xf32>
    %c0_44 = arith.constant 0 : index
    %c0_45 = arith.constant 0 : index
    %44 = vector.load %arg8[%c0_44, %c0_45] : memref<144x128xf32, #tpu.memory_space<vmem>>, vector<144x8xf32>
    tpu.vector_store %arg8[%c0_44, %c0_45], %43 {strides = array<i32>} : memref<144x128xf32, #tpu.memory_space<vmem>>, vector<144x8xf32>,
    %c0_46 = arith.constant 0 : index
    %c145 = arith.constant 145 : index
    %c0_47 = arith.constant 0 : index
    %45 = vector.load %arg1[%c0_46, %c145, %c0_47] : memref<2x328x8xf32, #tpu.memory_space<vmem>>, vector<1x144x8xf32>
    %46 = vector.shape_cast %45 : vector<1x144x8xf32> to vector<144x8xf32>
    %c0_48 = arith.constant 0 : index
    %c8_49 = arith.constant 8 : index
    %47 = vector.load %arg8[%c0_48, %c8_49] : memref<144x128xf32, #tpu.memory_space<vmem>>, vector<144x8xf32>
    tpu.vector_store %arg8[%c0_48, %c8_49], %46 {strides = array<i32>} : memref<144x128xf32, #tpu.memory_space<vmem>>, vector<144x8xf32>,
    %c0_50 = arith.constant 0 : index
    %c146 = arith.constant 146 : index
    %c0_51 = arith.constant 0 : index
    %48 = vector.load %arg1[%c0_50, %c146, %c0_51] : memref<2x328x8xf32, #tpu.memory_space<vmem>>, vector<1x144x8xf32>
    %49 = vector.shape_cast %48 : vector<1x144x8xf32> to vector<144x8xf32>
    %c0_52 = arith.constant 0 : index
    %c16_53 = arith.constant 16 : index
    %50 = vector.load %arg8[%c0_52, %c16_53] : memref<144x128xf32, #tpu.memory_space<vmem>>, vector<144x8xf32>
    tpu.vector_store %arg8[%c0_52, %c16_53], %49 {strides = array<i32>} : memref<144x128xf32, #tpu.memory_space<vmem>>, vector<144x8xf32>,
    %c0_54 = arith.constant 0 : index
    %c162 = arith.constant 162 : index
    %c0_55 = arith.constant 0 : index
    %51 = vector.load %arg1[%c0_54, %c162, %c0_55] : memref<2x328x8xf32, #tpu.memory_space<vmem>>, vector<1x144x8xf32>
    %52 = vector.shape_cast %51 : vector<1x144x8xf32> to vector<144x8xf32>
    %c0_56 = arith.constant 0 : index
    %c24_57 = arith.constant 24 : index
    %53 = vector.load %arg8[%c0_56, %c24_57] : memref<144x128xf32, #tpu.memory_space<vmem>>, vector<144x8xf32>
    tpu.vector_store %arg8[%c0_56, %c24_57], %52 {strides = array<i32>} : memref<144x128xf32, #tpu.memory_space<vmem>>, vector<144x8xf32>,
    %c0_58 = arith.constant 0 : index
    %c163 = arith.constant 163 : index
    %c0_59 = arith.constant 0 : index
    %54 = vector.load %arg1[%c0_58, %c163, %c0_59] : memref<2x328x8xf32, #tpu.memory_space<vmem>>, vector<1x144x8xf32>
    %55 = vector.shape_cast %54 : vector<1x144x8xf32> to vector<144x8xf32>
    %c0_60 = arith.constant 0 : index
    %c32_61 = arith.constant 32 : index
    %56 = vector.load %arg8[%c0_60, %c32_61] : memref<144x128xf32, #tpu.memory_space<vmem>>, vector<144x8xf32>
    tpu.vector_store %arg8[%c0_60, %c32_61], %55 {strides = array<i32>} : memref<144x128xf32, #tpu.memory_space<vmem>>, vector<144x8xf32>,
    %c0_62 = arith.constant 0 : index
    %c164 = arith.constant 164 : index
    %c0_63 = arith.constant 0 : index
    %57 = vector.load %arg1[%c0_62, %c164, %c0_63] : memref<2x328x8xf32, #tpu.memory_space<vmem>>, vector<1x144x8xf32>
    %58 = vector.shape_cast %57 : vector<1x144x8xf32> to vector<144x8xf32>
    %c0_64 = arith.constant 0 : index
    %c40_65 = arith.constant 40 : index
    %59 = vector.load %arg8[%c0_64, %c40_65] : memref<144x128xf32, #tpu.memory_space<vmem>>, vector<144x8xf32>
    tpu.vector_store %arg8[%c0_64, %c40_65], %58 {strides = array<i32>} : memref<144x128xf32, #tpu.memory_space<vmem>>, vector<144x8xf32>,
    %c0_66 = arith.constant 0 : index
    %c180 = arith.constant 180 : index
    %c0_67 = arith.constant 0 : index
    %60 = vector.load %arg1[%c0_66, %c180, %c0_67] : memref<2x328x8xf32, #tpu.memory_space<vmem>>, vector<1x144x8xf32>
    %61 = vector.shape_cast %60 : vector<1x144x8xf32> to vector<144x8xf32>
    %c0_68 = arith.constant 0 : index
    %c48_69 = arith.constant 48 : index
    %62 = vector.load %arg8[%c0_68, %c48_69] : memref<144x128xf32, #tpu.memory_space<vmem>>, vector<144x8xf32>
    tpu.vector_store %arg8[%c0_68, %c48_69], %61 {strides = array<i32>} : memref<144x128xf32, #tpu.memory_space<vmem>>, vector<144x8xf32>,
    %c0_70 = arith.constant 0 : index
    %c181 = arith.constant 181 : index
    %c0_71 = arith.constant 0 : index
    %63 = vector.load %arg1[%c0_70, %c181, %c0_71] : memref<2x328x8xf32, #tpu.memory_space<vmem>>, vector<1x144x8xf32>
    %64 = vector.shape_cast %63 : vector<1x144x8xf32> to vector<144x8xf32>
    %c0_72 = arith.constant 0 : index
    %c56_73 = arith.constant 56 : index
    %65 = vector.load %arg8[%c0_72, %c56_73] : memref<144x128xf32, #tpu.memory_space<vmem>>, vector<144x8xf32>
    tpu.vector_store %arg8[%c0_72, %c56_73], %64 {strides = array<i32>} : memref<144x128xf32, #tpu.memory_space<vmem>>, vector<144x8xf32>,
    %c0_74 = arith.constant 0 : index
    %c182 = arith.constant 182 : index
    %c0_75 = arith.constant 0 : index
    %66 = vector.load %arg1[%c0_74, %c182, %c0_75] : memref<2x328x8xf32, #tpu.memory_space<vmem>>, vector<1x144x8xf32>
    %67 = vector.shape_cast %66 : vector<1x144x8xf32> to vector<144x8xf32>
    %c0_76 = arith.constant 0 : index
    %c64_77 = arith.constant 64 : index
    %68 = vector.load %arg8[%c0_76, %c64_77] : memref<144x128xf32, #tpu.memory_space<vmem>>, vector<144x8xf32>
    tpu.vector_store %arg8[%c0_76, %c64_77], %67 {strides = array<i32>} : memref<144x128xf32, #tpu.memory_space<vmem>>, vector<144x8xf32>,
    %c0_78 = arith.constant 0 : index
    %c0_79 = arith.constant 0 : index
    %69 = vector.load %arg8[%c0_78, %c0_79] : memref<144x128xf32, #tpu.memory_space<vmem>>, vector<144x128xf32>
    %70 = arith.truncf %69 : vector<144x128xf32> to vector<144x128xbf16>
    %c0_80 = arith.constant 0 : index
    %c0_81 = arith.constant 0 : index
    %71 = vector.load %arg2[%c0_80, %c0_81] : memref<128x128xbf16, #tpu.memory_space<vmem>>, vector<128x128xbf16>
    %cst_82 = arith.constant dense<0.000000e+00> : vector<144x128xf32>
    %72 = tpu.matmul %70, %71, %cst_82 {dimension_numbers = #tpu.dot_dimension_numbers<[1], [0], [0], [1], [0, 0, 1, 1], [], []>} : vector<144x128xbf16>, vector<128x128xbf16>, vector<144x128xf32> -> vector<144x128xf32>
    %c0_83 = arith.constant 0 : index
    %c0_84 = arith.constant 0 : index
    %73 = vector.load %arg3[%c0_83, %c0_84] : memref<1x128xf32, #tpu.memory_space<vmem>>, vector<1x128xf32>
    %74 = vector.broadcast %73 : vector<1x128xf32> to vector<144x128xf32>
    %75 = arith.addf %72, %74 : vector<144x128xf32>
    %cst_85 = arith.constant 0.000000e+00 : f32
    %76 = vector.broadcast %cst_85 : f32 to vector<144x128xf32>
    %77 = arith.maximumf %75, %76 : vector<144x128xf32>
    %c1_86 = arith.constant 1 : index
    %c0_87 = arith.constant 0 : index
    %78 = vector.load %arg4[%c1_86, %c0_87] : memref<2x144xf32, #tpu.memory_space<vmem>>, vector<1x144xf32>
    %cst_88 = arith.constant dense<0.000000e+00> : vector<1x128xf32>
    %79 = tpu.matmul %78, %77, %cst_88 {dimension_numbers = #tpu.dot_dimension_numbers<[1], [0], [0], [1], [0, 0, 1, 1], [], []>} : vector<1x144xf32>, vector<144x128xf32>, vector<1x128xf32> -> vector<1x128xf32>
    %80 = arith.addf %41, %79 : vector<1x128xf32>
    %c0_89 = arith.constant 0 : index
    %c0_90 = arith.constant 0 : index
    %81 = vector.load %arg5[%c0_89, %c0_90] : memref<128x128xf32, #tpu.memory_space<vmem>>, vector<128x128xf32>
    %cst_91 = arith.constant dense<0.000000e+00> : vector<1x128xf32>
    %82 = tpu.matmul %80, %81, %cst_91 {dimension_numbers = #tpu.dot_dimension_numbers<[1], [0], [0], [1], [0, 0, 1, 1], [], []>} : vector<1x128xf32>, vector<128x128xf32>, vector<1x128xf32> -> vector<1x128xf32>
    %c0_92 = arith.constant 0 : index
    %c0_93 = arith.constant 0 : index
    %83 = vector.load %arg6[%c0_92, %c0_93] : memref<1x128xf32, #tpu.memory_space<vmem>>, vector<1x128xf32>
    %84 = arith.addf %82, %83 : vector<1x128xf32>
    %c0_94 = arith.constant 0 : index
    %c0_95 = arith.constant 0 : index
    %85 = vector.load %arg7[%c0_94, %c0_95] : memref<2x128xf32, #tpu.memory_space<vmem>>, vector<1x128xf32>
    tpu.vector_store %arg7[%c0_94, %c0_95], %84 {strides = array<i32>} : memref<2x128xf32, #tpu.memory_space<vmem>>, vector<1x128xf32>,
    %cst_96 = arith.constant 0.000000e+00 : f32
    %86 = vector.broadcast %cst_96 : f32 to vector<1x128xf32>
    %c1_97 = arith.constant 1 : index
    %c0_98 = arith.constant 0 : index
    %c0_99 = arith.constant 0 : index
    %87 = vector.load %arg1[%c1_97, %c0_98, %c0_99] : memref<2x328x8xf32, #tpu.memory_space<vmem>>, vector<1x144x8xf32>
    %88 = vector.shape_cast %87 : vector<1x144x8xf32> to vector<144x8xf32>
    %c0_100 = arith.constant 0 : index
    %c0_101 = arith.constant 0 : index
    %89 = vector.load %arg8[%c0_100, %c0_101] : memref<144x128xf32, #tpu.memory_space<vmem>>, vector<144x8xf32>
    tpu.vector_store %arg8[%c0_100, %c0_101], %88 {strides = array<i32>} : memref<144x128xf32, #tpu.memory_space<vmem>>, vector<144x8xf32>,
    %c1_102 = arith.constant 1 : index
    %c1_103 = arith.constant 1 : index
    %c0_104 = arith.constant 0 : index
    %90 = vector.load %arg1[%c1_102, %c1_103, %c0_104] : memref<2x328x8xf32, #tpu.memory_space<vmem>>, vector<1x144x8xf32>
    %91 = vector.shape_cast %90 : vector<1x144x8xf32> to vector<144x8xf32>
    %c0_105 = arith.constant 0 : index
    %c8_106 = arith.constant 8 : index
    %92 = vector.load %arg8[%c0_105, %c8_106] : memref<144x128xf32, #tpu.memory_space<vmem>>, vector<144x8xf32>
    tpu.vector_store %arg8[%c0_105, %c8_106], %91 {strides = array<i32>} : memref<144x128xf32, #tpu.memory_space<vmem>>, vector<144x8xf32>,
    %c1_107 = arith.constant 1 : index
    %c2_108 = arith.constant 2 : index
    %c0_109 = arith.constant 0 : index
    %93 = vector.load %arg1[%c1_107, %c2_108, %c0_109] : memref<2x328x8xf32, #tpu.memory_space<vmem>>, vector<1x144x8xf32>
    %94 = vector.shape_cast %93 : vector<1x144x8xf32> to vector<144x8xf32>
    %c0_110 = arith.constant 0 : index
    %c16_111 = arith.constant 16 : index
    %95 = vector.load %arg8[%c0_110, %c16_111] : memref<144x128xf32, #tpu.memory_space<vmem>>, vector<144x8xf32>
    tpu.vector_store %arg8[%c0_110, %c16_111], %94 {strides = array<i32>} : memref<144x128xf32, #tpu.memory_space<vmem>>, vector<144x8xf32>,
    %c1_112 = arith.constant 1 : index
    %c18_113 = arith.constant 18 : index
    %c0_114 = arith.constant 0 : index
    %96 = vector.load %arg1[%c1_112, %c18_113, %c0_114] : memref<2x328x8xf32, #tpu.memory_space<vmem>>, vector<1x144x8xf32>
    %97 = vector.shape_cast %96 : vector<1x144x8xf32> to vector<144x8xf32>
    %c0_115 = arith.constant 0 : index
    %c24_116 = arith.constant 24 : index
    %98 = vector.load %arg8[%c0_115, %c24_116] : memref<144x128xf32, #tpu.memory_space<vmem>>, vector<144x8xf32>
    tpu.vector_store %arg8[%c0_115, %c24_116], %97 {strides = array<i32>} : memref<144x128xf32, #tpu.memory_space<vmem>>, vector<144x8xf32>,
    %c1_117 = arith.constant 1 : index
    %c19_118 = arith.constant 19 : index
    %c0_119 = arith.constant 0 : index
    %99 = vector.load %arg1[%c1_117, %c19_118, %c0_119] : memref<2x328x8xf32, #tpu.memory_space<vmem>>, vector<1x144x8xf32>
    %100 = vector.shape_cast %99 : vector<1x144x8xf32> to vector<144x8xf32>
    %c0_120 = arith.constant 0 : index
    %c32_121 = arith.constant 32 : index
    %101 = vector.load %arg8[%c0_120, %c32_121] : memref<144x128xf32, #tpu.memory_space<vmem>>, vector<144x8xf32>
    tpu.vector_store %arg8[%c0_120, %c32_121], %100 {strides = array<i32>} : memref<144x128xf32, #tpu.memory_space<vmem>>, vector<144x8xf32>,
    %c1_122 = arith.constant 1 : index
    %c20_123 = arith.constant 20 : index
    %c0_124 = arith.constant 0 : index
    %102 = vector.load %arg1[%c1_122, %c20_123, %c0_124] : memref<2x328x8xf32, #tpu.memory_space<vmem>>, vector<1x144x8xf32>
    %103 = vector.shape_cast %102 : vector<1x144x8xf32> to vector<144x8xf32>
    %c0_125 = arith.constant 0 : index
    %c40_126 = arith.constant 40 : index
    %104 = vector.load %arg8[%c0_125, %c40_126] : memref<144x128xf32, #tpu.memory_space<vmem>>, vector<144x8xf32>
    tpu.vector_store %arg8[%c0_125, %c40_126], %103 {strides = array<i32>} : memref<144x128xf32, #tpu.memory_space<vmem>>, vector<144x8xf32>,
    %c1_127 = arith.constant 1 : index
    %c36_128 = arith.constant 36 : index
    %c0_129 = arith.constant 0 : index
    %105 = vector.load %arg1[%c1_127, %c36_128, %c0_129] : memref<2x328x8xf32, #tpu.memory_space<vmem>>, vector<1x144x8xf32>
    %106 = vector.shape_cast %105 : vector<1x144x8xf32> to vector<144x8xf32>
    %c0_130 = arith.constant 0 : index
    %c48_131 = arith.constant 48 : index
    %107 = vector.load %arg8[%c0_130, %c48_131] : memref<144x128xf32, #tpu.memory_space<vmem>>, vector<144x8xf32>
    tpu.vector_store %arg8[%c0_130, %c48_131], %106 {strides = array<i32>} : memref<144x128xf32, #tpu.memory_space<vmem>>, vector<144x8xf32>,
    %c1_132 = arith.constant 1 : index
    %c37_133 = arith.constant 37 : index
    %c0_134 = arith.constant 0 : index
    %108 = vector.load %arg1[%c1_132, %c37_133, %c0_134] : memref<2x328x8xf32, #tpu.memory_space<vmem>>, vector<1x144x8xf32>
    %109 = vector.shape_cast %108 : vector<1x144x8xf32> to vector<144x8xf32>
    %c0_135 = arith.constant 0 : index
    %c56_136 = arith.constant 56 : index
    %110 = vector.load %arg8[%c0_135, %c56_136] : memref<144x128xf32, #tpu.memory_space<vmem>>, vector<144x8xf32>
    tpu.vector_store %arg8[%c0_135, %c56_136], %109 {strides = array<i32>} : memref<144x128xf32, #tpu.memory_space<vmem>>, vector<144x8xf32>,
    %c1_137 = arith.constant 1 : index
    %c38_138 = arith.constant 38 : index
    %c0_139 = arith.constant 0 : index
    %111 = vector.load %arg1[%c1_137, %c38_138, %c0_139] : memref<2x328x8xf32, #tpu.memory_space<vmem>>, vector<1x144x8xf32>
    %112 = vector.shape_cast %111 : vector<1x144x8xf32> to vector<144x8xf32>
    %c0_140 = arith.constant 0 : index
    %c64_141 = arith.constant 64 : index
    %113 = vector.load %arg8[%c0_140, %c64_141] : memref<144x128xf32, #tpu.memory_space<vmem>>, vector<144x8xf32>
    tpu.vector_store %arg8[%c0_140, %c64_141], %112 {strides = array<i32>} : memref<144x128xf32, #tpu.memory_space<vmem>>, vector<144x8xf32>,
    %c0_142 = arith.constant 0 : index
    %c0_143 = arith.constant 0 : index
    %114 = vector.load %arg8[%c0_142, %c0_143] : memref<144x128xf32, #tpu.memory_space<vmem>>, vector<144x128xf32>
    %115 = arith.truncf %114 : vector<144x128xf32> to vector<144x128xbf16>
    %c0_144 = arith.constant 0 : index
    %c0_145 = arith.constant 0 : index
    %116 = vector.load %arg2[%c0_144, %c0_145] : memref<128x128xbf16, #tpu.memory_space<vmem>>, vector<128x128xbf16>
    %cst_146 = arith.constant dense<0.000000e+00> : vector<144x128xf32>
    %117 = tpu.matmul %115, %116, %cst_146 {dimension_numbers = #tpu.dot_dimension_numbers<[1], [0], [0], [1], [0, 0, 1, 1], [], []>} : vector<144x128xbf16>, vector<128x128xbf16>, vector<144x128xf32> -> vector<144x128xf32>
    %c0_147 = arith.constant 0 : index
    %c0_148 = arith.constant 0 : index
    %118 = vector.load %arg3[%c0_147, %c0_148] : memref<1x128xf32, #tpu.memory_space<vmem>>, vector<1x128xf32>
    %119 = vector.broadcast %118 : vector<1x128xf32> to vector<144x128xf32>
    %120 = arith.addf %117, %119 : vector<144x128xf32>
    %cst_149 = arith.constant 0.000000e+00 : f32
    %121 = vector.broadcast %cst_149 : f32 to vector<144x128xf32>
    %122 = arith.maximumf %120, %121 : vector<144x128xf32>
    %c0_150 = arith.constant 0 : index
    %c0_151 = arith.constant 0 : index
    %123 = vector.load %arg4[%c0_150, %c0_151] : memref<2x144xf32, #tpu.memory_space<vmem>>, vector<1x144xf32>
    %cst_152 = arith.constant dense<0.000000e+00> : vector<1x128xf32>
    %124 = tpu.matmul %123, %122, %cst_152 {dimension_numbers = #tpu.dot_dimension_numbers<[1], [0], [0], [1], [0, 0, 1, 1], [], []>} : vector<1x144xf32>, vector<144x128xf32>, vector<1x128xf32> -> vector<1x128xf32>
    %125 = arith.addf %86, %124 : vector<1x128xf32>
    %c1_153 = arith.constant 1 : index
    %c144_154 = arith.constant 144 : index
    %c0_155 = arith.constant 0 : index
    %126 = vector.load %arg1[%c1_153, %c144_154, %c0_155] : memref<2x328x8xf32, #tpu.memory_space<vmem>>, vector<1x144x8xf32>
    %127 = vector.shape_cast %126 : vector<1x144x8xf32> to vector<144x8xf32>
    %c0_156 = arith.constant 0 : index
    %c0_157 = arith.constant 0 : index
    %128 = vector.load %arg8[%c0_156, %c0_157] : memref<144x128xf32, #tpu.memory_space<vmem>>, vector<144x8xf32>
    tpu.vector_store %arg8[%c0_156, %c0_157], %127 {strides = array<i32>} : memref<144x128xf32, #tpu.memory_space<vmem>>, vector<144x8xf32>,
    %c1_158 = arith.constant 1 : index
    %c145_159 = arith.constant 145 : index
    %c0_160 = arith.constant 0 : index
    %129 = vector.load %arg1[%c1_158, %c145_159, %c0_160] : memref<2x328x8xf32, #tpu.memory_space<vmem>>, vector<1x144x8xf32>
    %130 = vector.shape_cast %129 : vector<1x144x8xf32> to vector<144x8xf32>
    %c0_161 = arith.constant 0 : index
    %c8_162 = arith.constant 8 : index
    %131 = vector.load %arg8[%c0_161, %c8_162] : memref<144x128xf32, #tpu.memory_space<vmem>>, vector<144x8xf32>
    tpu.vector_store %arg8[%c0_161, %c8_162], %130 {strides = array<i32>} : memref<144x128xf32, #tpu.memory_space<vmem>>, vector<144x8xf32>,
    %c1_163 = arith.constant 1 : index
    %c146_164 = arith.constant 146 : index
    %c0_165 = arith.constant 0 : index
    %132 = vector.load %arg1[%c1_163, %c146_164, %c0_165] : memref<2x328x8xf32, #tpu.memory_space<vmem>>, vector<1x144x8xf32>
    %133 = vector.shape_cast %132 : vector<1x144x8xf32> to vector<144x8xf32>
    %c0_166 = arith.constant 0 : index
    %c16_167 = arith.constant 16 : index
    %134 = vector.load %arg8[%c0_166, %c16_167] : memref<144x128xf32, #tpu.memory_space<vmem>>, vector<144x8xf32>
    tpu.vector_store %arg8[%c0_166, %c16_167], %133 {strides = array<i32>} : memref<144x128xf32, #tpu.memory_space<vmem>>, vector<144x8xf32>,
    %c1_168 = arith.constant 1 : index
    %c162_169 = arith.constant 162 : index
    %c0_170 = arith.constant 0 : index
    %135 = vector.load %arg1[%c1_168, %c162_169, %c0_170] : memref<2x328x8xf32, #tpu.memory_space<vmem>>, vector<1x144x8xf32>
    %136 = vector.shape_cast %135 : vector<1x144x8xf32> to vector<144x8xf32>
    %c0_171 = arith.constant 0 : index
    %c24_172 = arith.constant 24 : index
    %137 = vector.load %arg8[%c0_171, %c24_172] : memref<144x128xf32, #tpu.memory_space<vmem>>, vector<144x8xf32>
    tpu.vector_store %arg8[%c0_171, %c24_172], %136 {strides = array<i32>} : memref<144x128xf32, #tpu.memory_space<vmem>>, vector<144x8xf32>,
    %c1_173 = arith.constant 1 : index
    %c163_174 = arith.constant 163 : index
    %c0_175 = arith.constant 0 : index
    %138 = vector.load %arg1[%c1_173, %c163_174, %c0_175] : memref<2x328x8xf32, #tpu.memory_space<vmem>>, vector<1x144x8xf32>
    %139 = vector.shape_cast %138 : vector<1x144x8xf32> to vector<144x8xf32>
    %c0_176 = arith.constant 0 : index
    %c32_177 = arith.constant 32 : index
    %140 = vector.load %arg8[%c0_176, %c32_177] : memref<144x128xf32, #tpu.memory_space<vmem>>, vector<144x8xf32>
    tpu.vector_store %arg8[%c0_176, %c32_177], %139 {strides = array<i32>} : memref<144x128xf32, #tpu.memory_space<vmem>>, vector<144x8xf32>,
    %c1_178 = arith.constant 1 : index
    %c164_179 = arith.constant 164 : index
    %c0_180 = arith.constant 0 : index
    %141 = vector.load %arg1[%c1_178, %c164_179, %c0_180] : memref<2x328x8xf32, #tpu.memory_space<vmem>>, vector<1x144x8xf32>
    %142 = vector.shape_cast %141 : vector<1x144x8xf32> to vector<144x8xf32>
    %c0_181 = arith.constant 0 : index
    %c40_182 = arith.constant 40 : index
    %143 = vector.load %arg8[%c0_181, %c40_182] : memref<144x128xf32, #tpu.memory_space<vmem>>, vector<144x8xf32>
    tpu.vector_store %arg8[%c0_181, %c40_182], %142 {strides = array<i32>} : memref<144x128xf32, #tpu.memory_space<vmem>>, vector<144x8xf32>,
    %c1_183 = arith.constant 1 : index
    %c180_184 = arith.constant 180 : index
    %c0_185 = arith.constant 0 : index
    %144 = vector.load %arg1[%c1_183, %c180_184, %c0_185] : memref<2x328x8xf32, #tpu.memory_space<vmem>>, vector<1x144x8xf32>
    %145 = vector.shape_cast %144 : vector<1x144x8xf32> to vector<144x8xf32>
    %c0_186 = arith.constant 0 : index
    %c48_187 = arith.constant 48 : index
    %146 = vector.load %arg8[%c0_186, %c48_187] : memref<144x128xf32, #tpu.memory_space<vmem>>, vector<144x8xf32>
    tpu.vector_store %arg8[%c0_186, %c48_187], %145 {strides = array<i32>} : memref<144x128xf32, #tpu.memory_space<vmem>>, vector<144x8xf32>,
    %c1_188 = arith.constant 1 : index
    %c181_189 = arith.constant 181 : index
    %c0_190 = arith.constant 0 : index
    %147 = vector.load %arg1[%c1_188, %c181_189, %c0_190] : memref<2x328x8xf32, #tpu.memory_space<vmem>>, vector<1x144x8xf32>
    %148 = vector.shape_cast %147 : vector<1x144x8xf32> to vector<144x8xf32>
    %c0_191 = arith.constant 0 : index
    %c56_192 = arith.constant 56 : index
    %149 = vector.load %arg8[%c0_191, %c56_192] : memref<144x128xf32, #tpu.memory_space<vmem>>, vector<144x8xf32>
    tpu.vector_store %arg8[%c0_191, %c56_192], %148 {strides = array<i32>} : memref<144x128xf32, #tpu.memory_space<vmem>>, vector<144x8xf32>,
    %c1_193 = arith.constant 1 : index
    %c182_194 = arith.constant 182 : index
    %c0_195 = arith.constant 0 : index
    %150 = vector.load %arg1[%c1_193, %c182_194, %c0_195] : memref<2x328x8xf32, #tpu.memory_space<vmem>>, vector<1x144x8xf32>
    %151 = vector.shape_cast %150 : vector<1x144x8xf32> to vector<144x8xf32>
    %c0_196 = arith.constant 0 : index
    %c64_197 = arith.constant 64 : index
    %152 = vector.load %arg8[%c0_196, %c64_197] : memref<144x128xf32, #tpu.memory_space<vmem>>, vector<144x8xf32>
    tpu.vector_store %arg8[%c0_196, %c64_197], %151 {strides = array<i32>} : memref<144x128xf32, #tpu.memory_space<vmem>>, vector<144x8xf32>,
    %c0_198 = arith.constant 0 : index
    %c0_199 = arith.constant 0 : index
    %153 = vector.load %arg8[%c0_198, %c0_199] : memref<144x128xf32, #tpu.memory_space<vmem>>, vector<144x128xf32>
    %154 = arith.truncf %153 : vector<144x128xf32> to vector<144x128xbf16>
    %c0_200 = arith.constant 0 : index
    %c0_201 = arith.constant 0 : index
    %155 = vector.load %arg2[%c0_200, %c0_201] : memref<128x128xbf16, #tpu.memory_space<vmem>>, vector<128x128xbf16>
    %cst_202 = arith.constant dense<0.000000e+00> : vector<144x128xf32>
    %156 = tpu.matmul %154, %155, %cst_202 {dimension_numbers = #tpu.dot_dimension_numbers<[1], [0], [0], [1], [0, 0, 1, 1], [], []>} : vector<144x128xbf16>, vector<128x128xbf16>, vector<144x128xf32> -> vector<144x128xf32>
    %c0_203 = arith.constant 0 : index
    %c0_204 = arith.constant 0 : index
    %157 = vector.load %arg3[%c0_203, %c0_204] : memref<1x128xf32, #tpu.memory_space<vmem>>, vector<1x128xf32>
    %158 = vector.broadcast %157 : vector<1x128xf32> to vector<144x128xf32>
    %159 = arith.addf %156, %158 : vector<144x128xf32>
    %cst_205 = arith.constant 0.000000e+00 : f32
    %160 = vector.broadcast %cst_205 : f32 to vector<144x128xf32>
    %161 = arith.maximumf %159, %160 : vector<144x128xf32>
    %c1_206 = arith.constant 1 : index
    %c0_207 = arith.constant 0 : index
    %162 = vector.load %arg4[%c1_206, %c0_207] : memref<2x144xf32, #tpu.memory_space<vmem>>, vector<1x144xf32>
    %cst_208 = arith.constant dense<0.000000e+00> : vector<1x128xf32>
    %163 = tpu.matmul %162, %161, %cst_208 {dimension_numbers = #tpu.dot_dimension_numbers<[1], [0], [0], [1], [0, 0, 1, 1], [], []>} : vector<1x144xf32>, vector<144x128xf32>, vector<1x128xf32> -> vector<1x128xf32>
    %164 = arith.addf %125, %163 : vector<1x128xf32>
    %c0_209 = arith.constant 0 : index
    %c0_210 = arith.constant 0 : index
    %165 = vector.load %arg5[%c0_209, %c0_210] : memref<128x128xf32, #tpu.memory_space<vmem>>, vector<128x128xf32>
    %cst_211 = arith.constant dense<0.000000e+00> : vector<1x128xf32>
    %166 = tpu.matmul %164, %165, %cst_211 {dimension_numbers = #tpu.dot_dimension_numbers<[1], [0], [0], [1], [0, 0, 1, 1], [], []>} : vector<1x128xf32>, vector<128x128xf32>, vector<1x128xf32> -> vector<1x128xf32>
    %c0_212 = arith.constant 0 : index
    %c0_213 = arith.constant 0 : index
    %167 = vector.load %arg6[%c0_212, %c0_213] : memref<1x128xf32, #tpu.memory_space<vmem>>, vector<1x128xf32>
    %168 = arith.addf %166, %167 : vector<1x128xf32>
    %c1_214 = arith.constant 1 : index
    %c0_215 = arith.constant 0 : index
    %169 = vector.load %arg7[%c1_214, %c0_215] : memref<2x128xf32, #tpu.memory_space<vmem>>, vector<1x128xf32>
    tpu.vector_store %arg7[%c1_214, %c0_215], %168 {strides = array<i32>} : memref<2x128xf32, #tpu.memory_space<vmem>>, vector<1x128xf32>,
    return
  }
  func.func @transform_0(%arg0: i32) -> (i32, i32, i32) {
    %c0_i32 = arith.constant 0 : i32
    %c0_i32_0 = arith.constant 0 : i32
    %c0_i32_1 = arith.constant 0 : i32
    return %arg0, %c0_i32, %c0_i32_0 : i32, i32, i32
  }
  func.func @transform_1(%arg0: i32) -> (i32, i32) {
    %c0_i32 = arith.constant 0 : i32
    %c0_i32_0 = arith.constant 0 : i32
    %c0_i32_1 = arith.constant 0 : i32
    return %c0_i32, %c0_i32_0 : i32, i32
  }
  func.func @transform_2(%arg0: i32) -> (i32, i32) {
    %c0_i32 = arith.constant 0 : i32
    %c0_i32_0 = arith.constant 0 : i32
    %c0_i32_1 = arith.constant 0 : i32
    return %c0_i32, %c0_i32_0 : i32, i32
  }
  func.func @transform_3(%arg0: i32) -> (i32, i32) {
    %c0_i32 = arith.constant 0 : i32
    %c0_i32_0 = arith.constant 0 : i32
    %c0_i32_1 = arith.constant 0 : i32
    return %c0_i32, %c0_i32_0 : i32, i32
  }
  func.func @transform_4(%arg0: i32) -> (i32, i32) {
    %c0_i32 = arith.constant 0 : i32
    %c0_i32_0 = arith.constant 0 : i32
    %c0_i32_1 = arith.constant 0 : i32
    return %c0_i32, %c0_i32_0 : i32, i32
  }
  func.func @transform_5(%arg0: i32) -> (i32, i32) {
    %c0_i32 = arith.constant 0 : i32
    %c0_i32_0 = arith.constant 0 : i32
    %c0_i32_1 = arith.constant 0 : i32
    return %c0_i32, %c0_i32_0 : i32, i32
  }
  func.func @transform_6(%arg0: i32) -> (i32, i32) {
    %c0_i32 = arith.constant 0 : i32
    %c0_i32_0 = arith.constant 0 : i32
    return %arg0, %c0_i32 : i32, i32
  }
}

</mosaic_0001>

<bundles_post_ra>
// kernel: model_forward.1
= control target key start
LH: loop header
LB: loop body
LE: loop exit
PB: predicated region body
PF: predicated region fallthrough
CT: control target
= control target key end

     0   :  { %s6038_s25 = smov 16   ;;  %s6039_s26 = smov 8   ;;  %v6040_v4 = vmov 0.0   ;;  %vm61_vm0 = vcmask 64512   ;;  %vm6046_vm1 = vmmov 0   ;;  %s9939_s0 = inlined_call_operand.vmem [shape: f32[2,328,8], index: 0, kind: input, shape index: {}]   ;;  %s9940_s1 = inlined_call_operand.vmem [shape: bf16[128,128], index: 1, kind: input, shape index: {}]   ;;  %s9941_s2 = inlined_call_operand.vmem [shape: f32[1,128], index: 2, kind: input, shape index: {}]   ;;  %s9942_s3 = inlined_call_operand.vmem [shape: f32[2,144], index: 3, kind: input, shape index: {}]   ;;  %s9943_s4 = inlined_call_operand.vmem [shape: f32[128,128], index: 4, kind: input, shape index: {}]   ;;  %s9944_s5 = inlined_call_operand.vmem [shape: f32[1,128], index: 5, kind: input, shape index: {}]   ;;  %s9945_s6 = inlined_call_operand.hbm [shape: f32[2,128], index: 6, kind: output, shape index: {}]  }
   0x1   :  { %v189_v0 = vld [vmem:[%s9939_s0 + $0x2] sm:$0xff]  ;;  %v190_v2 = vld [vmem:[%s9939_s0 + $0xa] sm:$0xff]  ;;  %25 = vst [vmem:[#allocation2] sm:$0xff] %v6040_v4  ;;  %26 = vst [vmem:[#allocation2 + $0x8] sm:$0xff] %v6040_v4  ;;  %5529 = vmatprep.subr.bf16.mxu0 %v6040_v4  ;;  %5581 = vmatprep.subr.bf16.mxu1 %v6040_v4  ;;  %s6041_s11 = smov 24   ;;  %s6042_s16 = smov 32  }
   0x2   :  { %v80_v1 = vld [vmem:[%s9939_s0 + $0x1] sm:$0xff]  ;;  %225 = vrot.lane.b32.xlu1 %v189_v0, %s6038_s25  ;;  %v81_v3 = vld [vmem:[%s9939_s0 + $0x9] sm:$0xff]  ;;  %27 = vst [vmem:[#allocation2 + $0x10] sm:$0xff] %v6040_v4  ;;  %28 = vst [vmem:[#allocation2 + $0x18] sm:$0xff] %v6040_v4  ;;  %s6043_s21 = smov 40   ;;  %s6044_s8 = smov 48   ;;  %5545 = vmatprep.mubr.msk.bf16.mxu0 %vm6046_vm1, %v6040_v4 }
   0x3   :  { %116 = vrot.lane.b32.xlu0 %v80_v1, %s6039_s26  ;;  %29 = vst [vmem:[#allocation2 + $0x20] sm:$0xff] %v6040_v4  ;;  %30 = vst [vmem:[#allocation2 + $0x28] sm:$0xff] %v6040_v4  ;;  %v299_v5 = vld [vmem:[%s9939_s0 + $0x1a] sm:$0xff]  ;;  %v298_v6 = vld [vmem:[%s9939_s0 + $0x12] sm:$0xff]  ;;  %s6045_s19 = smov 56   ;;  %5597 = vmatprep.mubr.msk.bf16.mxu1 %vm6046_vm1, %v6040_v4  ;;  %s6047_s29 = smov 64  }
   0x4   :  { %31 = vst [vmem:[#allocation2 + $0x30] sm:$0xff] %v6040_v4  ;;  %32 = vst [vmem:[#allocation2 + $0x38] sm:$0xff] %v6040_v4  ;;  %v408_v7 = vld [vmem:[%s9939_s0 + $0x1b] sm:$0xff]  ;;  %v407_v8 = vld [vmem:[%s9939_s0 + $0x13] sm:$0xff] }
   0x5   :  { %33 = vst [vmem:[#allocation2 + $0x40] sm:$0xff] %v6040_v4  ;;  %34 = vst [vmem:[#allocation2 + $0x48] sm:$0xff] %v6040_v4  ;;  %v517_v9 = vld [vmem:[%s9939_s0 + $0x1c] sm:$0xff]  ;;  %v516_v10 = vld [vmem:[%s9939_s0 + $0x14] sm:$0xff] }
   0x6   :  { %35 = vst [vmem:[#allocation2 + $0x50] sm:$0xff] %v6040_v4  ;;  %36 = vst [vmem:[#allocation2 + $0x58] sm:$0xff] %v6040_v4  ;;  %227 = vrot.lane.b32.xlu1 %v190_v2, %s6038_s25  ;;  %v6148_v11 = vld [vmem:[%s9939_s0 + $0x2c] sm:$0xff]  ;;  %v6153_v12 = vld [vmem:[%s9939_s0 + $0x24] sm:$0xff] }
   0x7   :  { %37 = vst [vmem:[#allocation2 + $0x60] sm:$0xff] %v6040_v4  ;;  %38 = vst [vmem:[#allocation2 + $0x68] sm:$0xff] %v6040_v4  ;;  %118 = vrot.lane.b32.xlu0 %v81_v3, %s6039_s26  ;;  %v43_v13 = vld [vmem:[%s9939_s0] sm:$0xff]  ;;  %v44_v14 = vld [vmem:[%s9939_s0 + $0x8] sm:$0xff] }
   0x8   :  { %39 = vst [vmem:[#allocation2 + $0x70] sm:$0xff] %v6040_v4  ;;  %40 = vst [vmem:[#allocation2 + $0x78] sm:$0xff] %v6040_v4  ;;  %v735_v15 = vld [vmem:[%s9939_s0 + $0x2d] sm:$0xff]  ;;  %v5979_v16 = vld [vmem:[%s9940_s1] sm:$0xff]  }
   0x9   :  { %41 = vst [vmem:[#allocation2 + $0x80] sm:$0xff] %v6040_v4  ;;  %42 = vst [vmem:[#allocation2 + $0x88] sm:$0xff] %v6040_v4  ;;  %v734_v17 = vld [vmem:[%s9939_s0 + $0x25] sm:$0xff]  ;;  %5530 = vmatpush3.bf16.msra.mxu0 %v5979_v16  ;;  %v844_v19 = vld [vmem:[%s9939_s0 + $0x2e] sm:$0xff] }
   0xa   :  { %336 = vrot.lane.b32.xlu1 %v299_v5, %s6041_s11  ;;  %62 = vst.msk [vmem:[#allocation2] sm:$0xff] %vm61_vm0, %v43_v13  ;;  %63 = vst.msk [vmem:[#allocation2 + $0x8] sm:$0xff] %vm61_vm0, %v44_v14  ;;  %v5980_v18 = vld [vmem:[%s9940_s1 + $0x8] sm:$0xff]   ;;  %5531 = vmatprep.subr.bf16.mxu0 %v6040_v4  ;;  %v5981_v21 = vld [vmem:[%s9940_s1 + $0x10] sm:$0xff]  }
   0xb   :  { %334 = vrot.lane.b32.xlu0 %v298_v6, %s6041_s11  ;;  %v843_v20 = vld [vmem:[%s9939_s0 + $0x26] sm:$0xff]  ;;  %v83_v22 = vld [vmem:[%s9939_s0 + $0x19] sm:$0xff]  ;;  %v82_v23 = vld [vmem:[%s9939_s0 + $0x11] sm:$0xff] }
   0xc   :  { %v46_v24 = vld [vmem:[%s9939_s0 + $0x18] sm:$0xff]  ;;  %v45_v25 = vld [vmem:[%s9939_s0 + $0x10] sm:$0xff]  ;;  %v5983_v27 = vld [vmem:[%s9940_s1 + $0x20] sm:$0xff]  }
   0xd   :  { %5532 = vmatpush3.bf16.msra.mxu0 %v5980_v18  ;;  %v5982_v26 = vld [vmem:[%s9940_s1 + $0x18] sm:$0xff]   ;;  %65 = vst.msk [vmem:[#allocation2 + $0x18] sm:$0xff] %vm61_vm0, %v46_v24  ;;  %64 = vst.msk [vmem:[#allocation2 + $0x10] sm:$0xff] %vm61_vm0, %v45_v25  ;;  %v301_v28 = vld [vmem:[%s9939_s0 + $0x2a] sm:$0xff] }
   0xe   :  { %445 = vrot.lane.b32.xlu1 %v408_v7, %s6042_s16  ;;  %5533 = vmatprep.subr.bf16.mxu0 %v6040_v4  ;;  %v300_v29 = vld [vmem:[%s9939_s0 + $0x22] sm:$0xff]  ;;  %v410_v31 = vld [vmem:[%s9939_s0 + $0x2b] sm:$0xff]  ;;  %v5986_v34 = vld [vmem:[%s9940_s1 + $0x38] sm:$0xff]  }
   0xf   :  { %443 = vrot.lane.b32.xlu0 %v407_v8, %s6042_s16  ;;  %v5984_v30 = vld [vmem:[%s9940_s1 + $0x28] sm:$0xff]   ;;  %v5985_v33 = vld [vmem:[%s9940_s1 + $0x30] sm:$0xff]   ;;  %v628_v35 = vld [vmem:[%s9939_s0 + $0x3c] sm:$0xff] }
  0x10   :  { %v409_v32 = vld [vmem:[%s9939_s0 + $0x23] sm:$0xff]  ;;  %v627_v36 = vld [vmem:[%s9939_s0 + $0x34] sm:$0xff] }
  0x11   :  { %5534 = vmatpush3.bf16.msra.mxu0 %v5981_v21  ;;  %v48_v37 = vld [vmem:[%s9939_s0 + $0x28] sm:$0xff]  ;;  %v47_v38 = vld [vmem:[%s9939_s0 + $0x20] sm:$0xff]  ;;  %v736_v40 = vld [vmem:[%s9939_s0 + $0x35] sm:$0xff] }
  0x12   :  { %554 = vrot.lane.b32.xlu1 %v517_v9, %s6043_s21  ;;  %5535 = vmatprep.subr.bf16.mxu0 %v6040_v4  ;;  %67 = vst.msk [vmem:[#allocation2 + $0x28] sm:$0xff] %vm61_vm0, %v48_v37  ;;  %66 = vst.msk [vmem:[#allocation2 + $0x20] sm:$0xff] %vm61_vm0, %v47_v38  ;;  %v737_v39 = vld [vmem:[%s9939_s0 + $0x3d] sm:$0xff] }
  0x13   :  { %552 = vrot.lane.b32.xlu0 %v516_v10, %s6043_s21 }
  0x15   :  { %5536 = vmatpush3.bf16.msra.mxu0 %v5982_v26 }
  0x16   :  { %663 = vrot.lane.b32.xlu1 %v6148_v11, %s6044_s8  ;;  %5537 = vmatprep.subr.bf16.mxu0 %v6040_v4 }
  0x17   :  { %661 = vrot.lane.b32.xlu0 %v6153_v12, %s6044_s8 }
  0x19   :  { %5538 = vmatpush3.bf16.msra.mxu0 %v5983_v27 }
  0x1a   :  { %772 = vrot.lane.b32.xlu1 %v735_v15, %s6045_s19  ;;  %5539 = vmatprep.subr.bf16.mxu0 %v6040_v4 }
  0x1b   :  { %770 = vrot.lane.b32.xlu0 %v734_v17, %s6045_s19 }
  0x1d   :  { %5540 = vmatpush3.bf16.msra.mxu0 %v5984_v30 }
  0x1e   :  { %881 = vrot.lane.b32.xlu1 %v844_v19, %s6047_s29  ;;  %5541 = vmatprep.subr.bf16.mxu0 %v6040_v4 }
  0x1f   :  { %879 = vrot.lane.b32.xlu0 %v843_v20, %s6047_s29 }
  0x21   :  { %5542 = vmatpush3.bf16.msra.mxu0 %v5985_v33 }
  0x22   :  { %122 = vrot.lane.b32.xlu1 %v83_v22, %s6039_s26  ;;  %5543 = vmatprep.subr.bf16.mxu0 %v6040_v4 }
  0x23   :  { %120 = vrot.lane.b32.xlu0 %v82_v23, %s6039_s26 }
  0x25   :  { %5544 = vmatpush3.bf16.msra.mxu0 %v5986_v34 }
  0x26   :  { %231 = vrot.lane.b32.xlu1 %v299_v5, %s6038_s25 }
  0x27   :  { %229 = vrot.lane.b32.xlu0 %v298_v6, %s6038_s25 }
  0x2a   :  { %340 = vrot.lane.b32.xlu1 %v301_v28, %s6041_s11 }
  0x2b   :  { %338 = vrot.lane.b32.xlu0 %v300_v29, %s6041_s11 }
  0x2e   :  { %449 = vrot.lane.b32.xlu1 %v410_v31, %s6042_s16 }
  0x2f   :  { %447 = vrot.lane.b32.xlu0 %v409_v32, %s6042_s16 }
  0x32   :  { %558 = vrot.lane.b32.xlu1 %v6148_v11, %s6043_s21 }
  0x33   :  { %556 = vrot.lane.b32.xlu0 %v6153_v12, %s6043_s21 }
  0x36   :  { %667 = vrot.lane.b32.xlu1 %v628_v35, %s6044_s8 }
  0x37   :  { %665 = vrot.lane.b32.xlu0 %v627_v36, %s6044_s8 }
  0x3a   :  { %776 = vrot.lane.b32.xlu1 %v737_v39, %s6045_s19 }
  0x3b   :  { %774 = vrot.lane.b32.xlu0 %v736_v40, %s6045_s19 }
  0x3c   :  { %11 = vsyncpa [#allocation4], 0  ;;  %v846_v41 = vld [vmem:[%s9939_s0 + $0x3e] sm:$0xff]  ;;  %v845_v42 = vld [vmem:[%s9939_s0 + $0x36] sm:$0xff]  ;;  %vm170_vm2 = vcmask 130112   ;;  %vm279_vm3 = vcmask 195712  }
  0x3d   :  { %v85_v43 = vld [vmem:[%s9939_s0 + $0x29] sm:$0xff]  ;;  %v84_v44 = vld [vmem:[%s9939_s0 + $0x21] sm:$0xff]  ;;  %v1211_v45 = vld [vmem:[%s9939_s0 + $0x99] sm:$0xff]  ;;  %vm388_vm4 = vcmask 261312   ;;  %vm497_vm5 = vcmask 326912   ;;  %vm606_vm6 = vcmask 392512  }
  0x3e   :  { %885 = vrot.lane.b32.xlu1 %v846_v41, %s6047_s29  ;;  %v1210_v46 = vld [vmem:[%s9939_s0 + $0x91] sm:$0xff]  ;;  %v1319_v47 = vld [vmem:[%s9939_s0 + $0x9a] sm:$0xff]  ;;  %v6336_v52 = vld [vmem:[%s9939_s0 + $0xa2] sm:$0xff]  ;;  %vm715_vm7 = vcmask 458112   ;;  %vm824_vm8 = vcmask 523712   ;;  %vm933_vm9 = vcmask 589312  }
  0x3f   :  { %883 = vrot.lane.b32.xlu0 %v845_v42, %s6047_s29  ;;  %v1318_v48 = vld [vmem:[%s9939_s0 + $0x92] sm:$0xff]  ;;  %v6317_v49 = vld [vmem:[%s9939_s0 + $0x3a] sm:$0xff]  ;;  %v6331_v51 = vld [vmem:[%s9939_s0 + $0xaa] sm:$0xff]  ;;  %vm2307_vm10 = vcmask 130048  }
  0x40   :  { %v6322_v50 = vld [vmem:[%s9939_s0 + $0x32] sm:$0xff]  ;;  %v412_v53 = vld [vmem:[%s9939_s0 + $0x3b] sm:$0xff]  ;;  %v1534_v57 = vld [vmem:[%s9939_s0 + $0xa3] sm:$0xff] }
  0x41   :  { %v411_v54 = vld [vmem:[%s9939_s0 + $0x33] sm:$0xff]  ;;  %v5987_v55 = vld [vmem:[%s9940_s1] sm:$0xff]   ;;  %v1535_v56 = vld [vmem:[%s9939_s0 + $0xab] sm:$0xff] }
  0x42   :  { %126 = vrot.lane.b32.xlu1 %v85_v43, %s6039_s26  ;;  %5582 = vmatpush3.bf16.msra.mxu1 %v5987_v55  ;;  %v5988_v58 = vld [vmem:[%s9940_s1 + $0x8] sm:$0xff]   ;;  %v5989_v59 = vld [vmem:[%s9940_s1 + $0x10] sm:$0xff]   ;;  %v5990_v62 = vld [vmem:[%s9940_s1 + $0x18] sm:$0xff]  }
  0x43   :  { %124 = vrot.lane.b32.xlu0 %v84_v44, %s6039_s26  ;;  %5583 = vmatprep.subr.bf16.mxu1 %v6040_v4  ;;  %v1643_v60 = vld [vmem:[%s9939_s0 + $0xac] sm:$0xff]  ;;  %v1642_v61 = vld [vmem:[%s9939_s0 + $0xa4] sm:$0xff]  ;;  %v6404_v2 = vld [vmem:[%s9939_s0 + $0xbc] sm:$0xff] }
  0x44   :  { %v6386_v63 = vld [vmem:[%s9939_s0 + $0x4c] sm:$0xff]  ;;  %v6391_v0 = vld [vmem:[%s9939_s0 + $0x44] sm:$0xff]  ;;  %v6409_v3 = vld [vmem:[%s9939_s0 + $0xb4] sm:$0xff] }
  0x45   :  { %v5991_v1 = vld [vmem:[%s9940_s1 + $0x20] sm:$0xff]   ;;  %v5992_v5 = vld [vmem:[%s9940_s1 + $0x28] sm:$0xff]   ;;  %v5993_v9 = vld [vmem:[%s9940_s1 + $0x30] sm:$0xff]  }
  0x46   :  { %1248 = vrot.lane.b32.xlu1 %v1211_v45, %s6039_s26  ;;  %5584 = vmatpush3.bf16.msra.mxu1 %v5988_v58  ;;  %v739_v6 = vld [vmem:[%s9939_s0 + $0x4d] sm:$0xff]  ;;  %v738_v7 = vld [vmem:[%s9939_s0 + $0x45] sm:$0xff]  ;;  %v1859_v8 = vld [vmem:[%s9939_s0 + $0xbd] sm:$0xff] }
  0x47   :  { %1246 = vrot.lane.b32.xlu0 %v1210_v46, %s6039_s26  ;;  %5585 = vmatprep.subr.bf16.mxu1 %v6040_v4  ;;  %v1858_v10 = vld [vmem:[%s9939_s0 + $0xb5] sm:$0xff]  ;;  %v847_v17 = vld [vmem:[%s9939_s0 + $0x46] sm:$0xff]  ;;  %v1967_v20 = vld [vmem:[%s9939_s0 + $0xbe] sm:$0xff] }
  0x48   :  { %v50_v11 = vld [vmem:[%s9939_s0 + $0x38] sm:$0xff]  ;;  %v49_v12 = vld [vmem:[%s9939_s0 + $0x30] sm:$0xff]  ;;  %v6513_v37 = vld [vmem:[%s9939_s0 + $0x42] sm:$0xff] }
  0x49   :  { %69 = vst.msk [vmem:[#allocation2 + $0x38] sm:$0xff] %vm61_vm0, %v50_v11  ;;  %68 = vst.msk [vmem:[#allocation2 + $0x30] sm:$0xff] %vm61_vm0, %v49_v12  ;;  %v5994_v15 = vld [vmem:[%s9940_s1 + $0x38] sm:$0xff]   ;;  %v848_v16 = vld [vmem:[%s9939_s0 + $0x4e] sm:$0xff] }
  0x4a   :  { %235 = vrot.lane.b32.xlu1 %v301_v28, %s6038_s25  ;;  %5586 = vmatpush3.bf16.msra.mxu1 %v5989_v59  ;;  %v1966_v21 = vld [vmem:[%s9939_s0 + $0xb6] sm:$0xff]  ;;  %v1213_v28 = vld [vmem:[%s9939_s0 + $0xa9] sm:$0xff] }
  0x4b   :  { %233 = vrot.lane.b32.xlu0 %v300_v29, %s6038_s25  ;;  %5587 = vmatprep.subr.bf16.mxu1 %v6040_v4  ;;  %v87_v24 = vld [vmem:[%s9939_s0 + $0x39] sm:$0xff]  ;;  %v86_v25 = vld [vmem:[%s9939_s0 + $0x31] sm:$0xff]  ;;  %v1212_v29 = vld [vmem:[%s9939_s0 + $0xa1] sm:$0xff] }
  0x4c   :  { %v6524_v40 = vld [vmem:[%s9939_s0 + $0xba] sm:$0xff]  ;;  %v6529_v41 = vld [vmem:[%s9939_s0 + $0xb2] sm:$0xff]  ;;  %v1860_v11 = vld [vmem:[%s9939_s0 + $0xc5] sm:$0xff] }
  0x4d   :  { %v1175_v44 = vld [vmem:[%s9939_s0 + $0x98] sm:$0xff]  ;;  %v1174_v45 = vld [vmem:[%s9939_s0 + $0x90] sm:$0xff]  ;;  %v52_v12 = vld [vmem:[%s9939_s0 + $0x48] sm:$0xff] }
  0x4e   :  { %1356 = vrot.lane.b32.xlu1 %v1319_v47, %s6038_s25  ;;  %5588 = vmatpush3.bf16.msra.mxu1 %v5990_v62  ;;  %v414_v46 = vld [vmem:[%s9939_s0 + $0x4b] sm:$0xff]  ;;  %v413_v47 = vld [vmem:[%s9939_s0 + $0x43] sm:$0xff]  ;;  %v6587_v62 = vld [vmem:[%s9939_s0 + $0x54] sm:$0xff]  ;;  %71 = vst.msk [vmem:[#allocation2 + $0x48] sm:$0xff] %vm61_vm0, %v52_v12 }
  0x4f   :  { %1354 = vrot.lane.b32.xlu0 %v1318_v48, %s6038_s25  ;;  %5589 = vmatprep.subr.bf16.mxu1 %v6040_v4  ;;  %v1862_v12 = vld [vmem:[%s9939_s0 + $0xd5] sm:$0xff] }
  0x52   :  { %344 = vrot.lane.b32.xlu1 %v6317_v49, %s6041_s11  ;;  %5590 = vmatpush3.bf16.msra.mxu1 %v5991_v1  ;;  %v6598_v1 = vld [vmem:[%s9939_s0 + $0xcc] sm:$0xff] }
  0x53   :  { %342 = vrot.lane.b32.xlu0 %v6322_v50, %s6041_s11  ;;  %5591 = vmatprep.subr.bf16.mxu1 %v6040_v4 }
  0x56   :  { %1464 = vrot.lane.b32.xlu1 %v6331_v51, %s6041_s11  ;;  %5592 = vmatpush3.bf16.msra.mxu1 %v5992_v5 }
  0x57   :  { %1462 = vrot.lane.b32.xlu0 %v6336_v52, %s6041_s11  ;;  %5593 = vmatprep.subr.bf16.mxu1 %v6040_v4 }
  0x5a   :  { %453 = vrot.lane.b32.xlu1 %v412_v53, %s6042_s16  ;;  %5594 = vmatpush3.bf16.msra.mxu1 %v5993_v9  ;;  %v1537_v53 = vld [vmem:[%s9939_s0 + $0xbb] sm:$0xff] }
  0x5b   :  { %451 = vrot.lane.b32.xlu0 %v411_v54, %s6042_s16  ;;  %5595 = vmatprep.subr.bf16.mxu1 %v6040_v4  ;;  %v1536_v54 = vld [vmem:[%s9939_s0 + $0xb3] sm:$0xff] }
  0x5e   :  { %1572 = vrot.lane.b32.xlu1 %v1535_v56, %s6042_s16  ;;  %5596 = vmatpush3.bf16.msra.mxu1 %v5994_v15 }
  0x5f   :  { %1570 = vrot.lane.b32.xlu0 %v1534_v57, %s6042_s16 }
  0x62   :  { %562 = vrot.lane.b32.xlu1 %v628_v35, %s6043_s21 }
  0x63   :  { %560 = vrot.lane.b32.xlu0 %v627_v36, %s6043_s21  ;;  %v6508_v36 = vld [vmem:[%s9939_s0 + $0x4a] sm:$0xff] }
  0x66   :  { %1680 = vrot.lane.b32.xlu1 %v1643_v60, %s6043_s21 }
  0x67   :  { %1678 = vrot.lane.b32.xlu0 %v1642_v61, %s6043_s21  ;;  %v6582_v61 = vld [vmem:[%s9939_s0 + $0x5c] sm:$0xff] }
  0x6a   :  { %671 = vrot.lane.b32.xlu1 %v6386_v63, %s6044_s8 }
  0x6b   :  { %669 = vrot.lane.b32.xlu0 %v6391_v0, %s6044_s8 }
  0x6e   :  { %1788 = vrot.lane.b32.xlu1 %v6404_v2, %s6044_s8 }
  0x6f   :  { %1786 = vrot.lane.b32.xlu0 %v6409_v3, %s6044_s8 }
  0x72   :  { %780 = vrot.lane.b32.xlu1 %v739_v6, %s6045_s19  ;;  %v741_v6 = vld [vmem:[%s9939_s0 + $0x5d] sm:$0xff] }
  0x73   :  { %778 = vrot.lane.b32.xlu0 %v738_v7, %s6045_s19  ;;  %v740_v7 = vld [vmem:[%s9939_s0 + $0x55] sm:$0xff] }
  0x74   :  { %v226_v13 = vpop.permute.xlu1 %225 }
  0x75   :  { %v117_v14 = vpop.permute.xlu0 %116 }
  0x76   :  { %171 = vst.msk [vmem:[#allocation2] sm:$0xff] %vm170_vm2, %v117_v14  ;;  %1896 = vrot.lane.b32.xlu1 %v1859_v8, %s6045_s19 }
  0x77   :  { %1894 = vrot.lane.b32.xlu0 %v1858_v10, %s6045_s19  ;;  %280 = vst.msk [vmem:[#allocation2] sm:$0xff] %vm279_vm3, %v226_v13  ;;  %v1861_v10 = vld [vmem:[%s9939_s0 + $0xcd] sm:$0xff]  ;;  %v51_v13 = vld [vmem:[%s9939_s0 + $0x40] sm:$0xff] }
  0x78   :  { %v228_v18 = vpop.permute.xlu1 %227  ;;  %70 = vst.msk [vmem:[#allocation2 + $0x40] sm:$0xff] %vm61_vm0, %v51_v13 }
  0x79   :  { %v119_v19 = vpop.permute.xlu0 %118 }
  0x7a   :  { %172 = vst.msk [vmem:[#allocation2 + $0x8] sm:$0xff] %vm170_vm2, %v119_v19  ;;  %889 = vrot.lane.b32.xlu1 %v848_v16, %s6047_s29  ;;  %v1177_v16 = vld [vmem:[%s9939_s0 + $0xa8] sm:$0xff]  ;;  %v849_v19 = vld [vmem:[%s9939_s0 + $0x56] sm:$0xff] }
  0x7b   :  { %887 = vrot.lane.b32.xlu0 %v847_v17, %s6047_s29  ;;  %281 = vst.msk [vmem:[#allocation2 + $0x8] sm:$0xff] %vm279_vm3, %v228_v18  ;;  %v1176_v17 = vld [vmem:[%s9939_s0 + $0xa0] sm:$0xff] }
  0x7c   :  { %v337_v22 = vpop.permute.xlu1 %336  ;;  %v850_v18 = vld [vmem:[%s9939_s0 + $0x5e] sm:$0xff] }
  0x7d   :  { %v335_v23 = vpop.permute.xlu0 %334  ;;  %390 = vst.msk [vmem:[#allocation2 + $0x8] sm:$0xff] %vm388_vm4, %v337_v22 }
  0x7e   :  { %389 = vst.msk [vmem:[#allocation2] sm:$0xff] %vm388_vm4, %v335_v23  ;;  %2004 = vrot.lane.b32.xlu1 %v1967_v20, %s6047_s29 }
  0x7f   :  { %2002 = vrot.lane.b32.xlu0 %v1966_v21, %s6047_s29 }
  0x80   :  { %v446_v26 = vpop.permute.xlu1 %445 }
  0x81   :  { %v444_v27 = vpop.permute.xlu0 %443  ;;  %499 = vst.msk [vmem:[#allocation2 + $0x8] sm:$0xff] %vm497_vm5, %v446_v26  ;;  %v1968_v26 = vld [vmem:[%s9939_s0 + $0xc6] sm:$0xff] }
  0x82   :  { %498 = vst.msk [vmem:[#allocation2] sm:$0xff] %vm497_vm5, %v444_v27  ;;  %130 = vrot.lane.b32.xlu1 %v87_v24, %s6039_s26 }
  0x83   :  { %128 = vrot.lane.b32.xlu0 %v86_v25, %s6039_s26  ;;  %v1969_v25 = vld [vmem:[%s9939_s0 + $0xce] sm:$0xff] }
  0x84   :  { %v555_v30 = vpop.permute.xlu1 %554 }
  0x85   :  { %v553_v31 = vpop.permute.xlu0 %552  ;;  %608 = vst.msk [vmem:[#allocation2 + $0x8] sm:$0xff] %vm606_vm6, %v555_v30  ;;  %v88_v30 = vld [vmem:[%s9939_s0 + $0x41] sm:$0xff] }
  0x86   :  { %607 = vst.msk [vmem:[#allocation2] sm:$0xff] %vm606_vm6, %v553_v31  ;;  %1252 = vrot.lane.b32.xlu1 %v1213_v28, %s6039_s26 }
  0x87   :  { %1250 = vrot.lane.b32.xlu0 %v1212_v29, %s6039_s26  ;;  %v89_v29 = vld [vmem:[%s9939_s0 + $0x49] sm:$0xff] }
  0x88   :  { %v664_v32 = vpop.permute.xlu1 %663 }
  0x89   :  { %v662_v33 = vpop.permute.xlu0 %661  ;;  %717 = vst.msk [vmem:[#allocation2 + $0x8] sm:$0xff] %vm715_vm7, %v664_v32 }
  0x8a   :  { %716 = vst.msk [vmem:[#allocation2] sm:$0xff] %vm715_vm7, %v662_v33  ;;  %239 = vrot.lane.b32.xlu1 %v6317_v49, %s6038_s25  ;;  %v1214_v33 = vld [vmem:[%s9939_s0 + $0xb1] sm:$0xff] }
  0x8b   :  { %237 = vrot.lane.b32.xlu0 %v6322_v50, %s6038_s25 }
  0x8c   :  { %v773_v34 = vpop.permute.xlu1 %772 }
  0x8d   :  { %v771_v35 = vpop.permute.xlu0 %770  ;;  %826 = vst.msk [vmem:[#allocation2 + $0x8] sm:$0xff] %vm824_vm8, %v773_v34 }
  0x8e   :  { %825 = vst.msk [vmem:[#allocation2] sm:$0xff] %vm824_vm8, %v771_v35  ;;  %1360 = vrot.lane.b32.xlu1 %v6331_v51, %s6038_s25 }
  0x8f   :  { %1358 = vrot.lane.b32.xlu0 %v6336_v52, %s6038_s25 }
  0x90   :  { %v882_v38 = vpop.permute.xlu1 %881 }
  0x91   :  { %v880_v39 = vpop.permute.xlu0 %879  ;;  %935 = vst.msk [vmem:[#allocation2 + $0x8] sm:$0xff] %vm933_vm9, %v882_v38 }
  0x92   :  { %934 = vst.msk [vmem:[#allocation2] sm:$0xff] %vm933_vm9, %v880_v39  ;;  %348 = vrot.lane.b32.xlu1 %v6508_v36, %s6041_s11 }
  0x93   :  { %346 = vrot.lane.b32.xlu0 %v6513_v37, %s6041_s11 }
  0x94   :  { %v123_v42 = vpop.permute.xlu1 %122 }
  0x95   :  { %v121_v43 = vpop.permute.xlu0 %120  ;;  %174 = vst.msk [vmem:[#allocation2 + $0x18] sm:$0xff] %vm170_vm2, %v123_v42 }
  0x96   :  { %173 = vst.msk [vmem:[#allocation2 + $0x10] sm:$0xff] %vm170_vm2, %v121_v43  ;;  %1468 = vrot.lane.b32.xlu1 %v6524_v40, %s6041_s11 }
  0x97   :  { %1466 = vrot.lane.b32.xlu0 %v6529_v41, %s6041_s11 }
  0x98   :  { %v232_v48 = vpop.permute.xlu1 %231  ;;  %v953_v51 = vld [vmem:[#allocation2 + $0x8] sm:$0xff] }
  0x99   :  { %v230_v49 = vpop.permute.xlu0 %229  ;;  %v952_v50 = vld [vmem:[#allocation2] sm:$0xff]  ;;  %283 = vst.msk [vmem:[#allocation2 + $0x18] sm:$0xff] %vm279_vm3, %v232_v48 }
  0x9a   :  { %282 = vst.msk [vmem:[#allocation2 + $0x10] sm:$0xff] %vm279_vm3, %v230_v49  ;;  %v970_v52 = vpack.c.bf16 %v953_v51, %v952_v50  ;;  %457 = vrot.lane.b32.xlu1 %v414_v46, %s6042_s16  ;;  %v416_v48 = vld [vmem:[%s9939_s0 + $0x5b] sm:$0xff]  ;;  %v415_v49 = vld [vmem:[%s9939_s0 + $0x53] sm:$0xff] }
  0x9b   :  { %1193 = vst.msk [vmem:[#allocation2 + $0x8] sm:$0xff] %vm61_vm0, %v1175_v44  ;;  %1192 = vst.msk [vmem:[#allocation2] sm:$0xff] %vm61_vm0, %v1174_v45  ;;  %455 = vrot.lane.b32.xlu0 %v413_v47, %s6042_s16  ;;  %v6704_v44 = vld [vmem:[%s9939_s0 + $0x5a] sm:$0xff] }
  0x9c   :  { %5546 = vmatmul.mubr.bf16.vlgmr.msra.gmra.mrb[0].mxu0 %v970_v52  ;;  %v341_v55 = vpop.permute.xlu1 %340  ;;  %v1539_v52 = vld [vmem:[%s9939_s0 + $0xcb] sm:$0xff] }
  0x9d   :  { %v339_v56 = vpop.permute.xlu0 %338  ;;  %5549 = vmatprep.mubr.msk.bf16.mxu0 %vm6046_vm1, %v6040_v4  ;;  %392 = vst.msk [vmem:[#allocation2 + $0x18] sm:$0xff] %vm388_vm4, %v341_v55 }
  0x9e   :  { %391 = vst.msk [vmem:[#allocation2 + $0x10] sm:$0xff] %vm388_vm4, %v339_v56  ;;  %1576 = vrot.lane.b32.xlu1 %v1537_v53, %s6042_s16  ;;  %v1538_v53 = vld [vmem:[%s9939_s0 + $0xc3] sm:$0xff] }
  0x9f   :  { %1574 = vrot.lane.b32.xlu0 %v1536_v54, %s6042_s16 }
  0xa0   :  { %v450_v57 = vpop.permute.xlu1 %449 }
  0xa1   :  { %v448_v58 = vpop.permute.xlu0 %447  ;;  %501 = vst.msk [vmem:[#allocation2 + $0x18] sm:$0xff] %vm497_vm5, %v450_v57 }
  0xa2   :  { %500 = vst.msk [vmem:[#allocation2 + $0x10] sm:$0xff] %vm497_vm5, %v448_v58  ;;  %566 = vrot.lane.b32.xlu1 %v6386_v63, %s6043_s21 }
  0xa3   :  { %564 = vrot.lane.b32.xlu0 %v6391_v0, %s6043_s21 }
  0xa4   :  { %v559_v59 = vpop.permute.xlu1 %558 }
  0xa5   :  { %v557_v60 = vpop.permute.xlu0 %556  ;;  %610 = vst.msk [vmem:[#allocation2 + $0x18] sm:$0xff] %vm606_vm6, %v559_v59 }
  0xa6   :  { %609 = vst.msk [vmem:[#allocation2 + $0x10] sm:$0xff] %vm606_vm6, %v557_v60  ;;  %1684 = vrot.lane.b32.xlu1 %v6404_v2, %s6043_s21  ;;  %v6603_v2 = vld [vmem:[%s9939_s0 + $0xc4] sm:$0xff]  ;;  %v6768_v60 = vld [vmem:[%s9939_s0 + $0x6c] sm:$0xff] }
  0xa7   :  { %1682 = vrot.lane.b32.xlu0 %v6409_v3, %s6043_s21 }
  0xa8   :  { %v668_v63 = vpop.permute.xlu1 %667 }
  0xa9   :  { %v666_v0 = vpop.permute.xlu0 %665  ;;  %719 = vst.msk [vmem:[#allocation2 + $0x18] sm:$0xff] %vm715_vm7, %v668_v63 }
  0xaa   :  { %718 = vst.msk [vmem:[#allocation2 + $0x10] sm:$0xff] %vm715_vm7, %v666_v0  ;;  %675 = vrot.lane.b32.xlu1 %v6582_v61, %s6044_s8  ;;  %v6784_v0 = vld [vmem:[%s9939_s0 + $0xdc] sm:$0xff] }
  0xab   :  { %673 = vrot.lane.b32.xlu0 %v6587_v62, %s6044_s8 }
  0xac   :  { %v777_v3 = vpop.permute.xlu1 %776 }
  0xad   :  { %v775_v5 = vpop.permute.xlu0 %774  ;;  %828 = vst.msk [vmem:[#allocation2 + $0x18] sm:$0xff] %vm824_vm8, %v777_v3 }
  0xae   :  { %827 = vst.msk [vmem:[#allocation2 + $0x10] sm:$0xff] %vm824_vm8, %v775_v5  ;;  %1792 = vrot.lane.b32.xlu1 %v6598_v1, %s6044_s8  ;;  %v743_v5 = vld [vmem:[%s9939_s0 + $0x6d] sm:$0xff] }
  0xaf   :  { %1790 = vrot.lane.b32.xlu0 %v6603_v2, %s6044_s8 }
  0xb0   :  { %v886_v8 = vpop.permute.xlu1 %885 }
  0xb1   :  { %v884_v9 = vpop.permute.xlu0 %883  ;;  %937 = vst.msk [vmem:[#allocation2 + $0x18] sm:$0xff] %vm933_vm9, %v886_v8 }
  0xb2   :  { %936 = vst.msk [vmem:[#allocation2 + $0x10] sm:$0xff] %vm933_vm9, %v884_v9  ;;  %784 = vrot.lane.b32.xlu1 %v741_v6, %s6045_s19  ;;  %v742_v6 = vld [vmem:[%s9939_s0 + $0x65] sm:$0xff]  ;;  %v1179_v9 = vld [vmem:[%s9939_s0 + $0xb8] sm:$0xff] }
  0xb3   :  { %782 = vrot.lane.b32.xlu0 %v740_v7, %s6045_s19 }
  0xb4   :  { %v127_v14 = vpop.permute.xlu1 %126 }
  0xb5   :  { %v125_v15 = vpop.permute.xlu0 %124  ;;  %176 = vst.msk [vmem:[#allocation2 + $0x28] sm:$0xff] %vm170_vm2, %v127_v14 }
  0xb6   :  { %175 = vst.msk [vmem:[#allocation2 + $0x20] sm:$0xff] %vm170_vm2, %v125_v15  ;;  %1900 = vrot.lane.b32.xlu1 %v1861_v10, %s6045_s19  ;;  %v1178_v10 = vld [vmem:[%s9939_s0 + $0xb0] sm:$0xff] }
  0xb7   :  { %1898 = vrot.lane.b32.xlu0 %v1860_v11, %s6045_s19  ;;  %v1863_v11 = vld [vmem:[%s9939_s0 + $0xdd] sm:$0xff] }
  0xb8   :  { %v1249_v20 = vpop.permute.xlu1 %1248  ;;  %v955_v23 = vld [vmem:[#allocation2 + $0x18] sm:$0xff] }
  0xb9   :  { %v1247_v21 = vpop.permute.xlu0 %1246  ;;  %v954_v22 = vld [vmem:[#allocation2 + $0x10] sm:$0xff]  ;;  %1301 = vst.msk [vmem:[#allocation2 + $0x8] sm:$0xff] %vm170_vm2, %v1249_v20 }
  0xba   :  { %1300 = vst.msk [vmem:[#allocation2] sm:$0xff] %vm170_vm2, %v1247_v21  ;;  %v971_v24 = vpack.c.bf16 %v955_v23, %v954_v22  ;;  %893 = vrot.lane.b32.xlu1 %v850_v18, %s6047_s29  ;;  %v852_v20 = vld [vmem:[%s9939_s0 + $0x6e] sm:$0xff]  ;;  %v851_v21 = vld [vmem:[%s9939_s0 + $0x66] sm:$0xff] }
  0xbb   :  { %1195 = vst.msk [vmem:[#allocation2 + $0x18] sm:$0xff] %vm61_vm0, %v1177_v16  ;;  %1194 = vst.msk [vmem:[#allocation2 + $0x10] sm:$0xff] %vm61_vm0, %v1176_v17  ;;  %891 = vrot.lane.b32.xlu0 %v849_v19, %s6047_s29  ;;  %v54_v17 = vld [vmem:[%s9939_s0 + $0x58] sm:$0xff]  ;;  %v53_v19 = vld [vmem:[%s9939_s0 + $0x50] sm:$0xff] }
  0xbc   :  { %5550 = vmatmul.mubr.bf16.gmra.mrb[4].mxu0 %v971_v24  ;;  %v236_v27 = vpop.permute.xlu1 %235  ;;  %73 = vst.msk [vmem:[#allocation2 + $0x58] sm:$0xff] %vm61_vm0, %v54_v17  ;;  %72 = vst.msk [vmem:[#allocation2 + $0x50] sm:$0xff] %vm61_vm0, %v53_v19 }
  0xbd   :  { %v234_v28 = vpop.permute.xlu0 %233  ;;  %5553 = vmatprep.mubr.msk.bf16.mxu0 %vm6046_vm1, %v6040_v4  ;;  %285 = vst.msk [vmem:[#allocation2 + $0x28] sm:$0xff] %vm279_vm3, %v236_v27  ;;  %v1215_v4 = vld [vmem:[%s9939_s0 + $0xb9] sm:$0xff] }
  0xbe   :  { %284 = vst.msk [vmem:[#allocation2 + $0x20] sm:$0xff] %vm279_vm3, %v234_v28  ;;  %2008 = vrot.lane.b32.xlu1 %v1969_v25, %s6047_s29  ;;  %v1971_v28 = vld [vmem:[%s9939_s0 + $0xde] sm:$0xff] }
  0xbf   :  { %2006 = vrot.lane.b32.xlu0 %v1968_v26, %s6047_s29  ;;  %v6839_v26 = vld [vmem:[#allocation2 + $0x60] sm:$0xff] }
  0xc0   :  { %v1357_v31 = vpop.permute.xlu1 %1356 }
  0xc1   :  { %v1355_v32 = vpop.permute.xlu0 %1354  ;;  %1409 = vst.msk [vmem:[#allocation2 + $0x8] sm:$0xff] %vm279_vm3, %v1357_v31 }
  0xc2   :  { %1408 = vst.msk [vmem:[#allocation2] sm:$0xff] %vm279_vm3, %v1355_v32  ;;  %134 = vrot.lane.b32.xlu1 %v89_v29, %s6039_s26  ;;  %v1970_v29 = vld [vmem:[%s9939_s0 + $0xd6] sm:$0xff] }
  0xc3   :  { %132 = vrot.lane.b32.xlu0 %v88_v30, %s6039_s26  ;;  %v91_v32 = vld [vmem:[%s9939_s0 + $0x59] sm:$0xff] }
  0xc4   :  { %v345_v34 = vpop.permute.xlu1 %344 }
  0xc5   :  { %v343_v35 = vpop.permute.xlu0 %342  ;;  %394 = vst.msk [vmem:[#allocation2 + $0x28] sm:$0xff] %vm388_vm4, %v345_v34 }
  0xc6   :  { %393 = vst.msk [vmem:[#allocation2 + $0x20] sm:$0xff] %vm388_vm4, %v343_v35  ;;  %1256 = vrot.lane.b32.xlu1 %v1215_v4, %s6039_s26  ;;  %v90_v4 = vld [vmem:[%s9939_s0 + $0x51] sm:$0xff]  ;;  %v1217_v35 = vld [vmem:[%s9939_s0 + $0xc9] sm:$0xff] }
  0xc7   :  { %1254 = vrot.lane.b32.xlu0 %v1214_v33, %s6039_s26 }
  0xc8   :  { %v1465_v38 = vpop.permute.xlu1 %1464 }
  0xc9   :  { %v1463_v39 = vpop.permute.xlu0 %1462  ;;  %1517 = vst.msk [vmem:[#allocation2 + $0x8] sm:$0xff] %vm388_vm4, %v1465_v38  ;;  %v1216_v38 = vld [vmem:[%s9939_s0 + $0xc1] sm:$0xff] }
  0xca   :  { %1516 = vst.msk [vmem:[#allocation2] sm:$0xff] %vm388_vm4, %v1463_v39  ;;  %243 = vrot.lane.b32.xlu1 %v6508_v36, %s6038_s25  ;;  %v6709_v36 = vld [vmem:[%s9939_s0 + $0x52] sm:$0xff] }
  0xcb   :  { %241 = vrot.lane.b32.xlu0 %v6513_v37, %s6038_s25 }
  0xcc   :  { %v454_v42 = vpop.permute.xlu1 %453 }
  0xcd   :  { %v452_v43 = vpop.permute.xlu0 %451  ;;  %503 = vst.msk [vmem:[#allocation2 + $0x28] sm:$0xff] %vm497_vm5, %v454_v42 }
  0xce   :  { %502 = vst.msk [vmem:[#allocation2 + $0x20] sm:$0xff] %vm497_vm5, %v452_v43  ;;  %1364 = vrot.lane.b32.xlu1 %v6524_v40, %s6038_s25  ;;  %v6720_v40 = vld [vmem:[%s9939_s0 + $0xca] sm:$0xff] }
  0xcf   :  { %1362 = vrot.lane.b32.xlu0 %v6529_v41, %s6038_s25  ;;  %v6725_v41 = vld [vmem:[%s9939_s0 + $0xc2] sm:$0xff] }
  0xd0   :  { %v1573_v37 = vpop.permute.xlu1 %1572 }
  0xd1   :  { %v1571_v45 = vpop.permute.xlu0 %1570  ;;  %1625 = vst.msk [vmem:[#allocation2 + $0x8] sm:$0xff] %vm497_vm5, %v1573_v37 }
  0xd2   :  { %1624 = vst.msk [vmem:[#allocation2] sm:$0xff] %vm497_vm5, %v1571_v45  ;;  %352 = vrot.lane.b32.xlu1 %v6704_v44, %s6041_s11 }
  0xd3   :  { %350 = vrot.lane.b32.xlu0 %v6709_v36, %s6041_s11 }
  0xd4   :  { %v563_v46 = vpop.permute.xlu1 %562 }
  0xd5   :  { %v561_v47 = vpop.permute.xlu0 %560  ;;  %612 = vst.msk [vmem:[#allocation2 + $0x28] sm:$0xff] %vm606_vm6, %v563_v46 }
  0xd6   :  { %611 = vst.msk [vmem:[#allocation2 + $0x20] sm:$0xff] %vm606_vm6, %v561_v47  ;;  %1472 = vrot.lane.b32.xlu1 %v6720_v40, %s6041_s11  ;;  %v6894_v47 = vld [vmem:[%s9939_s0 + $0x6a] sm:$0xff] }
  0xd7   :  { %1470 = vrot.lane.b32.xlu0 %v6725_v41, %s6041_s11 }
  0xd8   :  { %v1681_v50 = vpop.permute.xlu1 %1680 }
  0xd9   :  { %v1679_v51 = vpop.permute.xlu0 %1678  ;;  %1733 = vst.msk [vmem:[#allocation2 + $0x8] sm:$0xff] %vm606_vm6, %v1681_v50 }
  0xda   :  { %1732 = vst.msk [vmem:[#allocation2] sm:$0xff] %vm606_vm6, %v1679_v51  ;;  %461 = vrot.lane.b32.xlu1 %v416_v48, %s6042_s16  ;;  %v418_v51 = vld [vmem:[%s9939_s0 + $0x6b] sm:$0xff] }
  0xdb   :  { %459 = vrot.lane.b32.xlu0 %v415_v49, %s6042_s16 }
  0xdc   :  { %v672_v54 = vpop.permute.xlu1 %671 }
  0xdd   :  { %v670_v55 = vpop.permute.xlu0 %669  ;;  %721 = vst.msk [vmem:[#allocation2 + $0x28] sm:$0xff] %vm715_vm7, %v672_v54 }
  0xde   :  { %720 = vst.msk [vmem:[#allocation2 + $0x20] sm:$0xff] %vm715_vm7, %v670_v55  ;;  %1580 = vrot.lane.b32.xlu1 %v1539_v52, %s6042_s16  ;;  %v417_v52 = vld [vmem:[%s9939_s0 + $0x63] sm:$0xff]  ;;  %v1541_v55 = vld [vmem:[%s9939_s0 + $0xdb] sm:$0xff] }
  0xdf   :  { %1578 = vrot.lane.b32.xlu0 %v1538_v53, %s6042_s16 }
  0xe0   :  { %v1789_v56 = vpop.permute.xlu1 %1788 }
  0xe1   :  { %v1787_v57 = vpop.permute.xlu0 %1786  ;;  %1841 = vst.msk [vmem:[#allocation2 + $0x8] sm:$0xff] %vm715_vm7, %v1789_v56  ;;  %v1540_v56 = vld [vmem:[%s9939_s0 + $0xd3] sm:$0xff] }
  0xe2   :  { %1840 = vst.msk [vmem:[#allocation2] sm:$0xff] %vm715_vm7, %v1787_v57  ;;  %570 = vrot.lane.b32.xlu1 %v6582_v61, %s6043_s21  ;;  %v6773_v61 = vld [vmem:[%s9939_s0 + $0x64] sm:$0xff] }
  0xe3   :  { %568 = vrot.lane.b32.xlu0 %v6587_v62, %s6043_s21 }
  0xe4   :  { %v781_v58 = vpop.permute.xlu1 %780 }
  0xe5   :  { %v779_v59 = vpop.permute.xlu0 %778  ;;  %830 = vst.msk [vmem:[#allocation2 + $0x28] sm:$0xff] %vm824_vm8, %v781_v58 }
  0xe6   :  { %829 = vst.msk [vmem:[#allocation2 + $0x20] sm:$0xff] %vm824_vm8, %v779_v59  ;;  %1688 = vrot.lane.b32.xlu1 %v6598_v1, %s6043_s21  ;;  %v6789_v1 = vld [vmem:[%s9939_s0 + $0xd4] sm:$0xff] }
  0xe7   :  { %1686 = vrot.lane.b32.xlu0 %v6603_v2, %s6043_s21 }
  0xe8   :  { %v1897_v62 = vpop.permute.xlu1 %1896 }
  0xe9   :  { %v1895_v63 = vpop.permute.xlu0 %1894  ;;  %1949 = vst.msk [vmem:[#allocation2 + $0x8] sm:$0xff] %vm824_vm8, %v1897_v62 }
  0xea   :  { %1948 = vst.msk [vmem:[#allocation2] sm:$0xff] %vm824_vm8, %v1895_v63  ;;  %679 = vrot.lane.b32.xlu1 %v6768_v60, %s6044_s8 }
  0xeb   :  { %677 = vrot.lane.b32.xlu0 %v6773_v61, %s6044_s8 }
  0xec   :  { %v890_v2 = vpop.permute.xlu1 %889 }
  0xed   :  { %v888_v3 = vpop.permute.xlu0 %887  ;;  %939 = vst.msk [vmem:[#allocation2 + $0x28] sm:$0xff] %vm933_vm9, %v890_v2 }
  0xee   :  { %938 = vst.msk [vmem:[#allocation2 + $0x20] sm:$0xff] %vm933_vm9, %v888_v3  ;;  %1796 = vrot.lane.b32.xlu1 %v6784_v0, %s6044_s8  ;;  %v6958_v3 = vld [vmem:[%s9939_s0 + $0x7c] sm:$0xff] }
  0xef   :  { %1794 = vrot.lane.b32.xlu0 %v6789_v1, %s6044_s8 }
  0xf0   :  { %v2005_v7 = vpop.permute.xlu1 %2004 }
  0xf1   :  { %v2003_v8 = vpop.permute.xlu0 %2002  ;;  %2057 = vst.msk [vmem:[#allocation2 + $0x8] sm:$0xff] %vm933_vm9, %v2005_v7 }
  0xf2   :  { %2056 = vst.msk [vmem:[#allocation2] sm:$0xff] %vm933_vm9, %v2003_v8  ;;  %788 = vrot.lane.b32.xlu1 %v743_v5, %s6045_s19  ;;  %v745_v8 = vld [vmem:[%s9939_s0 + $0x7d] sm:$0xff] }
  0xf3   :  { %786 = vrot.lane.b32.xlu0 %v742_v6, %s6045_s19 }
  0xf4   :  { %v131_v13 = vpop.permute.xlu1 %130  ;;  %v957_v16 = vld [vmem:[#allocation2 + $0x28] sm:$0xff] }
  0xf5   :  { %v129_v14 = vpop.permute.xlu0 %128  ;;  %v956_v15 = vld [vmem:[#allocation2 + $0x20] sm:$0xff]  ;;  %178 = vst.msk [vmem:[#allocation2 + $0x38] sm:$0xff] %vm170_vm2, %v131_v13 }
  0xf6   :  { %177 = vst.msk [vmem:[#allocation2 + $0x30] sm:$0xff] %vm170_vm2, %v129_v14  ;;  %v972_v18 = vpack.c.bf16 %v957_v16, %v956_v15  ;;  %1904 = vrot.lane.b32.xlu1 %v1863_v11, %s6045_s19  ;;  %v1180_v13 = vld [vmem:[%s9939_s0 + $0xc0] sm:$0xff]  ;;  %v1865_v14 = vld [vmem:[%s9939_s0 + $0xed] sm:$0xff] }
  0xf7   :  { %1197 = vst.msk [vmem:[#allocation2 + $0x28] sm:$0xff] %vm61_vm0, %v1179_v9  ;;  %1196 = vst.msk [vmem:[#allocation2 + $0x20] sm:$0xff] %vm61_vm0, %v1178_v10  ;;  %1902 = vrot.lane.b32.xlu0 %v1862_v12, %s6045_s19  ;;  %v744_v9 = vld [vmem:[%s9939_s0 + $0x75] sm:$0xff]  ;;  %v1181_v12 = vld [vmem:[%s9939_s0 + $0xc8] sm:$0xff] }
  0xf8   :  { %5554 = vmatmul.mubr.bf16.gmra.mrb[8].mxu0 %v972_v18  ;;  %v1253_v22 = vpop.permute.xlu1 %1252  ;;  %v2075_v25 = vld [vmem:[#allocation2 + $0x8] sm:$0xff] }
  0xf9   :  { %v1251_v23 = vpop.permute.xlu0 %1250  ;;  %v2074_v24 = vld [vmem:[#allocation2] sm:$0xff]  ;;  %5557 = vmatprep.mubr.msk.bf16.mxu0 %vm6046_vm1, %v6839_v26  ;;  %1303 = vst.msk [vmem:[#allocation2 + $0x18] sm:$0xff] %vm170_vm2, %v1253_v22 }
  0xfa   :  { %1302 = vst.msk [vmem:[#allocation2 + $0x10] sm:$0xff] %vm170_vm2, %v1251_v23  ;;  %v2092_v27 = vpack.c.bf16 %v2075_v25, %v2074_v24  ;;  %897 = vrot.lane.b32.xlu1 %v852_v20, %s6047_s29  ;;  %v1864_v15 = vld [vmem:[%s9939_s0 + $0xe5] sm:$0xff]  ;;  %v853_v24 = vld [vmem:[%s9939_s0 + $0x76] sm:$0xff] }
  0xfb   :  { %895 = vrot.lane.b32.xlu0 %v851_v21, %s6047_s29  ;;  %v56_v20 = vld [vmem:[%s9939_s0 + $0x68] sm:$0xff]  ;;  %v55_v22 = vld [vmem:[%s9939_s0 + $0x60] sm:$0xff] }
  0xfc   :  { %5598 = vmatmul.mubr.bf16.vlgmr.msra.gmra.mrb[0].mxu1 %v2092_v27  ;;  %v240_v30 = vpop.permute.xlu1 %239  ;;  %75 = vst.msk [vmem:[#allocation2 + $0x68] sm:$0xff] %vm61_vm0, %v56_v20  ;;  %74 = vst.msk [vmem:[#allocation2 + $0x60] sm:$0xff] %vm61_vm0, %v55_v22  ;;  %v854_v23 = vld [vmem:[%s9939_s0 + $0x7e] sm:$0xff] }
  0xfd   :  { %v238_v31 = vpop.permute.xlu0 %237  ;;  %5601 = vmatprep.mubr.msk.bf16.mxu1 %vm6046_vm1, %v6839_v26  ;;  %287 = vst.msk [vmem:[#allocation2 + $0x38] sm:$0xff] %vm279_vm3, %v240_v30 }
  0xfe   :  { %286 = vst.msk [vmem:[#allocation2 + $0x30] sm:$0xff] %vm279_vm3, %v238_v31  ;;  %2012 = vrot.lane.b32.xlu1 %v1971_v28, %s6047_s29  ;;  %v1973_v31 = vld [vmem:[%s9939_s0 + $0xee] sm:$0xff] }
  0xff   :  { %2010 = vrot.lane.b32.xlu0 %v1970_v29, %s6047_s29 }
 0x100   :  { %v1361_v33 = vpop.permute.xlu1 %1360 }
 0x101   :  { %v1359_v34 = vpop.permute.xlu0 %1358  ;;  %1411 = vst.msk [vmem:[#allocation2 + $0x18] sm:$0xff] %vm279_vm3, %v1361_v33 }
 0x102   :  { %1410 = vst.msk [vmem:[#allocation2 + $0x10] sm:$0xff] %vm279_vm3, %v1359_v34  ;;  %138 = vrot.lane.b32.xlu1 %v91_v32, %s6039_s26  ;;  %v1972_v32 = vld [vmem:[%s9939_s0 + $0xe6] sm:$0xff] }
 0x103   :  { %136 = vrot.lane.b32.xlu0 %v90_v4, %s6039_s26  ;;  %v93_v34 = vld [vmem:[%s9939_s0 + $0x69] sm:$0xff] }
 0x104   :  { %v349_v39 = vpop.permute.xlu1 %348 }
 0x105   :  { %v347_v42 = vpop.permute.xlu0 %346  ;;  %396 = vst.msk [vmem:[#allocation2 + $0x38] sm:$0xff] %vm388_vm4, %v349_v39 }
 0x106   :  { %395 = vst.msk [vmem:[#allocation2 + $0x30] sm:$0xff] %vm388_vm4, %v347_v42  ;;  %1260 = vrot.lane.b32.xlu1 %v1217_v35, %s6039_s26  ;;  %v92_v35 = vld [vmem:[%s9939_s0 + $0x61] sm:$0xff]  ;;  %v1219_v42 = vld [vmem:[%s9939_s0 + $0xd9] sm:$0xff] }
 0x107   :  { %1258 = vrot.lane.b32.xlu0 %v1216_v38, %s6039_s26 }
 0x108   :  { %v1469_v43 = vpop.permute.xlu1 %1468 }
 0x109   :  { %v1467_v37 = vpop.permute.xlu0 %1466  ;;  %1519 = vst.msk [vmem:[#allocation2 + $0x18] sm:$0xff] %vm388_vm4, %v1469_v43  ;;  %v1218_v43 = vld [vmem:[%s9939_s0 + $0xd1] sm:$0xff] }
 0x10a   :  { %1518 = vst.msk [vmem:[#allocation2 + $0x10] sm:$0xff] %vm388_vm4, %v1467_v37  ;;  %247 = vrot.lane.b32.xlu1 %v6704_v44, %s6038_s25  ;;  %v6899_v44 = vld [vmem:[%s9939_s0 + $0x62] sm:$0xff] }
 0x10b   :  { %245 = vrot.lane.b32.xlu0 %v6709_v36, %s6038_s25 }
 0x10c   :  { %v458_v45 = vpop.permute.xlu1 %457 }
 0x10d   :  { %v456_v46 = vpop.permute.xlu0 %455  ;;  %505 = vst.msk [vmem:[#allocation2 + $0x38] sm:$0xff] %vm497_vm5, %v458_v45 }
 0x10e   :  { %504 = vst.msk [vmem:[#allocation2 + $0x30] sm:$0xff] %vm497_vm5, %v456_v46  ;;  %1368 = vrot.lane.b32.xlu1 %v6720_v40, %s6038_s25  ;;  %v6910_v40 = vld [vmem:[%s9939_s0 + $0xda] sm:$0xff] }
 0x10f   :  { %1366 = vrot.lane.b32.xlu0 %v6725_v41, %s6038_s25  ;;  %v6915_v41 = vld [vmem:[%s9939_s0 + $0xd2] sm:$0xff] }
 0x110   :  { %v1577_v36 = vpop.permute.xlu1 %1576 }
 0x111   :  { %v1575_v48 = vpop.permute.xlu0 %1574  ;;  %1627 = vst.msk [vmem:[#allocation2 + $0x18] sm:$0xff] %vm497_vm5, %v1577_v36 }
 0x112   :  { %1626 = vst.msk [vmem:[#allocation2 + $0x10] sm:$0xff] %vm497_vm5, %v1575_v48  ;;  %356 = vrot.lane.b32.xlu1 %v6894_v47, %s6041_s11 }
 0x113   :  { %354 = vrot.lane.b32.xlu0 %v6899_v44, %s6041_s11 }
 0x114   :  { %v567_v49 = vpop.permute.xlu1 %566 }
 0x115   :  { %v565_v50 = vpop.permute.xlu0 %564  ;;  %614 = vst.msk [vmem:[#allocation2 + $0x38] sm:$0xff] %vm606_vm6, %v567_v49 }
 0x116   :  { %613 = vst.msk [vmem:[#allocation2 + $0x30] sm:$0xff] %vm606_vm6, %v565_v50  ;;  %1476 = vrot.lane.b32.xlu1 %v6910_v40, %s6041_s11  ;;  %v7082_v50 = vld [vmem:[%s9939_s0 + $0x7a] sm:$0xff] }
 0x117   :  { %1474 = vrot.lane.b32.xlu0 %v6915_v41, %s6041_s11 }
 0x118   :  { %v1685_v53 = vpop.permute.xlu1 %1684 }
 0x119   :  { %v1683_v54 = vpop.permute.xlu0 %1682  ;;  %1735 = vst.msk [vmem:[#allocation2 + $0x18] sm:$0xff] %vm606_vm6, %v1685_v53 }
 0x11a   :  { %1734 = vst.msk [vmem:[#allocation2 + $0x10] sm:$0xff] %vm606_vm6, %v1683_v54  ;;  %465 = vrot.lane.b32.xlu1 %v418_v51, %s6042_s16  ;;  %v420_v54 = vld [vmem:[%s9939_s0 + $0x7b] sm:$0xff] }
 0x11b   :  { %463 = vrot.lane.b32.xlu0 %v417_v52, %s6042_s16 }
 0x11c   :  { %v676_v57 = vpop.permute.xlu1 %675 }
 0x11d   :  { %v674_v58 = vpop.permute.xlu0 %673  ;;  %723 = vst.msk [vmem:[#allocation2 + $0x38] sm:$0xff] %vm715_vm7, %v676_v57 }
 0x11e   :  { %722 = vst.msk [vmem:[#allocation2 + $0x30] sm:$0xff] %vm715_vm7, %v674_v58  ;;  %1584 = vrot.lane.b32.xlu1 %v1541_v55, %s6042_s16  ;;  %v419_v55 = vld [vmem:[%s9939_s0 + $0x73] sm:$0xff] }
 0x11f   :  { %1582 = vrot.lane.b32.xlu0 %v1540_v56, %s6042_s16  ;;  %v6048_v56 = vmov 0.0|0.0  }
 0x120   :  { %v1793_v59 = vpop.permute.xlu1 %1792  ;;  %5807 = vmatprep.subr.bf16.mxu0 %v6048_v56  ;;  %5861 = vmatprep.subr.bf16.mxu1 %v6048_v56 }
 0x121   :  { %v1791_v62 = vpop.permute.xlu0 %1790  ;;  %1843 = vst.msk [vmem:[#allocation2 + $0x18] sm:$0xff] %vm715_vm7, %v1793_v59  ;;  %v1543_v59 = vld [vmem:[%s9939_s0 + $0xeb] sm:$0xff] }
 0x122   :  { %1842 = vst.msk [vmem:[#allocation2 + $0x10] sm:$0xff] %vm715_vm7, %v1791_v62  ;;  %574 = vrot.lane.b32.xlu1 %v6768_v60, %s6043_s21  ;;  %v6963_v60 = vld [vmem:[%s9939_s0 + $0x74] sm:$0xff]  ;;  %v1542_v62 = vld [vmem:[%s9939_s0 + $0xe3] sm:$0xff] }
 0x123   :  { %572 = vrot.lane.b32.xlu0 %v6773_v61, %s6043_s21 }
 0x124   :  { %v785_v63 = vpop.permute.xlu1 %784 }
 0x125   :  { %v783_v2 = vpop.permute.xlu0 %782  ;;  %832 = vst.msk [vmem:[#allocation2 + $0x38] sm:$0xff] %vm824_vm8, %v785_v63 }
 0x126   :  { %831 = vst.msk [vmem:[#allocation2 + $0x30] sm:$0xff] %vm824_vm8, %v783_v2  ;;  %1692 = vrot.lane.b32.xlu1 %v6784_v0, %s6043_s21  ;;  %v6974_v0 = vld [vmem:[%s9939_s0 + $0xec] sm:$0xff] }
 0x127   :  { %1690 = vrot.lane.b32.xlu0 %v6789_v1, %s6043_s21  ;;  %v6979_v1 = vld [vmem:[%s9939_s0 + $0xe4] sm:$0xff] }
 0x128   :  { %v1901_v61 = vpop.permute.xlu1 %1900 }
 0x129   :  { %v1899_v5 = vpop.permute.xlu0 %1898  ;;  %1951 = vst.msk [vmem:[#allocation2 + $0x18] sm:$0xff] %vm824_vm8, %v1901_v61 }
 0x12a   :  { %1950 = vst.msk [vmem:[#allocation2 + $0x10] sm:$0xff] %vm824_vm8, %v1899_v5  ;;  %683 = vrot.lane.b32.xlu1 %v6958_v3, %s6044_s8 }
 0x12b   :  { %681 = vrot.lane.b32.xlu0 %v6963_v60, %s6044_s8 }
 0x12c   :  { %v894_v6 = vpop.permute.xlu1 %893 }
 0x12d   :  { %v892_v7 = vpop.permute.xlu0 %891  ;;  %941 = vst.msk [vmem:[#allocation2 + $0x38] sm:$0xff] %vm933_vm9, %v894_v6 }
 0x12e   :  { %940 = vst.msk [vmem:[#allocation2 + $0x30] sm:$0xff] %vm933_vm9, %v892_v7  ;;  %1800 = vrot.lane.b32.xlu1 %v6974_v0, %s6044_s8 }
 0x12f   :  { %1798 = vrot.lane.b32.xlu0 %v6979_v1, %s6044_s8 }
 0x130   :  { %v2009_v10 = vpop.permute.xlu1 %2008 }
 0x131   :  { %v2007_v11 = vpop.permute.xlu0 %2006  ;;  %2059 = vst.msk [vmem:[#allocation2 + $0x18] sm:$0xff] %vm933_vm9, %v2009_v10 }
 0x132   :  { %2058 = vst.msk [vmem:[#allocation2 + $0x10] sm:$0xff] %vm933_vm9, %v2007_v11  ;;  %792 = vrot.lane.b32.xlu1 %v745_v8, %s6045_s19  ;;  %v7148_v8 = vld [vmem:[%s9939_s0 + $0x8c] sm:$0xff] }
 0x133   :  { %790 = vrot.lane.b32.xlu0 %v744_v9, %s6045_s19 }
 0x134   :  { %v135_v16 = vpop.permute.xlu1 %134  ;;  %v959_v19 = vld [vmem:[#allocation2 + $0x38] sm:$0xff] }
 0x135   :  { %v133_v17 = vpop.permute.xlu0 %132  ;;  %v958_v18 = vld [vmem:[#allocation2 + $0x30] sm:$0xff]  ;;  %180 = vst.msk [vmem:[#allocation2 + $0x48] sm:$0xff] %vm170_vm2, %v135_v16  ;;  %v746_v16 = vld [vmem:[%s9939_s0 + $0x85] sm:$0xff] }
 0x136   :  { %179 = vst.msk [vmem:[#allocation2 + $0x40] sm:$0xff] %vm170_vm2, %v133_v17  ;;  %v973_v21 = vpack.c.bf16 %v959_v19, %v958_v18  ;;  %1908 = vrot.lane.b32.xlu1 %v1865_v14, %s6045_s19 }
 0x137   :  { %1199 = vst.msk [vmem:[#allocation2 + $0x38] sm:$0xff] %vm61_vm0, %v1181_v12  ;;  %1198 = vst.msk [vmem:[#allocation2 + $0x30] sm:$0xff] %vm61_vm0, %v1180_v13  ;;  %1906 = vrot.lane.b32.xlu0 %v1864_v15, %s6045_s19  ;;  %v7176_v12 = vld [vmem:[%s9941_s2] ss:$0 sm:$0xff]  ;;  %v747_v15 = vld [vmem:[%s9939_s0 + $0x8d] sm:$0xff] }
 0x138   :  { %5558 = vmatmul.mubr.bf16.gmra.mrb[12].mxu0 %v973_v21  ;;  %v1257_v25 = vpop.permute.xlu1 %1256  ;;  %v2077_v29 = vld [vmem:[#allocation2 + $0x18] sm:$0xff] }
 0x139   :  { %v1255_v27 = vpop.permute.xlu0 %1254  ;;  %v2076_v28 = vld [vmem:[#allocation2 + $0x10] sm:$0xff]  ;;  %5561 = vmatprep.mubr.msk.bf16.mxu0 %vm6046_vm1, %v6839_v26  ;;  %1305 = vst.msk [vmem:[#allocation2 + $0x28] sm:$0xff] %vm170_vm2, %v1257_v25  ;;  %v1867_v25 = vld [vmem:[%s9939_s0 + $0xfd] sm:$0xff] }
 0x13a   :  { %1304 = vst.msk [vmem:[#allocation2 + $0x20] sm:$0xff] %vm170_vm2, %v1255_v27  ;;  %v2093_v30 = vpack.c.bf16 %v2077_v29, %v2076_v28  ;;  %901 = vrot.lane.b32.xlu1 %v854_v23, %s6047_s29  ;;  %v1183_v23 = vld [vmem:[%s9939_s0 + $0xd8] sm:$0xff] }
 0x13b   :  { %899 = vrot.lane.b32.xlu0 %v853_v24, %s6047_s29  ;;  %v1182_v24 = vld [vmem:[%s9939_s0 + $0xd0] sm:$0xff] }
 0x13c   :  { %5602 = vmatmul.mubr.bf16.gmra.mrb[4].mxu1 %v2093_v30  ;;  %v244_v4 = vpop.permute.xlu1 %243  ;;  %v1866_v27 = vld [vmem:[%s9939_s0 + $0xf5] sm:$0xff] }
 0x13d   :  { %v242_v33 = vpop.permute.xlu0 %241  ;;  %5605 = vmatprep.mubr.msk.bf16.mxu1 %vm6046_vm1, %v6839_v26  ;;  %289 = vst.msk [vmem:[#allocation2 + $0x48] sm:$0xff] %vm279_vm3, %v244_v4 }
 0x13e   :  { %288 = vst.msk [vmem:[#allocation2 + $0x40] sm:$0xff] %vm279_vm3, %v242_v33  ;;  %2016 = vrot.lane.b32.xlu1 %v1973_v31, %s6047_s29  ;;  %v58_v33 = vld [vmem:[%s9939_s0 + $0x78] sm:$0xff] }
 0x13f   :  { %2014 = vrot.lane.b32.xlu0 %v1972_v32, %s6047_s29  ;;  %77 = vst.msk [vmem:[#allocation2 + $0x78] sm:$0xff] %vm61_vm0, %v58_v33 }
 0x140   :  { %v1365_v38 = vpop.permute.xlu1 %1364 }
 0x141   :  { %v1363_v39 = vpop.permute.xlu0 %1362  ;;  %1413 = vst.msk [vmem:[#allocation2 + $0x28] sm:$0xff] %vm279_vm3, %v1365_v38 }
 0x142   :  { %1412 = vst.msk [vmem:[#allocation2 + $0x20] sm:$0xff] %vm279_vm3, %v1363_v39  ;;  %142 = vrot.lane.b32.xlu1 %v93_v34, %s6039_s26  ;;  %v856_v39 = vld [vmem:[%s9939_s0 + $0x8e] sm:$0xff] }
 0x143   :  { %140 = vrot.lane.b32.xlu0 %v92_v35, %s6039_s26  ;;  %v57_v35 = vld [vmem:[%s9939_s0 + $0x70] sm:$0xff] }
 0x144   :  { %v353_v37 = vpop.permute.xlu1 %352  ;;  %76 = vst.msk [vmem:[#allocation2 + $0x70] sm:$0xff] %vm61_vm0, %v57_v35 }
 0x145   :  { %v351_v45 = vpop.permute.xlu0 %350  ;;  %398 = vst.msk [vmem:[#allocation2 + $0x48] sm:$0xff] %vm388_vm4, %v353_v37 }
 0x146   :  { %397 = vst.msk [vmem:[#allocation2 + $0x40] sm:$0xff] %vm388_vm4, %v351_v45  ;;  %1264 = vrot.lane.b32.xlu1 %v1219_v42, %s6039_s26  ;;  %v855_v42 = vld [vmem:[%s9939_s0 + $0x86] sm:$0xff] }
 0x147   :  { %1262 = vrot.lane.b32.xlu0 %v1218_v43, %s6039_s26 }
 0x148   :  { %v1473_v46 = vpop.permute.xlu1 %1472 }
 0x149   :  { %v1471_v36 = vpop.permute.xlu0 %1470  ;;  %1521 = vst.msk [vmem:[#allocation2 + $0x28] sm:$0xff] %vm388_vm4, %v1473_v46 }
 0x14a   :  { %1520 = vst.msk [vmem:[#allocation2 + $0x20] sm:$0xff] %vm388_vm4, %v1471_v36  ;;  %251 = vrot.lane.b32.xlu1 %v6894_v47, %s6038_s25  ;;  %v7087_v47 = vld [vmem:[%s9939_s0 + $0x72] sm:$0xff] }
 0x14b   :  { %249 = vrot.lane.b32.xlu0 %v6899_v44, %s6038_s25 }
 0x14c   :  { %v462_v48 = vpop.permute.xlu1 %461 }
 0x14d   :  { %v460_v49 = vpop.permute.xlu0 %459  ;;  %507 = vst.msk [vmem:[#allocation2 + $0x48] sm:$0xff] %vm497_vm5, %v462_v48  ;;  %v1975_v48 = vld [vmem:[%s9939_s0 + $0xfe] sm:$0xff] }
 0x14e   :  { %506 = vst.msk [vmem:[#allocation2 + $0x40] sm:$0xff] %vm497_vm5, %v460_v49  ;;  %1372 = vrot.lane.b32.xlu1 %v6910_v40, %s6038_s25  ;;  %v7098_v40 = vld [vmem:[%s9939_s0 + $0xea] sm:$0xff]  ;;  %v1974_v49 = vld [vmem:[%s9939_s0 + $0xf6] sm:$0xff] }
 0x14f   :  { %1370 = vrot.lane.b32.xlu0 %v6915_v41, %s6038_s25  ;;  %v7103_v41 = vld [vmem:[%s9939_s0 + $0xe2] sm:$0xff] }
 0x150   :  { %v1581_v44 = vpop.permute.xlu1 %1580 }
 0x151   :  { %v1579_v51 = vpop.permute.xlu0 %1578  ;;  %1629 = vst.msk [vmem:[#allocation2 + $0x28] sm:$0xff] %vm497_vm5, %v1581_v44 }
 0x152   :  { %1628 = vst.msk [vmem:[#allocation2 + $0x20] sm:$0xff] %vm497_vm5, %v1579_v51  ;;  %360 = vrot.lane.b32.xlu1 %v7082_v50, %s6041_s11 }
 0x153   :  { %358 = vrot.lane.b32.xlu0 %v7087_v47, %s6041_s11 }
 0x154   :  { %v571_v52 = vpop.permute.xlu1 %570 }
 0x155   :  { %v569_v53 = vpop.permute.xlu0 %568  ;;  %616 = vst.msk [vmem:[#allocation2 + $0x48] sm:$0xff] %vm606_vm6, %v571_v52  ;;  %v95_v52 = vld [vmem:[%s9939_s0 + $0x79] sm:$0xff] }
 0x156   :  { %615 = vst.msk [vmem:[#allocation2 + $0x40] sm:$0xff] %vm606_vm6, %v569_v53  ;;  %1480 = vrot.lane.b32.xlu1 %v7098_v40, %s6041_s11  ;;  %v94_v53 = vld [vmem:[%s9939_s0 + $0x71] sm:$0xff] }
 0x157   :  { %1478 = vrot.lane.b32.xlu0 %v7103_v41, %s6041_s11 }
 0x158   :  { %v1689_v57 = vpop.permute.xlu1 %1688 }
 0x159   :  { %v1687_v58 = vpop.permute.xlu0 %1686  ;;  %1737 = vst.msk [vmem:[#allocation2 + $0x28] sm:$0xff] %vm606_vm6, %v1689_v57  ;;  %v1221_v57 = vld [vmem:[%s9939_s0 + $0xe9] sm:$0xff] }
 0x15a   :  { %1736 = vst.msk [vmem:[#allocation2 + $0x20] sm:$0xff] %vm606_vm6, %v1687_v58  ;;  %469 = vrot.lane.b32.xlu1 %v420_v54, %s6042_s16  ;;  %v1220_v58 = vld [vmem:[%s9939_s0 + $0xe1] sm:$0xff] }
 0x15b   :  { %467 = vrot.lane.b32.xlu0 %v419_v55, %s6042_s16 }
 0x15c   :  { %v680_v63 = vpop.permute.xlu1 %679 }
 0x15d   :  { %v678_v2 = vpop.permute.xlu0 %677  ;;  %725 = vst.msk [vmem:[#allocation2 + $0x48] sm:$0xff] %vm715_vm7, %v680_v63 }
 0x15e   :  { %724 = vst.msk [vmem:[#allocation2 + $0x40] sm:$0xff] %vm715_vm7, %v678_v2  ;;  %1588 = vrot.lane.b32.xlu1 %v1543_v59, %s6042_s16 }
 0x15f   :  { %1586 = vrot.lane.b32.xlu0 %v1542_v62, %s6042_s16 }
 0x160   :  { %v1797_v61 = vpop.permute.xlu1 %1796 }
 0x161   :  { %v1795_v5 = vpop.permute.xlu0 %1794  ;;  %1845 = vst.msk [vmem:[#allocation2 + $0x28] sm:$0xff] %vm715_vm7, %v1797_v61 }
 0x162   :  { %1844 = vst.msk [vmem:[#allocation2 + $0x20] sm:$0xff] %vm715_vm7, %v1795_v5  ;;  %578 = vrot.lane.b32.xlu1 %v6958_v3, %s6043_s21  ;;  %v7153_v3 = vld [vmem:[%s9939_s0 + $0x84] sm:$0xff] }
 0x163   :  { %576 = vrot.lane.b32.xlu0 %v6963_v60, %s6043_s21 }
 0x164   :  { %v789_v6 = vpop.permute.xlu1 %788 }
 0x165   :  { %v787_v7 = vpop.permute.xlu0 %786  ;;  %834 = vst.msk [vmem:[#allocation2 + $0x48] sm:$0xff] %vm824_vm8, %v789_v6 }
 0x166   :  { %833 = vst.msk [vmem:[#allocation2 + $0x40] sm:$0xff] %vm824_vm8, %v787_v7  ;;  %1696 = vrot.lane.b32.xlu1 %v6974_v0, %s6043_s21  ;;  %v7164_v0 = vld [vmem:[%s9939_s0 + $0xfc] sm:$0xff] }
 0x167   :  { %1694 = vrot.lane.b32.xlu0 %v6979_v1, %s6043_s21  ;;  %v7169_v1 = vld [vmem:[%s9939_s0 + $0xf4] sm:$0xff] }
 0x168   :  { %v1905_v60 = vpop.permute.xlu1 %1904 }
 0x169   :  { %v1903_v9 = vpop.permute.xlu0 %1902  ;;  %1953 = vst.msk [vmem:[#allocation2 + $0x28] sm:$0xff] %vm824_vm8, %v1905_v60 }
 0x16a   :  { %1952 = vst.msk [vmem:[#allocation2 + $0x20] sm:$0xff] %vm824_vm8, %v1903_v9  ;;  %687 = vrot.lane.b32.xlu1 %v7148_v8, %s6044_s8 }
 0x16b   :  { %685 = vrot.lane.b32.xlu0 %v7153_v3, %s6044_s8 }
 0x16c   :  { %v898_v10 = vpop.permute.xlu1 %897 }
 0x16d   :  { %v896_v11 = vpop.permute.xlu0 %895  ;;  %943 = vst.msk [vmem:[#allocation2 + $0x48] sm:$0xff] %vm933_vm9, %v898_v10 }
 0x16e   :  { %942 = vst.msk [vmem:[#allocation2 + $0x40] sm:$0xff] %vm933_vm9, %v896_v11  ;;  %1804 = vrot.lane.b32.xlu1 %v7164_v0, %s6044_s8 }
 0x16f   :  { %1802 = vrot.lane.b32.xlu0 %v7169_v1, %s6044_s8  ;;  %v1084_v13 = vpop.f32.mrb[0].mxu0 }
 0x170   :  { %v5547_v14 = vpop.f32.mrb[1].mxu0  ;;  %v1085_v17 = vadd.f32 %v7176_v12, %v1084_v13  ;;  %v2013_v18 = vpop.permute.xlu1 %2012  ;;  %v7299_v13 = vld [vmem:[%s9939_s0 + $0xfa] sm:$0xff] }
 0x171   :  { %v2011_v19 = vpop.permute.xlu0 %2010  ;;  %2061 = vst.msk [vmem:[#allocation2 + $0x28] sm:$0xff] %vm933_vm9, %v2013_v18  ;;  %v1087_v20 = vpop.f32.mrb[2].mxu0  ;;  %v7304_v14 = vld [vmem:[%s9939_s0 + $0xf2] sm:$0xff] }
 0x172   :  { %2060 = vst.msk [vmem:[#allocation2 + $0x20] sm:$0xff] %vm933_vm9, %v2011_v19  ;;  %v1088_v21 = vadd.f32 %v7176_v12, %v1087_v20  ;;  %v5548_v22 = vpop.f32.mrb[3].mxu0  ;;  %796 = vrot.lane.b32.xlu1 %v747_v15, %s6045_s19  ;;  %v1155_v28 = vmax.f32 %v1085_v17, 0.0  ;;  %v422_v20 = vld [vmem:[%s9939_s0 + $0x8b] sm:$0xff] }
 0x173   :  { %794 = vrot.lane.b32.xlu0 %v746_v16, %s6045_s19 }
 0x174   :  { %v1156_v29 = vmax.f32 %v1088_v21, 0.0  ;;  %v139_v30 = vpop.permute.xlu1 %138  ;;  %v961_v4 = vld [vmem:[#allocation2 + $0x48] sm:$0xff] }
 0x175   :  { %v137_v31 = vpop.permute.xlu0 %136  ;;  %v960_v32 = vld [vmem:[#allocation2 + $0x40] sm:$0xff]  ;;  %182 = vst.msk [vmem:[#allocation2 + $0x58] sm:$0xff] %vm170_vm2, %v139_v30 }
 0x176   :  { %181 = vst.msk [vmem:[#allocation2 + $0x50] sm:$0xff] %vm170_vm2, %v137_v31  ;;  %v974_v34 = vpack.c.bf16 %v961_v4, %v960_v32  ;;  %v7217_v38 = vpack.c.bf16 %v1156_v29, %v1155_v28  ;;  %1912 = vrot.lane.b32.xlu1 %v1867_v25, %s6045_s19  ;;  %v421_v21 = vld [vmem:[%s9939_s0 + $0x83] sm:$0xff]  ;;  %v1544_v25 = vld [vmem:[%s9939_s0 + $0xf3] sm:$0xff] }
 0x177   :  { %1201 = vst.msk [vmem:[#allocation2 + $0x48] sm:$0xff] %vm61_vm0, %v1183_v23  ;;  %1200 = vst.msk [vmem:[#allocation2 + $0x40] sm:$0xff] %vm61_vm0, %v1182_v24  ;;  %1910 = vrot.lane.b32.xlu0 %v1866_v27, %s6045_s19  ;;  %v1545_v24 = vld [vmem:[%s9939_s0 + $0xfb] sm:$0xff] }
 0x178   :  { %5562 = vmatmul.mubr.bf16.gmra.mrb[16].mxu0 %v974_v34  ;;  %v1261_v43 = vpop.permute.xlu1 %1260  ;;  %v2079_v46 = vld [vmem:[#allocation2 + $0x28] sm:$0xff]  ;;  %v7349_v4 = vld [vmem:[%s9939_s0 + $0x9c] sm:$0xff] }
 0x179   :  { %v1259_v37 = vpop.permute.xlu0 %1258  ;;  %v2078_v45 = vld [vmem:[#allocation2 + $0x20] sm:$0xff]  ;;  %5565 = vmatprep.mubr.msk.bf16.mxu0 %vm6046_vm1, %v6839_v26  ;;  %1307 = vst.msk [vmem:[#allocation2 + $0x38] sm:$0xff] %vm170_vm2, %v1261_v43 }
 0x17a   :  { %1306 = vst.msk [vmem:[#allocation2 + $0x30] sm:$0xff] %vm170_vm2, %v1259_v37  ;;  %v2094_v36 = vpack.c.bf16 %v2079_v46, %v2078_v45  ;;  %905 = vrot.lane.b32.xlu1 %v856_v39, %s6047_s29  ;;  %v749_v39 = vld [vmem:[%s9939_s0 + $0x9d] sm:$0xff]  ;;  %v1185_v45 = vld [vmem:[%s9939_s0 + $0xe8] sm:$0xff] }
 0x17b   :  { %903 = vrot.lane.b32.xlu0 %v855_v42, %s6047_s29  ;;  %v748_v42 = vld [vmem:[%s9939_s0 + $0x95] sm:$0xff]  ;;  %v1184_v46 = vld [vmem:[%s9939_s0 + $0xe0] sm:$0xff] }
 0x17c   :  { %5606 = vmatmul.mubr.bf16.gmra.mrb[8].mxu1 %v2094_v36  ;;  %v248_v44 = vpop.permute.xlu1 %247  ;;  %v1869_v36 = vld [vmem:[%s9939_s0 + $0x10d] sm:$0xff] }
 0x17d   :  { %v246_v51 = vpop.permute.xlu0 %245  ;;  %5609 = vmatprep.mubr.msk.bf16.mxu1 %vm6046_vm1, %v6839_v26  ;;  %291 = vst.msk [vmem:[#allocation2 + $0x58] sm:$0xff] %vm279_vm3, %v248_v44 }
 0x17e   :  { %290 = vst.msk [vmem:[#allocation2 + $0x50] sm:$0xff] %vm279_vm3, %v246_v51  ;;  %2020 = vrot.lane.b32.xlu1 %v1975_v48, %s6047_s29  ;;  %v1868_v48 = vld [vmem:[%s9939_s0 + $0x105] sm:$0xff] }
 0x17f   :  { %2018 = vrot.lane.b32.xlu0 %v1974_v49, %s6047_s29 }
 0x180   :  { %v1369_v54 = vpop.permute.xlu1 %1368 }
 0x181   :  { %v1367_v55 = vpop.permute.xlu0 %1366  ;;  %1415 = vst.msk [vmem:[#allocation2 + $0x38] sm:$0xff] %vm279_vm3, %v1369_v54 }
 0x182   :  { %1414 = vst.msk [vmem:[#allocation2 + $0x30] sm:$0xff] %vm279_vm3, %v1367_v55  ;;  %146 = vrot.lane.b32.xlu1 %v95_v52, %s6039_s26  ;;  %v59_v55 = vld [vmem:[%s9939_s0 + $0x80] sm:$0xff] }
 0x183   :  { %144 = vrot.lane.b32.xlu0 %v94_v53, %s6039_s26  ;;  %v60_v53 = vld [vmem:[%s9939_s0 + $0x88] sm:$0xff]  ;;  %78 = vst.msk [vmem:[#allocation2 + $0x80] sm:$0xff] %vm61_vm0, %v59_v55 }
 0x184   :  { %v357_v59 = vpop.permute.xlu1 %356  ;;  %79 = vst.msk [vmem:[#allocation2 + $0x88] sm:$0xff] %vm61_vm0, %v60_v53  ;;  %v1546_v55 = vld [vmem:[%s9939_s0 + $0x103] sm:$0xff] }
 0x185   :  { %v355_v62 = vpop.permute.xlu0 %354  ;;  %400 = vst.msk [vmem:[#allocation2 + $0x58] sm:$0xff] %vm388_vm4, %v357_v59 }
 0x186   :  { %399 = vst.msk [vmem:[#allocation2 + $0x50] sm:$0xff] %vm388_vm4, %v355_v62  ;;  %1268 = vrot.lane.b32.xlu1 %v1221_v57, %s6039_s26  ;;  %v858_v57 = vld [vmem:[%s9939_s0 + $0x9e] sm:$0xff] }
 0x187   :  { %1266 = vrot.lane.b32.xlu0 %v1220_v58, %s6039_s26  ;;  %v857_v58 = vld [vmem:[%s9939_s0 + $0x96] sm:$0xff] }
 0x188   :  { %v1477_v63 = vpop.permute.xlu1 %1476 }
 0x189   :  { %v1475_v2 = vpop.permute.xlu0 %1474  ;;  %1523 = vst.msk [vmem:[#allocation2 + $0x38] sm:$0xff] %vm388_vm4, %v1477_v63 }
 0x18a   :  { %1522 = vst.msk [vmem:[#allocation2 + $0x30] sm:$0xff] %vm388_vm4, %v1475_v2  ;;  %255 = vrot.lane.b32.xlu1 %v7082_v50, %s6038_s25  ;;  %v7281_v50 = vld [vmem:[%s9939_s0 + $0x8a] sm:$0xff] }
 0x18b   :  { %253 = vrot.lane.b32.xlu0 %v7087_v47, %s6038_s25  ;;  %v7286_v47 = vld [vmem:[%s9939_s0 + $0x82] sm:$0xff] }
 0x18c   :  { %v466_v61 = vpop.permute.xlu1 %465 }
 0x18d   :  { %v464_v5 = vpop.permute.xlu0 %463  ;;  %509 = vst.msk [vmem:[#allocation2 + $0x58] sm:$0xff] %vm497_vm5, %v466_v61 }
 0x18e   :  { %508 = vst.msk [vmem:[#allocation2 + $0x50] sm:$0xff] %vm497_vm5, %v464_v5  ;;  %1376 = vrot.lane.b32.xlu1 %v7098_v40, %s6038_s25  ;;  %v1977_v5 = vld [vmem:[%s9939_s0 + $0x10e] sm:$0xff] }
 0x18f   :  { %1374 = vrot.lane.b32.xlu0 %v7103_v41, %s6038_s25  ;;  %v1092_v6 = vpop.f32.mrb[4].mxu0 }
 0x190   :  { %v5551_v7 = vpop.f32.mrb[5].mxu0  ;;  %v1093_v60 = vadd.f32 %v7176_v12, %v1092_v6  ;;  %v1585_v9 = vpop.permute.xlu1 %1584  ;;  %v1976_v6 = vld [vmem:[%s9939_s0 + $0x106] sm:$0xff] }
 0x191   :  { %v1583_v10 = vpop.permute.xlu0 %1582  ;;  %1631 = vst.msk [vmem:[#allocation2 + $0x38] sm:$0xff] %vm497_vm5, %v1585_v9  ;;  %v1095_v40 = vpop.f32.mrb[6].mxu0  ;;  %v97_v9 = vld [vmem:[%s9939_s0 + $0x89] sm:$0xff] }
 0x192   :  { %1630 = vst.msk [vmem:[#allocation2 + $0x30] sm:$0xff] %vm497_vm5, %v1583_v10  ;;  %v1096_v41 = vadd.f32 %v7176_v12, %v1095_v40  ;;  %v5552_v11 = vpop.f32.mrb[7].mxu0  ;;  %364 = vrot.lane.b32.xlu1 %v7281_v50, %s6041_s11  ;;  %v1157_v15 = vmax.f32 %v1093_v60, 0.0  ;;  %v96_v10 = vld [vmem:[%s9939_s0 + $0x81] sm:$0xff] }
 0x193   :  { %362 = vrot.lane.b32.xlu0 %v7286_v47, %s6041_s11  ;;  %v1223_v11 = vld [vmem:[%s9939_s0 + $0xf9] sm:$0xff] }
 0x194   :  { %v1158_v16 = vmax.f32 %v1096_v41, 0.0  ;;  %v575_v17 = vpop.permute.xlu1 %574 }
 0x195   :  { %v573_v18 = vpop.permute.xlu0 %572  ;;  %618 = vst.msk [vmem:[#allocation2 + $0x58] sm:$0xff] %vm606_vm6, %v575_v17 }
 0x196   :  { %617 = vst.msk [vmem:[#allocation2 + $0x50] sm:$0xff] %vm606_vm6, %v573_v18  ;;  %v7308_v19 = vpack.c.bf16 %v1158_v16, %v1157_v15  ;;  %1484 = vrot.lane.b32.xlu1 %v7299_v13, %s6041_s11  ;;  %v1222_v15 = vld [vmem:[%s9939_s0 + $0xf1] sm:$0xff] }
 0x197   :  { %1482 = vrot.lane.b32.xlu0 %v7304_v14, %s6041_s11 }
 0x198   :  { %v1693_v22 = vpop.permute.xlu1 %1692 }
 0x199   :  { %v1691_v23 = vpop.permute.xlu0 %1690  ;;  %1739 = vst.msk [vmem:[#allocation2 + $0x38] sm:$0xff] %vm606_vm6, %v1693_v22 }
 0x19a   :  { %1738 = vst.msk [vmem:[#allocation2 + $0x30] sm:$0xff] %vm606_vm6, %v1691_v23  ;;  %473 = vrot.lane.b32.xlu1 %v422_v20, %s6042_s16 }
 0x19b   :  { %471 = vrot.lane.b32.xlu0 %v421_v21, %s6042_s16 }
 0x19c   :  { %v684_v27 = vpop.permute.xlu1 %683 }
 0x19d   :  { %v682_v28 = vpop.permute.xlu0 %681  ;;  %727 = vst.msk [vmem:[#allocation2 + $0x58] sm:$0xff] %vm715_vm7, %v684_v27 }
 0x19e   :  { %726 = vst.msk [vmem:[#allocation2 + $0x50] sm:$0xff] %vm715_vm7, %v682_v28  ;;  %1592 = vrot.lane.b32.xlu1 %v1545_v24, %s6042_s16 }
 0x19f   :  { %1590 = vrot.lane.b32.xlu0 %v1544_v25, %s6042_s16 }
 0x1a0   :  { %v1801_v29 = vpop.permute.xlu1 %1800 }
 0x1a1   :  { %v1799_v30 = vpop.permute.xlu0 %1798  ;;  %1847 = vst.msk [vmem:[#allocation2 + $0x38] sm:$0xff] %vm715_vm7, %v1801_v29 }
 0x1a2   :  { %1846 = vst.msk [vmem:[#allocation2 + $0x30] sm:$0xff] %vm715_vm7, %v1799_v30  ;;  %582 = vrot.lane.b32.xlu1 %v7148_v8, %s6043_s21  ;;  %v7354_v8 = vld [vmem:[%s9939_s0 + $0x94] sm:$0xff] }
 0x1a3   :  { %580 = vrot.lane.b32.xlu0 %v7153_v3, %s6043_s21  ;;  %v315_v30 = vld [vmem:[%s9939_s0 + $0x9a] sm:$0xff] }
 0x1a4   :  { %v793_v31 = vpop.permute.xlu1 %792 }
 0x1a5   :  { %v791_v32 = vpop.permute.xlu0 %790  ;;  %836 = vst.msk [vmem:[#allocation2 + $0x58] sm:$0xff] %vm824_vm8, %v793_v31  ;;  %v314_v31 = vld [vmem:[%s9939_s0 + $0x92] sm:$0xff] }
 0x1a6   :  { %835 = vst.msk [vmem:[#allocation2 + $0x50] sm:$0xff] %vm824_vm8, %v791_v32  ;;  %1700 = vrot.lane.b32.xlu1 %v7164_v0, %s6043_s21  ;;  %v7365_v0 = vld [vmem:[%s9939_s0 + $0x10c] sm:$0xff] }
 0x1a7   :  { %1698 = vrot.lane.b32.xlu0 %v7169_v1, %s6043_s21  ;;  %v7370_v1 = vld [vmem:[%s9939_s0 + $0x104] sm:$0xff] }
 0x1a8   :  { %v1909_v3 = vpop.permute.xlu1 %1908 }
 0x1a9   :  { %v1907_v33 = vpop.permute.xlu0 %1906  ;;  %1955 = vst.msk [vmem:[#allocation2 + $0x38] sm:$0xff] %vm824_vm8, %v1909_v3 }
 0x1aa   :  { %1954 = vst.msk [vmem:[#allocation2 + $0x30] sm:$0xff] %vm824_vm8, %v1907_v33  ;;  %691 = vrot.lane.b32.xlu1 %v7349_v4, %s6044_s8 }
 0x1ab   :  { %689 = vrot.lane.b32.xlu0 %v7354_v8, %s6044_s8 }
 0x1ac   :  { %v902_v34 = vpop.permute.xlu1 %901 }
 0x1ad   :  { %v900_v35 = vpop.permute.xlu0 %899  ;;  %945 = vst.msk [vmem:[#allocation2 + $0x58] sm:$0xff] %vm933_vm9, %v902_v34 }
 0x1ae   :  { %944 = vst.msk [vmem:[#allocation2 + $0x50] sm:$0xff] %vm933_vm9, %v900_v35  ;;  %1808 = vrot.lane.b32.xlu1 %v7365_v0, %s6044_s8 }
 0x1af   :  { %1806 = vrot.lane.b32.xlu0 %v7370_v1, %s6044_s8 }
 0x1b0   :  { %v2017_v43 = vpop.permute.xlu1 %2016 }
 0x1b1   :  { %v2015_v37 = vpop.permute.xlu0 %2014  ;;  %2063 = vst.msk [vmem:[#allocation2 + $0x38] sm:$0xff] %vm933_vm9, %v2017_v43  ;;  %v7489_v43 = vld [vmem:[%s9939_s0 + $0x10a] sm:$0xff] }
 0x1b2   :  { %2062 = vst.msk [vmem:[#allocation2 + $0x30] sm:$0xff] %vm933_vm9, %v2015_v37  ;;  %800 = vrot.lane.b32.xlu1 %v749_v39, %s6045_s19  ;;  %v7494_v37 = vld [vmem:[%s9939_s0 + $0x102] sm:$0xff] }
 0x1b3   :  { %798 = vrot.lane.b32.xlu0 %v748_v42, %s6045_s19 }
 0x1b4   :  { %v143_v49 = vpop.permute.xlu1 %142  ;;  %v963_v52 = vld [vmem:[#allocation2 + $0x58] sm:$0xff] }
 0x1b5   :  { %v141_v44 = vpop.permute.xlu0 %140  ;;  %v962_v51 = vld [vmem:[#allocation2 + $0x50] sm:$0xff]  ;;  %184 = vst.msk [vmem:[#allocation2 + $0x68] sm:$0xff] %vm170_vm2, %v143_v49 }
 0x1b6   :  { %183 = vst.msk [vmem:[#allocation2 + $0x60] sm:$0xff] %vm170_vm2, %v141_v44  ;;  %v975_v54 = vpack.c.bf16 %v963_v52, %v962_v51  ;;  %1916 = vrot.lane.b32.xlu1 %v1869_v36, %s6045_s19  ;;  %v424_v44 = vld [vmem:[%s9939_s0 + $0x9b] sm:$0xff]  ;;  %v423_v51 = vld [vmem:[%s9939_s0 + $0x93] sm:$0xff] }
 0x1b7   :  { %1203 = vst.msk [vmem:[#allocation2 + $0x58] sm:$0xff] %vm61_vm0, %v1185_v45  ;;  %1202 = vst.msk [vmem:[#allocation2 + $0x50] sm:$0xff] %vm61_vm0, %v1184_v46  ;;  %1914 = vrot.lane.b32.xlu0 %v1868_v48, %s6045_s19 }
 0x1b8   :  { %5566 = vmatmul.mubr.bf16.gmra.mrb[20].mxu0 %v975_v54  ;;  %v1265_v59 = vpop.permute.xlu1 %1264  ;;  %v2081_v2 = vld [vmem:[#allocation2 + $0x38] sm:$0xff]  ;;  %v1547_v54 = vld [vmem:[%s9939_s0 + $0x10b] sm:$0xff] }
 0x1b9   :  { %v1263_v62 = vpop.permute.xlu0 %1262  ;;  %v2080_v63 = vld [vmem:[#allocation2 + $0x30] sm:$0xff]  ;;  %5569 = vmatprep.mubr.msk.bf16.mxu0 %vm6046_vm1, %v6839_v26  ;;  %1309 = vst.msk [vmem:[#allocation2 + $0x48] sm:$0xff] %vm170_vm2, %v1265_v59 }
 0x1ba   :  { %1308 = vst.msk [vmem:[#allocation2 + $0x40] sm:$0xff] %vm170_vm2, %v1263_v62  ;;  %v2095_v61 = vpack.c.bf16 %v2081_v2, %v2080_v63  ;;  %909 = vrot.lane.b32.xlu1 %v858_v57, %s6047_s29 }
 0x1bb   :  { %907 = vrot.lane.b32.xlu0 %v857_v58, %s6047_s29 }
 0x1bc   :  { %5610 = vmatmul.mubr.bf16.gmra.mrb[12].mxu1 %v2095_v61  ;;  %v252_v7 = vpop.permute.xlu1 %251  ;;  %v642_v61 = vld [vmem:[%s9939_s0 + $0xac] sm:$0xff] }
 0x1bd   :  { %v250_v60 = vpop.permute.xlu0 %249  ;;  %5613 = vmatprep.mubr.msk.bf16.mxu1 %vm6046_vm1, %v6839_v26  ;;  %293 = vst.msk [vmem:[#allocation2 + $0x68] sm:$0xff] %vm279_vm3, %v252_v7 }
 0x1be   :  { %292 = vst.msk [vmem:[#allocation2 + $0x60] sm:$0xff] %vm279_vm3, %v250_v60  ;;  %2024 = vrot.lane.b32.xlu1 %v1977_v5, %s6047_s29  ;;  %v751_v60 = vld [vmem:[%s9939_s0 + $0xad] sm:$0xff] }
 0x1bf   :  { %2022 = vrot.lane.b32.xlu0 %v1976_v6, %s6047_s29 }
 0x1c0   :  { %v1373_v40 = vpop.permute.xlu1 %1372 }
 0x1c1   :  { %v1371_v41 = vpop.permute.xlu0 %1370  ;;  %1417 = vst.msk [vmem:[#allocation2 + $0x48] sm:$0xff] %vm279_vm3, %v1373_v40 }
 0x1c2   :  { %1416 = vst.msk [vmem:[#allocation2 + $0x40] sm:$0xff] %vm279_vm3, %v1371_v41  ;;  %150 = vrot.lane.b32.xlu1 %v97_v9, %s6039_s26  ;;  %v750_v9 = vld [vmem:[%s9939_s0 + $0xa5] sm:$0xff]  ;;  %v1187_v41 = vld [vmem:[%s9939_s0 + $0xf8] sm:$0xff] }
 0x1c3   :  { %148 = vrot.lane.b32.xlu0 %v96_v10, %s6039_s26 }
 0x1c4   :  { %v361_v16 = vpop.permute.xlu1 %360 }
 0x1c5   :  { %v359_v17 = vpop.permute.xlu0 %358  ;;  %402 = vst.msk [vmem:[#allocation2 + $0x68] sm:$0xff] %vm388_vm4, %v361_v16  ;;  %v1870_v16 = vld [vmem:[%s9939_s0 + $0x115] sm:$0xff] }
 0x1c6   :  { %401 = vst.msk [vmem:[#allocation2 + $0x60] sm:$0xff] %vm388_vm4, %v359_v17  ;;  %1272 = vrot.lane.b32.xlu1 %v1223_v11, %s6039_s26  ;;  %v1186_v11 = vld [vmem:[%s9939_s0 + $0xf0] sm:$0xff] }
 0x1c7   :  { %1270 = vrot.lane.b32.xlu0 %v1222_v15, %s6039_s26  ;;  %v1871_v15 = vld [vmem:[%s9939_s0 + $0x11d] sm:$0xff] }
 0x1c8   :  { %v1481_v18 = vpop.permute.xlu1 %1480 }
 0x1c9   :  { %v1479_v20 = vpop.permute.xlu0 %1478  ;;  %1525 = vst.msk [vmem:[#allocation2 + $0x48] sm:$0xff] %vm388_vm4, %v1481_v18 }
 0x1ca   :  { %1524 = vst.msk [vmem:[#allocation2 + $0x40] sm:$0xff] %vm388_vm4, %v1479_v20  ;;  %259 = vrot.lane.b32.xlu1 %v7281_v50, %s6038_s25 }
 0x1cb   :  { %257 = vrot.lane.b32.xlu0 %v7286_v47, %s6038_s25  ;;  %v1100_v21 = vpop.f32.mrb[8].mxu0 }
 0x1cc   :  { %v5555_v22 = vpop.f32.mrb[9].mxu0  ;;  %v1101_v23 = vadd.f32 %v7176_v12, %v1100_v21  ;;  %v470_v24 = vpop.permute.xlu1 %469 }
 0x1cd   :  { %v468_v25 = vpop.permute.xlu0 %467  ;;  %511 = vst.msk [vmem:[#allocation2 + $0x68] sm:$0xff] %vm497_vm5, %v470_v24  ;;  %v1103_v27 = vpop.f32.mrb[10].mxu0  ;;  %v859_v24 = vld [vmem:[%s9939_s0 + $0xa6] sm:$0xff] }
 0x1ce   :  { %510 = vst.msk [vmem:[#allocation2 + $0x60] sm:$0xff] %vm497_vm5, %v468_v25  ;;  %v1104_v28 = vadd.f32 %v7176_v12, %v1103_v27  ;;  %v5556_v29 = vpop.f32.mrb[11].mxu0  ;;  %1380 = vrot.lane.b32.xlu1 %v7299_v13, %s6038_s25  ;;  %v1159_v32 = vmax.f32 %v1101_v23, 0.0  ;;  %v860_v23 = vld [vmem:[%s9939_s0 + $0xae] sm:$0xff] }
 0x1cf   :  { %1378 = vrot.lane.b32.xlu0 %v7304_v14, %s6038_s25  ;;  %v2206_v50 = vpop.f32.mrb[0].mxu1 }
 0x1d0   :  { %v5599_v47 = vpop.f32.mrb[1].mxu1  ;;  %v1160_v3 = vmax.f32 %v1104_v28, 0.0  ;;  %v2207_v33 = vadd.f32 %v7176_v12, %v2206_v50  ;;  %v1589_v34 = vpop.permute.xlu1 %1588 }
 0x1d1   :  { %v1587_v35 = vpop.permute.xlu0 %1586  ;;  %1633 = vst.msk [vmem:[#allocation2 + $0x48] sm:$0xff] %vm497_vm5, %v1589_v34  ;;  %v2209_v13 = vpop.f32.mrb[2].mxu1  ;;  %v1979_v47 = vld [vmem:[%s9939_s0 + $0x11e] sm:$0xff] }
 0x1d2   :  { %1632 = vst.msk [vmem:[#allocation2 + $0x40] sm:$0xff] %vm497_vm5, %v1587_v35  ;;  %v7481_v14 = vpack.c.bf16 %v1160_v3, %v1159_v32  ;;  %v2210_v39 = vadd.f32 %v7176_v12, %v2209_v13  ;;  %v5600_v42 = vpop.f32.mrb[3].mxu1  ;;  %368 = vrot.lane.b32.xlu1 %v315_v30, %s6041_s11  ;;  %v2277_v45 = vmax.f32 %v2207_v33, 0.0  ;;  %v1978_v30 = vld [vmem:[%s9939_s0 + $0x116] sm:$0xff]  ;;  %v1225_v3 = vld [vmem:[%s9939_s0 + $0x109] sm:$0xff]  ;;  %v1224_v33 = vld [vmem:[%s9939_s0 + $0x101] sm:$0xff] }
 0x1d3   :  { %366 = vrot.lane.b32.xlu0 %v314_v31, %s6041_s11  ;;  %v7632_v42 = vld [vmem:[%s9939_s0 + $0x11a] sm:$0xff] }
 0x1d4   :  { %v2278_v46 = vmax.f32 %v2210_v39, 0.0  ;;  %v579_v36 = vpop.permute.xlu1 %578 }
 0x1d5   :  { %v577_v48 = vpop.permute.xlu0 %576  ;;  %620 = vst.msk [vmem:[#allocation2 + $0x68] sm:$0xff] %vm606_vm6, %v579_v36 }
 0x1d6   :  { %619 = vst.msk [vmem:[#allocation2 + $0x60] sm:$0xff] %vm606_vm6, %v577_v48  ;;  %v5808_v49 = vpack.c.bf16 %v2278_v46, %v2277_v45  ;;  %1488 = vrot.lane.b32.xlu1 %v7489_v43, %s6041_s11  ;;  %v7637_v45 = vld [vmem:[%s9939_s0 + $0x112] sm:$0xff]  ;;  %v1549_v48 = vld [vmem:[%s9939_s0 + $0x11b] sm:$0xff] }
 0x1d7   :  { %1486 = vrot.lane.b32.xlu0 %v7494_v37, %s6041_s11 }
 0x1d8   :  { %5809 = vmatpush1.bf16.msra.mxu0 %v5808_v49  ;;  %v1697_v52 = vpop.permute.xlu1 %1696  ;;  %v1548_v49 = vld [vmem:[%s9939_s0 + $0x113] sm:$0xff] }
 0x1d9   :  { %v1695_v53 = vpop.permute.xlu0 %1694  ;;  %1741 = vst.msk [vmem:[#allocation2 + $0x48] sm:$0xff] %vm606_vm6, %v1697_v52  ;;  %5810 = vmatprep.subr.bf16.mxu0 %v6048_v56 }
 0x1da   :  { %1740 = vst.msk [vmem:[#allocation2 + $0x40] sm:$0xff] %vm606_vm6, %v1695_v53  ;;  %477 = vrot.lane.b32.xlu1 %v424_v44, %s6042_s16 }
 0x1db   :  { %475 = vrot.lane.b32.xlu0 %v423_v51, %s6042_s16 }
 0x1dc   :  { %v688_v57 = vpop.permute.xlu1 %687 }
 0x1dd   :  { %v686_v58 = vpop.permute.xlu0 %685  ;;  %729 = vst.msk [vmem:[#allocation2 + $0x68] sm:$0xff] %vm715_vm7, %v688_v57 }
 0x1de   :  { %728 = vst.msk [vmem:[#allocation2 + $0x60] sm:$0xff] %vm715_vm7, %v686_v58  ;;  %1596 = vrot.lane.b32.xlu1 %v1547_v54, %s6042_s16 }
 0x1df   :  { %1594 = vrot.lane.b32.xlu0 %v1546_v55, %s6042_s16 }
 0x1e0   :  { %v1805_v59 = vpop.permute.xlu1 %1804 }
 0x1e1   :  { %v1803_v62 = vpop.permute.xlu0 %1802  ;;  %1849 = vst.msk [vmem:[#allocation2 + $0x48] sm:$0xff] %vm715_vm7, %v1805_v59 }
 0x1e2   :  { %1848 = vst.msk [vmem:[#allocation2 + $0x40] sm:$0xff] %vm715_vm7, %v1803_v62  ;;  %586 = vrot.lane.b32.xlu1 %v7349_v4, %s6043_s21  ;;  %v641_v4 = vld [vmem:[%s9939_s0 + $0xa4] sm:$0xff] }
 0x1e3   :  { %584 = vrot.lane.b32.xlu0 %v7354_v8, %s6043_s21 }
 0x1e4   :  { %v797_v63 = vpop.permute.xlu1 %796 }
 0x1e5   :  { %v795_v2 = vpop.permute.xlu0 %794  ;;  %838 = vst.msk [vmem:[#allocation2 + $0x68] sm:$0xff] %vm824_vm8, %v797_v63 }
 0x1e6   :  { %837 = vst.msk [vmem:[#allocation2 + $0x60] sm:$0xff] %vm824_vm8, %v795_v2  ;;  %1704 = vrot.lane.b32.xlu1 %v7365_v0, %s6043_s21  ;;  %v7548_v0 = vld [vmem:[%s9939_s0 + $0x11c] sm:$0xff] }
 0x1e7   :  { %1702 = vrot.lane.b32.xlu0 %v7370_v1, %s6043_s21  ;;  %v7553_v1 = vld [vmem:[%s9939_s0 + $0x114] sm:$0xff] }
 0x1e8   :  { %v1913_v8 = vpop.permute.xlu1 %1912 }
 0x1e9   :  { %v1911_v5 = vpop.permute.xlu0 %1910  ;;  %1957 = vst.msk [vmem:[#allocation2 + $0x48] sm:$0xff] %vm824_vm8, %v1913_v8 }
 0x1ea   :  { %1956 = vst.msk [vmem:[#allocation2 + $0x40] sm:$0xff] %vm824_vm8, %v1911_v5  ;;  %695 = vrot.lane.b32.xlu1 %v642_v61, %s6044_s8 }
 0x1eb   :  { %693 = vrot.lane.b32.xlu0 %v641_v4, %s6044_s8 }
 0x1ec   :  { %v906_v6 = vpop.permute.xlu1 %905 }
 0x1ed   :  { %v904_v7 = vpop.permute.xlu0 %903  ;;  %947 = vst.msk [vmem:[#allocation2 + $0x68] sm:$0xff] %vm933_vm9, %v906_v6 }
 0x1ee   :  { %946 = vst.msk [vmem:[#allocation2 + $0x60] sm:$0xff] %vm933_vm9, %v904_v7  ;;  %1812 = vrot.lane.b32.xlu1 %v7548_v0, %s6044_s8  ;;  %v7670_v7 = vld [vmem:[%s9939_s0 + $0x12c] sm:$0xff] }
 0x1ef   :  { %1810 = vrot.lane.b32.xlu0 %v7553_v1, %s6044_s8 }
 0x1f0   :  { %v2021_v10 = vpop.permute.xlu1 %2020 }
 0x1f1   :  { %v2019_v40 = vpop.permute.xlu0 %2018  ;;  %2065 = vst.msk [vmem:[#allocation2 + $0x48] sm:$0xff] %vm933_vm9, %v2021_v10 }
 0x1f2   :  { %2064 = vst.msk [vmem:[#allocation2 + $0x40] sm:$0xff] %vm933_vm9, %v2019_v40  ;;  %804 = vrot.lane.b32.xlu1 %v751_v60, %s6045_s19  ;;  %v7675_v60 = vld [vmem:[%s9939_s0 + $0x124] sm:$0xff] }
 0x1f3   :  { %802 = vrot.lane.b32.xlu0 %v750_v9, %s6045_s19 }
 0x1f4   :  { %v147_v17 = vpop.permute.xlu1 %146  ;;  %v965_v21 = vld [vmem:[#allocation2 + $0x68] sm:$0xff] }
 0x1f5   :  { %v145_v18 = vpop.permute.xlu0 %144  ;;  %v964_v20 = vld [vmem:[#allocation2 + $0x60] sm:$0xff]  ;;  %186 = vst.msk [vmem:[#allocation2 + $0x78] sm:$0xff] %vm170_vm2, %v147_v17 }
 0x1f6   :  { %185 = vst.msk [vmem:[#allocation2 + $0x70] sm:$0xff] %vm170_vm2, %v145_v18  ;;  %v976_v22 = vpack.c.bf16 %v965_v21, %v964_v20  ;;  %1920 = vrot.lane.b32.xlu1 %v1871_v15, %s6045_s19  ;;  %v1980_v17 = vld [vmem:[%s9939_s0 + $0x126] sm:$0xff]  ;;  %v1227_v21 = vld [vmem:[%s9939_s0 + $0x119] sm:$0xff] }
 0x1f7   :  { %1205 = vst.msk [vmem:[#allocation2 + $0x68] sm:$0xff] %vm61_vm0, %v1187_v41  ;;  %1204 = vst.msk [vmem:[#allocation2 + $0x60] sm:$0xff] %vm61_vm0, %v1186_v11  ;;  %1918 = vrot.lane.b32.xlu0 %v1870_v16, %s6045_s19  ;;  %v1872_v41 = vld [vmem:[%s9939_s0 + $0x125] sm:$0xff]  ;;  %v1981_v16 = vld [vmem:[%s9939_s0 + $0x12e] sm:$0xff] }
 0x1f8   :  { %5570 = vmatmul.mubr.bf16.gmra.mrb[24].mxu0 %v976_v22  ;;  %v1269_v25 = vpop.permute.xlu1 %1268  ;;  %v2083_v29 = vld [vmem:[#allocation2 + $0x48] sm:$0xff]  ;;  %v1226_v22 = vld [vmem:[%s9939_s0 + $0x111] sm:$0xff] }
 0x1f9   :  { %v1267_v27 = vpop.permute.xlu0 %1266  ;;  %v2082_v28 = vld [vmem:[#allocation2 + $0x40] sm:$0xff]  ;;  %5573 = vmatprep.mubr.msk.bf16.mxu0 %vm6046_vm1, %v6839_v26  ;;  %1311 = vst.msk [vmem:[#allocation2 + $0x58] sm:$0xff] %vm170_vm2, %v1269_v25 }
 0x1fa   :  { %1310 = vst.msk [vmem:[#allocation2 + $0x50] sm:$0xff] %vm170_vm2, %v1267_v27  ;;  %v2096_v50 = vpack.c.bf16 %v2083_v29, %v2082_v28  ;;  %913 = vrot.lane.b32.xlu1 %v860_v23, %s6047_s29  ;;  %v1443_v28 = vld [vmem:[%s9939_s0 + $0x12a] sm:$0xff]  ;;  %v1442_v29 = vld [vmem:[%s9939_s0 + $0x122] sm:$0xff] }
 0x1fb   :  { %911 = vrot.lane.b32.xlu0 %v859_v24, %s6047_s29 }
 0x1fc   :  { %5614 = vmatmul.mubr.bf16.gmra.mrb[16].mxu1 %v2096_v50  ;;  %v256_v31 = vpop.permute.xlu1 %255 }
 0x1fd   :  { %v254_v32 = vpop.permute.xlu0 %253  ;;  %5617 = vmatprep.mubr.msk.bf16.mxu1 %vm6046_vm1, %v6839_v26  ;;  %295 = vst.msk [vmem:[#allocation2 + $0x78] sm:$0xff] %vm279_vm3, %v256_v31  ;;  %v1550_v31 = vld [vmem:[%s9939_s0 + $0x123] sm:$0xff] }
 0x1fe   :  { %294 = vst.msk [vmem:[#allocation2 + $0x70] sm:$0xff] %vm279_vm3, %v254_v32  ;;  %2028 = vrot.lane.b32.xlu1 %v1979_v47, %s6047_s29 }
 0x1ff   :  { %2026 = vrot.lane.b32.xlu0 %v1978_v30, %s6047_s29  ;;  %v1551_v30 = vld [vmem:[%s9939_s0 + $0x12b] sm:$0xff] }
 0x200   :  { %v1377_v34 = vpop.permute.xlu1 %1376 }
 0x201   :  { %v1375_v35 = vpop.permute.xlu0 %1374  ;;  %1419 = vst.msk [vmem:[#allocation2 + $0x58] sm:$0xff] %vm279_vm3, %v1377_v34 }
 0x202   :  { %1418 = vst.msk [vmem:[#allocation2 + $0x50] sm:$0xff] %vm279_vm3, %v1375_v35  ;;  %1276 = vrot.lane.b32.xlu1 %v1225_v3, %s6039_s26  ;;  %v1189_v35 = vld [vmem:[%s9939_s0 + $0x108] sm:$0xff] }
 0x203   :  { %1274 = vrot.lane.b32.xlu0 %v1224_v33, %s6039_s26 }
 0x204   :  { %v365_v13 = vpop.permute.xlu1 %364 }
 0x205   :  { %v363_v39 = vpop.permute.xlu0 %362  ;;  %404 = vst.msk [vmem:[#allocation2 + $0x78] sm:$0xff] %vm388_vm4, %v365_v13  ;;  %v1188_v13 = vld [vmem:[%s9939_s0 + $0x100] sm:$0xff] }
 0x206   :  { %403 = vst.msk [vmem:[#allocation2 + $0x70] sm:$0xff] %vm388_vm4, %v363_v39  ;;  %1384 = vrot.lane.b32.xlu1 %v7489_v43, %s6038_s25  ;;  %v5083_v39 = vld [vmem:[%s9939_s0 + $0x150] sm:$0xff] }
 0x207   :  { %1382 = vrot.lane.b32.xlu0 %v7494_v37, %s6038_s25  ;;  %2570 = vst.msk [vmem:[#allocation2 + $0x8] sm:$0xff] %vm61_vm0, %v5083_v39 }
 0x208   :  { %v1485_v46 = vpop.permute.xlu1 %1484 }
 0x209   :  { %v1483_v36 = vpop.permute.xlu0 %1482  ;;  %1527 = vst.msk [vmem:[#allocation2 + $0x58] sm:$0xff] %vm388_vm4, %v1485_v46 }
 0x20a   :  { %1526 = vst.msk [vmem:[#allocation2 + $0x50] sm:$0xff] %vm388_vm4, %v1483_v36  ;;  %1492 = vrot.lane.b32.xlu1 %v7632_v42, %s6041_s11 }
 0x20b   :  { %1490 = vrot.lane.b32.xlu0 %v7637_v45, %s6041_s11  ;;  %v1108_v43 = vpop.f32.mrb[12].mxu0 }
 0x20c   :  { %v5559_v37 = vpop.f32.mrb[13].mxu0  ;;  %v1109_v44 = vadd.f32 %v7176_v12, %v1108_v43  ;;  %v474_v51 = vpop.permute.xlu1 %473 }
 0x20d   :  { %v472_v52 = vpop.permute.xlu0 %471  ;;  %513 = vst.msk [vmem:[#allocation2 + $0x78] sm:$0xff] %vm497_vm5, %v474_v51  ;;  %v1111_v53 = vpop.f32.mrb[14].mxu0  ;;  %v1874_v51 = vld [vmem:[%s9939_s0 + $0x135] sm:$0xff] }
 0x20e   :  { %512 = vst.msk [vmem:[#allocation2 + $0x70] sm:$0xff] %vm497_vm5, %v472_v52  ;;  %v1112_v54 = vadd.f32 %v7176_v12, %v1111_v53  ;;  %v5560_v55 = vpop.f32.mrb[15].mxu0  ;;  %1600 = vrot.lane.b32.xlu1 %v1549_v48, %s6042_s16  ;;  %v1161_v59 = vmax.f32 %v1109_v44, 0.0  ;;  %v5082_v48 = vld [vmem:[%s9939_s0 + $0x148] sm:$0xff]  ;;  %v1875_v44 = vld [vmem:[%s9939_s0 + $0x13d] sm:$0xff] }
 0x20f   :  { %1598 = vrot.lane.b32.xlu0 %v1548_v49, %s6042_s16  ;;  %v2214_v57 = vpop.f32.mrb[4].mxu1  ;;  %2569 = vst.msk [vmem:[#allocation2] sm:$0xff] %vm61_vm0, %v5082_v48  ;;  %v5209_v48 = vld [vmem:[%s9939_s0 + $0x175] sm:$0xff] }
 0x210   :  { %v5603_v58 = vpop.f32.mrb[5].mxu1  ;;  %v1162_v62 = vmax.f32 %v1112_v54, 0.0  ;;  %v2215_v63 = vadd.f32 %v7176_v12, %v2214_v57  ;;  %v1593_v2 = vpop.permute.xlu1 %1592 }
 0x211   :  { %v1591_v61 = vpop.permute.xlu0 %1590  ;;  %1635 = vst.msk [vmem:[#allocation2 + $0x58] sm:$0xff] %vm497_vm5, %v1593_v2  ;;  %v2217_v4 = vpop.f32.mrb[6].mxu1  ;;  %v1983_v58 = vld [vmem:[%s9939_s0 + $0x13e] sm:$0xff]  ;;  %v5101_v2 = vld [vmem:[%s9939_s0 + $0x151] sm:$0xff] }
 0x212   :  { %1634 = vst.msk [vmem:[#allocation2 + $0x50] sm:$0xff] %vm497_vm5, %v1591_v61  ;;  %v7660_v8 = vpack.c.bf16 %v1162_v62, %v1161_v59  ;;  %v2218_v5 = vadd.f32 %v7176_v12, %v2217_v4  ;;  %v5604_v6 = vpop.f32.mrb[7].mxu1  ;;  %1708 = vrot.lane.b32.xlu1 %v7548_v0, %s6043_s21  ;;  %v2279_v9 = vmax.f32 %v2215_v63, 0.0  ;;  %v1982_v59 = vld [vmem:[%s9939_s0 + $0x136] sm:$0xff]  ;;  %v5100_v61 = vld [vmem:[%s9939_s0 + $0x149] sm:$0xff] }
 0x213   :  { %1706 = vrot.lane.b32.xlu0 %v7553_v1, %s6043_s21  ;;  %v1873_v1 = vld [vmem:[%s9939_s0 + $0x12d] sm:$0xff] }
 0x214   :  { %v2280_v10 = vmax.f32 %v2218_v5, 0.0  ;;  %v583_v12 = vpop.permute.xlu1 %582  ;;  %v5119_v6 = vld [vmem:[%s9939_s0 + $0x152] sm:$0xff] }
 0x215   :  { %v581_v40 = vpop.permute.xlu0 %580  ;;  %622 = vst.msk [vmem:[#allocation2 + $0x78] sm:$0xff] %vm606_vm6, %v583_v12  ;;  %v7824_v12 = vld [vmem:[%s9939_s0 + $0x15a] sm:$0xff] }
 0x216   :  { %621 = vst.msk [vmem:[#allocation2 + $0x70] sm:$0xff] %vm606_vm6, %v581_v40  ;;  %v5811_v0 = vpack.c.bf16 %v2280_v10, %v2279_v9  ;;  %1816 = vrot.lane.b32.xlu1 %v7670_v7, %s6044_s8  ;;  %v7819_v10 = vld [vmem:[%s9939_s0 + $0x162] sm:$0xff] }
 0x217   :  { %1814 = vrot.lane.b32.xlu0 %v7675_v60, %s6044_s8 }
 0x218   :  { %5812 = vmatpush1.bf16.msra.mxu0 %v5811_v0  ;;  %v1701_v11 = vpop.permute.xlu1 %1700 }
 0x219   :  { %v1699_v15 = vpop.permute.xlu0 %1698  ;;  %1743 = vst.msk [vmem:[#allocation2 + $0x58] sm:$0xff] %vm606_vm6, %v1701_v11  ;;  %5813 = vmatprep.subr.bf16.mxu0 %v6048_v56  ;;  %v5155_v11 = vld [vmem:[%s9939_s0 + $0x163] sm:$0xff] }
 0x21a   :  { %1742 = vst.msk [vmem:[#allocation2 + $0x50] sm:$0xff] %vm606_vm6, %v1699_v15  ;;  %1924 = vrot.lane.b32.xlu1 %v1873_v1, %s6045_s19  ;;  %v5154_v15 = vld [vmem:[%s9939_s0 + $0x15b] sm:$0xff] }
 0x21b   :  { %1922 = vrot.lane.b32.xlu0 %v1872_v41, %s6045_s19 }
 0x21c   :  { %v692_v18 = vpop.permute.xlu1 %691 }
 0x21d   :  { %v690_v20 = vpop.permute.xlu0 %689  ;;  %731 = vst.msk [vmem:[#allocation2 + $0x78] sm:$0xff] %vm715_vm7, %v692_v18 }
 0x21e   :  { %730 = vst.msk [vmem:[#allocation2 + $0x70] sm:$0xff] %vm715_vm7, %v690_v20  ;;  %2032 = vrot.lane.b32.xlu1 %v1981_v16, %s6047_s29  ;;  %v7841_v16 = vld [vmem:[%s9941_s2] ss:$0 sm:$0xff] }
 0x21f   :  { %2030 = vrot.lane.b32.xlu0 %v1980_v17, %s6047_s29 }
 0x220   :  { %v1809_v23 = vpop.permute.xlu1 %1808 }
 0x221   :  { %v1807_v24 = vpop.permute.xlu0 %1806  ;;  %1851 = vst.msk [vmem:[#allocation2 + $0x58] sm:$0xff] %vm715_vm7, %v1809_v23 }
 0x222   :  { %1850 = vst.msk [vmem:[#allocation2 + $0x50] sm:$0xff] %vm715_vm7, %v1807_v24  ;;  %1280 = vrot.lane.b32.xlu1 %v1227_v21, %s6039_s26 }
 0x223   :  { %1278 = vrot.lane.b32.xlu0 %v1226_v22, %s6039_s26 }
 0x224   :  { %v801_v25 = vpop.permute.xlu1 %800 }
 0x225   :  { %v799_v27 = vpop.permute.xlu0 %798  ;;  %840 = vst.msk [vmem:[#allocation2 + $0x78] sm:$0xff] %vm824_vm8, %v801_v25 }
 0x226   :  { %839 = vst.msk [vmem:[#allocation2 + $0x70] sm:$0xff] %vm824_vm8, %v799_v27  ;;  %1388 = vrot.lane.b32.xlu1 %v7632_v42, %s6038_s25  ;;  %v1767_v42 = vld [vmem:[%s9939_s0 + $0x13c] sm:$0xff]  ;;  %v5173_v27 = vld [vmem:[%s9939_s0 + $0x164] sm:$0xff] }
 0x227   :  { %1386 = vrot.lane.b32.xlu0 %v7637_v45, %s6038_s25  ;;  %v1766_v45 = vld [vmem:[%s9939_s0 + $0x134] sm:$0xff] }
 0x228   :  { %v1917_v50 = vpop.permute.xlu1 %1916 }
 0x229   :  { %v1915_v47 = vpop.permute.xlu0 %1914  ;;  %1959 = vst.msk [vmem:[#allocation2 + $0x58] sm:$0xff] %vm824_vm8, %v1917_v50 }
 0x22a   :  { %1958 = vst.msk [vmem:[#allocation2 + $0x50] sm:$0xff] %vm824_vm8, %v1915_v47  ;;  %1496 = vrot.lane.b32.xlu1 %v1443_v28, %s6041_s11  ;;  %v5172_v28 = vld [vmem:[%s9939_s0 + $0x15c] sm:$0xff] }
 0x22b   :  { %1494 = vrot.lane.b32.xlu0 %v1442_v29, %s6041_s11 }
 0x22c   :  { %v910_v32 = vpop.permute.xlu1 %909 }
 0x22d   :  { %v908_v3 = vpop.permute.xlu0 %907  ;;  %949 = vst.msk [vmem:[#allocation2 + $0x78] sm:$0xff] %vm933_vm9, %v910_v32 }
 0x22e   :  { %948 = vst.msk [vmem:[#allocation2 + $0x70] sm:$0xff] %vm933_vm9, %v908_v3  ;;  %1604 = vrot.lane.b32.xlu1 %v1551_v30, %s6042_s16 }
 0x22f   :  { %1602 = vrot.lane.b32.xlu0 %v1550_v31, %s6042_s16 }
 0x230   :  { %v2025_v33 = vpop.permute.xlu1 %2024 }
 0x231   :  { %v2023_v34 = vpop.permute.xlu0 %2022  ;;  %2067 = vst.msk [vmem:[#allocation2 + $0x58] sm:$0xff] %vm933_vm9, %v2025_v33 }
 0x232   :  { %2066 = vst.msk [vmem:[#allocation2 + $0x50] sm:$0xff] %vm933_vm9, %v2023_v34  ;;  %1712 = vrot.lane.b32.xlu1 %v7670_v7, %s6043_s21  ;;  %v5118_v7 = vld [vmem:[%s9939_s0 + $0x14a] sm:$0xff] }
 0x233   :  { %1710 = vrot.lane.b32.xlu0 %v7675_v60, %s6043_s21 }
 0x234   :  { %v151_v46 = vpop.permute.xlu1 %150  ;;  %v967_v37 = vld [vmem:[#allocation2 + $0x78] sm:$0xff] }
 0x235   :  { %v149_v36 = vpop.permute.xlu0 %148  ;;  %v966_v43 = vld [vmem:[#allocation2 + $0x70] sm:$0xff]  ;;  %188 = vst.msk [vmem:[#allocation2 + $0x88] sm:$0xff] %vm170_vm2, %v151_v46 }
 0x236   :  { %187 = vst.msk [vmem:[#allocation2 + $0x80] sm:$0xff] %vm170_vm2, %v149_v36  ;;  %v977_v49 = vpack.c.bf16 %v967_v37, %v966_v43  ;;  %1820 = vrot.lane.b32.xlu1 %v1767_v42, %s6044_s8  ;;  %v5085_v36 = vld [vmem:[%s9939_s0 + $0x160] sm:$0xff]  ;;  %v5084_v43 = vld [vmem:[%s9939_s0 + $0x158] sm:$0xff] }
 0x237   :  { %1207 = vst.msk [vmem:[#allocation2 + $0x78] sm:$0xff] %vm61_vm0, %v1189_v35  ;;  %1206 = vst.msk [vmem:[#allocation2 + $0x70] sm:$0xff] %vm61_vm0, %v1188_v13  ;;  %1818 = vrot.lane.b32.xlu0 %v1766_v45, %s6044_s8  ;;  %v7866_v35 = vld [vmem:[%s9939_s0 + $0x174] sm:$0xff]  ;;  %v7871_v13 = vld [vmem:[%s9939_s0 + $0x16c] sm:$0xff] }
 0x238   :  { %5574 = vmatmul.mubr.bf16.gmra.mrb[28].mxu0 %v977_v49  ;;  %v1273_v52 = vpop.permute.xlu1 %1272  ;;  %v2085_v55 = vld [vmem:[#allocation2 + $0x58] sm:$0xff]  ;;  %2572 = vst.msk [vmem:[#allocation2 + $0x18] sm:$0xff] %vm61_vm0, %v5085_v36  ;;  %2571 = vst.msk [vmem:[#allocation2 + $0x10] sm:$0xff] %vm61_vm0, %v5084_v43  ;;  %v5208_v49 = vld [vmem:[%s9939_s0 + $0x16d] sm:$0xff] }
 0x239   :  { %v1271_v53 = vpop.permute.xlu0 %1270  ;;  %v2084_v54 = vld [vmem:[#allocation2 + $0x50] sm:$0xff]  ;;  %5577 = vmatprep.mubr.msk.bf16.mxu0 %vm6046_vm1, %v6839_v26  ;;  %1313 = vst.msk [vmem:[#allocation2 + $0x68] sm:$0xff] %vm170_vm2, %v1273_v52 }
 0x23a   :  { %1312 = vst.msk [vmem:[#allocation2 + $0x60] sm:$0xff] %vm170_vm2, %v1271_v53  ;;  %v2097_v57 = vpack.c.bf16 %v2085_v55, %v2084_v54  ;;  %1928 = vrot.lane.b32.xlu1 %v1875_v44, %s6045_s19  ;;  %v5227_v52 = vld [vmem:[%s9939_s0 + $0x176] sm:$0xff]  ;;  %v5226_v53 = vld [vmem:[%s9939_s0 + $0x16e] sm:$0xff] }
 0x23b   :  { %1926 = vrot.lane.b32.xlu0 %v1874_v51, %s6045_s19 }
 0x23c   :  { %5618 = vmatmul.mubr.bf16.gmra.mrb[20].mxu1 %v2097_v57  ;;  %v260_v62 = vpop.permute.xlu1 %259  ;;  %v5103_v57 = vld [vmem:[%s9939_s0 + $0x161] sm:$0xff] }
 0x23d   :  { %v258_v63 = vpop.permute.xlu0 %257  ;;  %5621 = vmatprep.mubr.msk.bf16.mxu1 %vm6046_vm1, %v6839_v26  ;;  %297 = vst.msk [vmem:[#allocation2 + $0x88] sm:$0xff] %vm279_vm3, %v260_v62 }
 0x23e   :  { %296 = vst.msk [vmem:[#allocation2 + $0x80] sm:$0xff] %vm279_vm3, %v258_v63  ;;  %2036 = vrot.lane.b32.xlu1 %v1983_v58, %s6047_s29  ;;  %v5102_v58 = vld [vmem:[%s9939_s0 + $0x159] sm:$0xff] }
 0x23f   :  { %2034 = vrot.lane.b32.xlu0 %v1982_v59, %s6047_s29 }
 0x240   :  { %v1381_v4 = vpop.permute.xlu1 %1380 }
 0x241   :  { %v1379_v5 = vpop.permute.xlu0 %1378  ;;  %1421 = vst.msk [vmem:[#allocation2 + $0x68] sm:$0xff] %vm279_vm3, %v1381_v4  ;;  %v7932_v4 = vld [vmem:[%s9939_s0 + $0x16a] sm:$0xff] }
 0x242   :  { %1420 = vst.msk [vmem:[#allocation2 + $0x60] sm:$0xff] %vm279_vm3, %v1379_v5  ;;  %2625 = vrot.lane.b32.xlu1 %v5101_v2, %s6039_s26 }
 0x243   :  { %2623 = vrot.lane.b32.xlu0 %v5100_v61, %s6039_s26  ;;  %v7927_v61 = vld [vmem:[%s9939_s0 + $0x172] sm:$0xff] }
 0x244   :  { %v369_v60 = vpop.permute.xlu1 %368 }
 0x245   :  { %v367_v9 = vpop.permute.xlu0 %366  ;;  %406 = vst.msk [vmem:[#allocation2 + $0x88] sm:$0xff] %vm388_vm4, %v369_v60  ;;  %v5156_v60 = vld [vmem:[%s9939_s0 + $0x16b] sm:$0xff] }
 0x246   :  { %405 = vst.msk [vmem:[#allocation2 + $0x80] sm:$0xff] %vm388_vm4, %v367_v9  ;;  %2733 = vrot.lane.b32.xlu1 %v5119_v6, %s6038_s25 }
 0x247   :  { %2731 = vrot.lane.b32.xlu0 %v5118_v7, %s6038_s25  ;;  %v5157_v7 = vld [vmem:[%s9939_s0 + $0x173] sm:$0xff] }
 0x248   :  { %v1489_v40 = vpop.permute.xlu1 %1488 }
 0x249   :  { %v1487_v0 = vpop.permute.xlu0 %1486  ;;  %1529 = vst.msk [vmem:[#allocation2 + $0x68] sm:$0xff] %vm388_vm4, %v1489_v40 }
 0x24a   :  { %1528 = vst.msk [vmem:[#allocation2 + $0x60] sm:$0xff] %vm388_vm4, %v1487_v0  ;;  %2841 = vrot.lane.b32.xlu1 %v7819_v10, %s6041_s11  ;;  %v1191_v0 = vld [vmem:[%s9939_s0 + $0x118] sm:$0xff] }
 0x24b   :  { %2839 = vrot.lane.b32.xlu0 %v7824_v12, %s6041_s11  ;;  %v1116_v1 = vpop.f32.mrb[16].mxu0 }
 0x24c   :  { %v5563_v41 = vpop.f32.mrb[17].mxu0  ;;  %v1117_v17 = vadd.f32 %v7841_v16, %v1116_v1  ;;  %v478_v18 = vpop.permute.xlu1 %477  ;;  %v1190_v1 = vld [vmem:[%s9939_s0 + $0x110] sm:$0xff] }
 0x24d   :  { %v476_v20 = vpop.permute.xlu0 %475  ;;  %515 = vst.msk [vmem:[#allocation2 + $0x88] sm:$0xff] %vm497_vm5, %v478_v18  ;;  %v1119_v21 = vpop.f32.mrb[18].mxu0  ;;  %v5087_v41 = vld [vmem:[%s9939_s0 + $0x170] sm:$0xff] }
 0x24e   :  { %514 = vst.msk [vmem:[#allocation2 + $0x80] sm:$0xff] %vm497_vm5, %v476_v20  ;;  %v1120_v22 = vadd.f32 %v7841_v16, %v1119_v21  ;;  %v5564_v23 = vpop.f32.mrb[19].mxu0  ;;  %2949 = vrot.lane.b32.xlu1 %v5155_v11, %s6042_s16  ;;  %v1163_v29 = vmax.f32 %v1117_v17, 0.0  ;;  %v7968_v11 = vld [vmem:[%s9939_s0 + $0x184] sm:$0xff] }
 0x24f   :  { %2947 = vrot.lane.b32.xlu0 %v5154_v15, %s6042_s16  ;;  %v2222_v24 = vpop.f32.mrb[8].mxu1  ;;  %v7973_v15 = vld [vmem:[%s9939_s0 + $0x17c] sm:$0xff]  ;;  %2574 = vst.msk [vmem:[#allocation2 + $0x28] sm:$0xff] %vm61_vm0, %v5087_v41 }
 0x250   :  { %v5607_v25 = vpop.f32.mrb[9].mxu1  ;;  %v1164_v50 = vmax.f32 %v1120_v22, 0.0  ;;  %v2223_v47 = vadd.f32 %v7841_v16, %v2222_v24  ;;  %v1597_v30 = vpop.permute.xlu1 %1596  ;;  %v5086_v22 = vld [vmem:[%s9939_s0 + $0x168] sm:$0xff] }
 0x251   :  { %v1595_v31 = vpop.permute.xlu0 %1594  ;;  %1637 = vst.msk [vmem:[#allocation2 + $0x68] sm:$0xff] %vm497_vm5, %v1597_v30  ;;  %v2225_v32 = vpop.f32.mrb[10].mxu1  ;;  %v5211_v24 = vld [vmem:[%s9939_s0 + $0x185] sm:$0xff]  ;;  %v5210_v25 = vld [vmem:[%s9939_s0 + $0x17d] sm:$0xff] }
 0x252   :  { %1636 = vst.msk [vmem:[#allocation2 + $0x60] sm:$0xff] %vm497_vm5, %v1595_v31  ;;  %v7858_v3 = vpack.c.bf16 %v1164_v50, %v1163_v29  ;;  %v2226_v33 = vadd.f32 %v7841_v16, %v2225_v32  ;;  %v5608_v34 = vpop.f32.mrb[11].mxu1  ;;  %3057 = vrot.lane.b32.xlu1 %v5173_v27, %s6043_s21  ;;  %v2281_v39 = vmax.f32 %v2223_v47, 0.0  ;;  %v5229_v30 = vld [vmem:[%s9939_s0 + $0x186] sm:$0xff]  ;;  %v5228_v31 = vld [vmem:[%s9939_s0 + $0x17e] sm:$0xff] }
 0x253   :  { %3055 = vrot.lane.b32.xlu0 %v5172_v28, %s6043_s21  ;;  %2573 = vst.msk [vmem:[#allocation2 + $0x20] sm:$0xff] %vm61_vm0, %v5086_v22  ;;  %v5105_v34 = vld [vmem:[%s9939_s0 + $0x171] sm:$0xff]  ;;  %v5158_v22 = vld [vmem:[%s9939_s0 + $0x17b] sm:$0xff] }
 0x254   :  { %v2282_v42 = vmax.f32 %v2226_v33, 0.0  ;;  %v587_v45 = vpop.permute.xlu1 %586 }
 0x255   :  { %v585_v46 = vpop.permute.xlu0 %584  ;;  %624 = vst.msk [vmem:[#allocation2 + $0x88] sm:$0xff] %vm606_vm6, %v587_v45  ;;  %v5271_v45 = vld [vmem:[%s9939_s0 + $0x1d9] sm:$0xff] }
 0x256   :  { %623 = vst.msk [vmem:[#allocation2 + $0x80] sm:$0xff] %vm606_vm6, %v585_v46  ;;  %v5814_v37 = vpack.c.bf16 %v2282_v42, %v2281_v39  ;;  %3165 = vrot.lane.b32.xlu1 %v7866_v35, %s6044_s8  ;;  %v5272_v42 = vld [vmem:[%s9939_s0 + $0x1e1] sm:$0xff] }
 0x257   :  { %3163 = vrot.lane.b32.xlu0 %v7871_v13, %s6044_s8 }
 0x258   :  { %5815 = vmatpush1.bf16.msra.mxu0 %v5814_v37  ;;  %v1705_v44 = vpop.permute.xlu1 %1704 }
 0x259   :  { %v1703_v51 = vpop.permute.xlu0 %1702  ;;  %1745 = vst.msk [vmem:[#allocation2 + $0x68] sm:$0xff] %vm606_vm6, %v1705_v44  ;;  %5816 = vmatprep.subr.bf16.mxu0 %v6048_v56  ;;  %v5290_v44 = vld [vmem:[%s9939_s0 + $0x1e2] sm:$0xff] }
 0x25a   :  { %1744 = vst.msk [vmem:[#allocation2 + $0x60] sm:$0xff] %vm606_vm6, %v1703_v51  ;;  %3273 = vrot.lane.b32.xlu1 %v5209_v48, %s6045_s19  ;;  %v5289_v51 = vld [vmem:[%s9939_s0 + $0x1da] sm:$0xff] }
 0x25b   :  { %3271 = vrot.lane.b32.xlu0 %v5208_v49, %s6045_s19 }
 0x25c   :  { %v696_v54 = vpop.permute.xlu1 %695 }
 0x25d   :  { %v694_v55 = vpop.permute.xlu0 %693  ;;  %733 = vst.msk [vmem:[#allocation2 + $0x88] sm:$0xff] %vm715_vm7, %v696_v54 }
 0x25e   :  { %732 = vst.msk [vmem:[#allocation2 + $0x80] sm:$0xff] %vm715_vm7, %v694_v55  ;;  %3381 = vrot.lane.b32.xlu1 %v5227_v52, %s6047_s29 }
 0x25f   :  { %3379 = vrot.lane.b32.xlu0 %v5226_v53, %s6047_s29 }
 0x260   :  { %v1813_v59 = vpop.permute.xlu1 %1812 }
 0x261   :  { %v1811_v62 = vpop.permute.xlu0 %1810  ;;  %1853 = vst.msk [vmem:[#allocation2 + $0x68] sm:$0xff] %vm715_vm7, %v1813_v59 }
 0x262   :  { %1852 = vst.msk [vmem:[#allocation2 + $0x60] sm:$0xff] %vm715_vm7, %v1811_v62  ;;  %2629 = vrot.lane.b32.xlu1 %v5103_v57, %s6039_s26 }
 0x263   :  { %2627 = vrot.lane.b32.xlu0 %v5102_v58, %s6039_s26 }
 0x264   :  { %v805_v63 = vpop.permute.xlu1 %804 }
 0x265   :  { %v803_v2 = vpop.permute.xlu0 %802  ;;  %842 = vst.msk [vmem:[#allocation2 + $0x88] sm:$0xff] %vm824_vm8, %v805_v63  ;;  %v8051_v63 = vld [vmem:[%s9939_s0 + $0x182] sm:$0xff] }
 0x266   :  { %841 = vst.msk [vmem:[#allocation2 + $0x80] sm:$0xff] %vm824_vm8, %v803_v2  ;;  %2737 = vrot.lane.b32.xlu1 %v7819_v10, %s6038_s25  ;;  %v8056_v2 = vld [vmem:[%s9939_s0 + $0x17a] sm:$0xff] }
 0x267   :  { %2735 = vrot.lane.b32.xlu0 %v7824_v12, %s6038_s25 }
 0x268   :  { %v1921_v5 = vpop.permute.xlu1 %1920 }
 0x269   :  { %v1919_v6 = vpop.permute.xlu0 %1918  ;;  %1961 = vst.msk [vmem:[#allocation2 + $0x68] sm:$0xff] %vm824_vm8, %v1921_v5 }
 0x26a   :  { %1960 = vst.msk [vmem:[#allocation2 + $0x60] sm:$0xff] %vm824_vm8, %v1919_v6  ;;  %2845 = vrot.lane.b32.xlu1 %v7927_v61, %s6041_s11 }
 0x26b   :  { %2843 = vrot.lane.b32.xlu0 %v7932_v4, %s6041_s11 }
 0x26c   :  { %v914_v9 = vpop.permute.xlu1 %913 }
 0x26d   :  { %v912_v10 = vpop.permute.xlu0 %911  ;;  %951 = vst.msk [vmem:[#allocation2 + $0x88] sm:$0xff] %vm933_vm9, %v914_v9 }
 0x26e   :  { %950 = vst.msk [vmem:[#allocation2 + $0x80] sm:$0xff] %vm933_vm9, %v912_v10  ;;  %2953 = vrot.lane.b32.xlu1 %v5157_v7, %s6042_s16 }
 0x26f   :  { %2951 = vrot.lane.b32.xlu0 %v5156_v60, %s6042_s16 }
 0x270   :  { %v2029_v12 = vpop.permute.xlu1 %2028 }
 0x271   :  { %v2027_v40 = vpop.permute.xlu0 %2026  ;;  %2069 = vst.msk [vmem:[#allocation2 + $0x68] sm:$0xff] %vm933_vm9, %v2029_v12 }
 0x272   :  { %2068 = vst.msk [vmem:[#allocation2 + $0x60] sm:$0xff] %vm933_vm9, %v2027_v40  ;;  %3061 = vrot.lane.b32.xlu1 %v7866_v35, %s6043_s21  ;;  %v5104_v35 = vld [vmem:[%s9939_s0 + $0x169] sm:$0xff]  ;;  %v8071_v40 = vld [vmem:[%s9939_s0 + $0x1f2] sm:$0xff] }
 0x273   :  { %3059 = vrot.lane.b32.xlu0 %v7871_v13, %s6043_s21 }
 0x274   :  { %v1277_v17 = vpop.permute.xlu1 %1276  ;;  %v969_v21 = vld [vmem:[#allocation2 + $0x88] sm:$0xff] }
 0x275   :  { %v1275_v18 = vpop.permute.xlu0 %1274  ;;  %v968_v20 = vld [vmem:[#allocation2 + $0x80] sm:$0xff]  ;;  %1315 = vst.msk [vmem:[#allocation2 + $0x78] sm:$0xff] %vm170_vm2, %v1277_v17 }
 0x276   :  { %1314 = vst.msk [vmem:[#allocation2 + $0x70] sm:$0xff] %vm170_vm2, %v1275_v18  ;;  %v978_v23 = vpack.c.bf16 %v969_v21, %v968_v20  ;;  %3169 = vrot.lane.b32.xlu1 %v7968_v11, %s6044_s8  ;;  %v5159_v21 = vld [vmem:[%s9939_s0 + $0x183] sm:$0xff] }
 0x277   :  { %1209 = vst.msk [vmem:[#allocation2 + $0x88] sm:$0xff] %vm61_vm0, %v1191_v0  ;;  %1208 = vst.msk [vmem:[#allocation2 + $0x80] sm:$0xff] %vm61_vm0, %v1190_v1  ;;  %3167 = vrot.lane.b32.xlu0 %v7973_v15, %s6044_s8  ;;  %v8076_v0 = vld [vmem:[%s9939_s0 + $0x1ea] sm:$0xff] }
 0x278   :  { %5578 = vmatmul.mubr.bf16.gmra.mrb[32].mxu0 %v978_v23  ;;  %v1385_v27 = vpop.permute.xlu1 %1384  ;;  %v2087_v50 = vld [vmem:[#allocation2 + $0x68] sm:$0xff] }
 0x279   :  { %v1383_v28 = vpop.permute.xlu0 %1382  ;;  %v2086_v29 = vld [vmem:[#allocation2 + $0x60] sm:$0xff]  ;;  %1423 = vst.msk [vmem:[#allocation2 + $0x78] sm:$0xff] %vm279_vm3, %v1385_v27 }
 0x27a   :  { %1422 = vst.msk [vmem:[#allocation2 + $0x70] sm:$0xff] %vm279_vm3, %v1383_v28  ;;  %v2098_v47 = vpack.c.bf16 %v2087_v50, %v2086_v29  ;;  %3277 = vrot.lane.b32.xlu1 %v5211_v24, %s6045_s19  ;;  %v5326_v29 = vld [vmem:[%s9939_s0 + $0x1f3] sm:$0xff]  ;;  %v5325_v50 = vld [vmem:[%s9939_s0 + $0x1eb] sm:$0xff] }
 0x27b   :  { %3275 = vrot.lane.b32.xlu0 %v5210_v25, %s6045_s19 }
 0x27c   :  { %5622 = vmatmul.mubr.bf16.gmra.mrb[24].mxu1 %v2098_v47  ;;  %v1493_v32 = vpop.permute.xlu1 %1492 }
 0x27d   :  { %v1491_v33 = vpop.permute.xlu0 %1490  ;;  %5625 = vmatprep.mubr.msk.bf16.mxu1 %vm6046_vm1, %v6839_v26  ;;  %1531 = vst.msk [vmem:[#allocation2 + $0x78] sm:$0xff] %vm388_vm4, %v1493_v32 }
 0x27e   :  { %1530 = vst.msk [vmem:[#allocation2 + $0x70] sm:$0xff] %vm388_vm4, %v1491_v33  ;;  %3385 = vrot.lane.b32.xlu1 %v5229_v30, %s6047_s29  ;;  %v5344_v33 = vld [vmem:[%s9939_s0 + $0x1f4] sm:$0xff] }
 0x27f   :  { %3383 = vrot.lane.b32.xlu0 %v5228_v31, %s6047_s29 }
 0x280   :  { %v1601_v13 = vpop.permute.xlu1 %1600 }
 0x281   :  { %v1599_v39 = vpop.permute.xlu0 %1598  ;;  %1639 = vst.msk [vmem:[#allocation2 + $0x78] sm:$0xff] %vm497_vm5, %v1601_v13 }
 0x282   :  { %1638 = vst.msk [vmem:[#allocation2 + $0x70] sm:$0xff] %vm497_vm5, %v1599_v39  ;;  %2633 = vrot.lane.b32.xlu1 %v5105_v34, %s6039_s26  ;;  %v5343_v34 = vld [vmem:[%s9939_s0 + $0x1ec] sm:$0xff] }
 0x283   :  { %2631 = vrot.lane.b32.xlu0 %v5104_v35, %s6039_s26 }
 0x284   :  { %v1709_v46 = vpop.permute.xlu1 %1708 }
 0x285   :  { %v1707_v36 = vpop.permute.xlu0 %1706  ;;  %1747 = vst.msk [vmem:[#allocation2 + $0x78] sm:$0xff] %vm606_vm6, %v1709_v46  ;;  %v8147_v46 = vld [vmem:[%s9939_s0 + $0x1fc] sm:$0xff] }
 0x286   :  { %1746 = vst.msk [vmem:[#allocation2 + $0x70] sm:$0xff] %vm606_vm6, %v1707_v36  ;;  %3747 = vrot.lane.b32.xlu1 %v5272_v42, %s6039_s26 }
 0x287   :  { %3745 = vrot.lane.b32.xlu0 %v5271_v45, %s6039_s26  ;;  %v8142_v45 = vld [vmem:[%s9939_s0 + $0x204] sm:$0xff] }
 0x288   :  { %v1817_v43 = vpop.permute.xlu1 %1816 }
 0x289   :  { %v1815_v37 = vpop.permute.xlu0 %1814  ;;  %1855 = vst.msk [vmem:[#allocation2 + $0x78] sm:$0xff] %vm715_vm7, %v1817_v43 }
 0x28a   :  { %1854 = vst.msk [vmem:[#allocation2 + $0x70] sm:$0xff] %vm715_vm7, %v1815_v37  ;;  %2741 = vrot.lane.b32.xlu1 %v7927_v61, %s6038_s25  ;;  %v5213_v37 = vld [vmem:[%s9939_s0 + $0x195] sm:$0xff] }
 0x28b   :  { %2739 = vrot.lane.b32.xlu0 %v7932_v4, %s6038_s25  ;;  %v1124_v48 = vpop.f32.mrb[20].mxu0 }
 0x28c   :  { %v5567_v49 = vpop.f32.mrb[21].mxu0  ;;  %v1125_v52 = vadd.f32 %v7841_v16, %v1124_v48  ;;  %v1925_v53 = vpop.permute.xlu1 %1924  ;;  %v5212_v48 = vld [vmem:[%s9939_s0 + $0x18d] sm:$0xff] }
 0x28d   :  { %v1923_v54 = vpop.permute.xlu0 %1922  ;;  %1963 = vst.msk [vmem:[#allocation2 + $0x78] sm:$0xff] %vm824_vm8, %v1925_v53  ;;  %v1127_v55 = vpop.f32.mrb[22].mxu0  ;;  %v5379_v53 = vld [vmem:[%s9939_s0 + $0x1fd] sm:$0xff] }
 0x28e   :  { %1962 = vst.msk [vmem:[#allocation2 + $0x70] sm:$0xff] %vm824_vm8, %v1923_v54  ;;  %v1128_v57 = vadd.f32 %v7841_v16, %v1127_v55  ;;  %v5568_v58 = vpop.f32.mrb[23].mxu0  ;;  %3855 = vrot.lane.b32.xlu1 %v5290_v44, %s6038_s25  ;;  %v1165_v61 = vmax.f32 %v1125_v52, 0.0  ;;  %v5380_v52 = vld [vmem:[%s9939_s0 + $0x205] sm:$0xff] }
 0x28f   :  { %3853 = vrot.lane.b32.xlu0 %v5289_v51, %s6038_s25  ;;  %v2230_v59 = vpop.f32.mrb[12].mxu1  ;;  %v5089_v51 = vld [vmem:[%s9939_s0 + $0x180] sm:$0xff]  ;;  %v5231_v58 = vld [vmem:[%s9939_s0 + $0x196] sm:$0xff] }
 0x290   :  { %v5611_v62 = vpop.f32.mrb[13].mxu1  ;;  %v1166_v4 = vmax.f32 %v1128_v57, 0.0  ;;  %v2231_v5 = vadd.f32 %v7841_v16, %v2230_v59  ;;  %v2033_v6 = vpop.permute.xlu1 %2032  ;;  %2576 = vst.msk [vmem:[#allocation2 + $0x38] sm:$0xff] %vm61_vm0, %v5089_v51  ;;  %v5088_v57 = vld [vmem:[%s9939_s0 + $0x178] sm:$0xff]  ;;  %v5230_v59 = vld [vmem:[%s9939_s0 + $0x18e] sm:$0xff] }
 0x291   :  { %v2031_v7 = vpop.permute.xlu0 %2030  ;;  %2071 = vst.msk [vmem:[#allocation2 + $0x78] sm:$0xff] %vm933_vm9, %v2033_v6  ;;  %v2233_v60 = vpop.f32.mrb[14].mxu1 }
 0x292   :  { %2070 = vst.msk [vmem:[#allocation2 + $0x70] sm:$0xff] %vm933_vm9, %v2031_v7  ;;  %v8061_v9 = vpack.c.bf16 %v1166_v4, %v1165_v61  ;;  %v2234_v10 = vadd.f32 %v7841_v16, %v2233_v60  ;;  %v5612_v12 = vpop.f32.mrb[15].mxu1  ;;  %2849 = vrot.lane.b32.xlu1 %v8051_v63, %s6041_s11  ;;  %v2283_v1 = vmax.f32 %v2231_v5, 0.0  ;;  %v5398_v7 = vld [vmem:[%s9939_s0 + $0x206] sm:$0xff]  ;;  %v5397_v60 = vld [vmem:[%s9939_s0 + $0x1fe] sm:$0xff] }
 0x293   :  { %2847 = vrot.lane.b32.xlu0 %v8056_v2, %s6041_s11  ;;  %2575 = vst.msk [vmem:[#allocation2 + $0x30] sm:$0xff] %vm61_vm0, %v5088_v57  ;;  %v5253_v57 = vld [vmem:[%s9939_s0 + $0x1d8] sm:$0xff] }
 0x294   :  { %v2284_v41 = vmax.f32 %v2234_v10, 0.0  ;;  %v1281_v17 = vpop.permute.xlu1 %1280 }
 0x295   :  { %v1279_v18 = vpop.permute.xlu0 %1278  ;;  %1317 = vst.msk [vmem:[#allocation2 + $0x88] sm:$0xff] %vm170_vm2, %v1281_v17 }
 0x296   :  { %1316 = vst.msk [vmem:[#allocation2 + $0x80] sm:$0xff] %vm170_vm2, %v1279_v18  ;;  %v5817_v20 = vpack.c.bf16 %v2284_v41, %v2283_v1  ;;  %3963 = vrot.lane.b32.xlu1 %v8071_v40, %s6041_s11  ;;  %v5107_v1 = vld [vmem:[%s9939_s0 + $0x181] sm:$0xff]  ;;  %v5106_v41 = vld [vmem:[%s9939_s0 + $0x179] sm:$0xff] }
 0x297   :  { %3961 = vrot.lane.b32.xlu0 %v8076_v0, %s6041_s11 }
 0x298   :  { %5818 = vmatpush1.bf16.msra.mxu0 %v5817_v20  ;;  %v1389_v23 = vpop.permute.xlu1 %1388  ;;  %v2089_v27 = vld [vmem:[#allocation2 + $0x78] sm:$0xff] }
 0x299   :  { %v1387_v24 = vpop.permute.xlu0 %1386  ;;  %v2088_v25 = vld [vmem:[#allocation2 + $0x70] sm:$0xff]  ;;  %1425 = vst.msk [vmem:[#allocation2 + $0x88] sm:$0xff] %vm279_vm3, %v1389_v23  ;;  %5819 = vmatprep.subr.bf16.mxu0 %v6048_v56 }
 0x29a   :  { %1424 = vst.msk [vmem:[#allocation2 + $0x80] sm:$0xff] %vm279_vm3, %v1387_v24  ;;  %v2099_v28 = vpack.c.bf16 %v2089_v27, %v2088_v25  ;;  %2957 = vrot.lane.b32.xlu1 %v5159_v21, %s6042_s16  ;;  %v5274_v20 = vld [vmem:[%s9939_s0 + $0x1f1] sm:$0xff]  ;;  %v5273_v21 = vld [vmem:[%s9939_s0 + $0x1e9] sm:$0xff] }
 0x29b   :  { %2955 = vrot.lane.b32.xlu0 %v5158_v22, %s6042_s16 }
 0x29c   :  { %5626 = vmatmul.mubr.bf16.gmra.mrb[28].mxu1 %v2099_v28  ;;  %v1497_v47 = vpop.permute.xlu1 %1496 }
 0x29d   :  { %v1495_v30 = vpop.permute.xlu0 %1494  ;;  %5629 = vmatprep.mubr.msk.bf16.mxu1 %vm6046_vm1, %v6839_v26  ;;  %1533 = vst.msk [vmem:[#allocation2 + $0x88] sm:$0xff] %vm388_vm4, %v1497_v47 }
 0x29e   :  { %1532 = vst.msk [vmem:[#allocation2 + $0x80] sm:$0xff] %vm388_vm4, %v1495_v30  ;;  %4071 = vrot.lane.b32.xlu1 %v5326_v29, %s6042_s16 }
 0x29f   :  { %4069 = vrot.lane.b32.xlu0 %v5325_v50, %s6042_s16 }
 0x2a0   :  { %v1605_v31 = vpop.permute.xlu1 %1604 }
 0x2a1   :  { %v1603_v32 = vpop.permute.xlu0 %1602  ;;  %1641 = vst.msk [vmem:[#allocation2 + $0x88] sm:$0xff] %vm497_vm5, %v1605_v31 }
 0x2a2   :  { %1640 = vst.msk [vmem:[#allocation2 + $0x80] sm:$0xff] %vm497_vm5, %v1603_v32  ;;  %3065 = vrot.lane.b32.xlu1 %v7968_v11, %s6043_s21  ;;  %v8126_v11 = vld [vmem:[%s9939_s0 + $0x194] sm:$0xff] }
 0x2a3   :  { %3063 = vrot.lane.b32.xlu0 %v7973_v15, %s6043_s21  ;;  %v8131_v15 = vld [vmem:[%s9939_s0 + $0x18c] sm:$0xff] }
 0x2a4   :  { %v1713_v35 = vpop.permute.xlu1 %1712 }
 0x2a5   :  { %v1711_v13 = vpop.permute.xlu0 %1710  ;;  %1749 = vst.msk [vmem:[#allocation2 + $0x88] sm:$0xff] %vm606_vm6, %v1713_v35 }
 0x2a6   :  { %1748 = vst.msk [vmem:[#allocation2 + $0x80] sm:$0xff] %vm606_vm6, %v1711_v13  ;;  %4179 = vrot.lane.b32.xlu1 %v5344_v33, %s6043_s21  ;;  %v8242_v33 = vld [vmem:[%s9939_s0 + $0x192] sm:$0xff] }
 0x2a7   :  { %4177 = vrot.lane.b32.xlu0 %v5343_v34, %s6043_s21  ;;  %v8247_v34 = vld [vmem:[%s9939_s0 + $0x18a] sm:$0xff] }
 0x2a8   :  { %v1821_v39 = vpop.permute.xlu1 %1820 }
 0x2a9   :  { %v1819_v42 = vpop.permute.xlu0 %1818  ;;  %1857 = vst.msk [vmem:[#allocation2 + $0x88] sm:$0xff] %vm715_vm7, %v1821_v39 }
 0x2aa   :  { %1856 = vst.msk [vmem:[#allocation2 + $0x80] sm:$0xff] %vm715_vm7, %v1819_v42  ;;  %3173 = vrot.lane.b32.xlu1 %v8126_v11, %s6044_s8 }
 0x2ab   :  { %3171 = vrot.lane.b32.xlu0 %v8131_v15, %s6044_s8 }
 0x2ac   :  { %v1929_v36 = vpop.permute.xlu1 %1928 }
 0x2ad   :  { %v1927_v43 = vpop.permute.xlu0 %1926  ;;  %1965 = vst.msk [vmem:[#allocation2 + $0x88] sm:$0xff] %vm824_vm8, %v1929_v36 }
 0x2ae   :  { %1964 = vst.msk [vmem:[#allocation2 + $0x80] sm:$0xff] %vm824_vm8, %v1927_v43  ;;  %4287 = vrot.lane.b32.xlu1 %v8142_v45, %s6044_s8 }
 0x2af   :  { %4285 = vrot.lane.b32.xlu0 %v8147_v46, %s6044_s8 }
 0x2b0   :  { %v2037_v49 = vpop.permute.xlu1 %2036 }
 0x2b1   :  { %v2035_v44 = vpop.permute.xlu0 %2034  ;;  %2073 = vst.msk [vmem:[#allocation2 + $0x88] sm:$0xff] %vm933_vm9, %v2037_v49  ;;  %v8267_v49 = vld [vmem:[%s9939_s0 + $0x1fa] sm:$0xff] }
 0x2b2   :  { %2072 = vst.msk [vmem:[#allocation2 + $0x80] sm:$0xff] %vm933_vm9, %v2035_v44  ;;  %3281 = vrot.lane.b32.xlu1 %v5213_v37, %s6045_s19 }
 0x2b3   :  { %3279 = vrot.lane.b32.xlu0 %v5212_v48, %s6045_s19  ;;  %v8262_v48 = vld [vmem:[%s9939_s0 + $0x202] sm:$0xff] }
 0x2b4   :  { %v2626_v54 = vpop.permute.xlu1 %2625 }
 0x2b5   :  { %v2624_v55 = vpop.permute.xlu0 %2623  ;;  %2678 = vst.msk [vmem:[#allocation2 + $0x8] sm:$0xff] %vm170_vm2, %v2626_v54 }
 0x2b6   :  { %2677 = vst.msk [vmem:[#allocation2] sm:$0xff] %vm170_vm2, %v2624_v55  ;;  %4395 = vrot.lane.b32.xlu1 %v5380_v52, %s6045_s19  ;;  %v5254_v55 = vld [vmem:[%s9939_s0 + $0x1e0] sm:$0xff] }
 0x2b7   :  { %4393 = vrot.lane.b32.xlu0 %v5379_v53, %s6045_s19 }
 0x2b8   :  { %v2734_v62 = vpop.permute.xlu1 %2733  ;;  %v2091_v5 = vld [vmem:[#allocation2 + $0x88] sm:$0xff] }
 0x2b9   :  { %v2732_v61 = vpop.permute.xlu0 %2731  ;;  %v2090_v4 = vld [vmem:[#allocation2 + $0x80] sm:$0xff]  ;;  %2786 = vst.msk [vmem:[#allocation2 + $0x8] sm:$0xff] %vm279_vm3, %v2734_v62 }
 0x2ba   :  { %2785 = vst.msk [vmem:[#allocation2] sm:$0xff] %vm279_vm3, %v2732_v61  ;;  %v2100_v6 = vpack.c.bf16 %v2091_v5, %v2090_v4  ;;  %3389 = vrot.lane.b32.xlu1 %v5231_v58, %s6047_s29  ;;  %v5161_v58 = vld [vmem:[%s9939_s0 + $0x193] sm:$0xff] }
 0x2bb   :  { %3387 = vrot.lane.b32.xlu0 %v5230_v59, %s6047_s29  ;;  %v5160_v59 = vld [vmem:[%s9939_s0 + $0x18b] sm:$0xff] }
 0x2bc   :  { %5630 = vmatmul.mubr.bf16.gmra.mrb[32].mxu1 %v2100_v6  ;;  %v2842_v10 = vpop.permute.xlu1 %2841 }
 0x2bd   :  { %v2840_v12 = vpop.permute.xlu0 %2839  ;;  %5665 = vmatprep.mubr.msk.f32.mxu1 %vm6046_vm1, %v6839_v26  ;;  %2894 = vst.msk [vmem:[#allocation2 + $0x8] sm:$0xff] %vm388_vm4, %v2842_v10 }
 0x2be   :  { %2893 = vst.msk [vmem:[#allocation2] sm:$0xff] %vm388_vm4, %v2840_v12  ;;  %4503 = vrot.lane.b32.xlu1 %v5398_v7, %s6047_s29  ;;  %v5328_v7 = vld [vmem:[%s9939_s0 + $0x203] sm:$0xff] }
 0x2bf   :  { %4501 = vrot.lane.b32.xlu0 %v5397_v60, %s6047_s29  ;;  %v5327_v60 = vld [vmem:[%s9939_s0 + $0x1fb] sm:$0xff] }
 0x2c0   :  { %v2950_v17 = vpop.permute.xlu1 %2949 }
 0x2c1   :  { %v2948_v18 = vpop.permute.xlu0 %2947  ;;  %3002 = vst.msk [vmem:[#allocation2 + $0x8] sm:$0xff] %vm497_vm5, %v2950_v17 }
 0x2c2   :  { %3001 = vst.msk [vmem:[#allocation2] sm:$0xff] %vm497_vm5, %v2948_v18  ;;  %2637 = vrot.lane.b32.xlu1 %v5107_v1, %s6039_s26 }
 0x2c3   :  { %2635 = vrot.lane.b32.xlu0 %v5106_v41, %s6039_s26 }
 0x2c4   :  { %v3058_v22 = vpop.permute.xlu1 %3057 }
 0x2c5   :  { %v3056_v23 = vpop.permute.xlu0 %3055  ;;  %3110 = vst.msk [vmem:[#allocation2 + $0x8] sm:$0xff] %vm606_vm6, %v3058_v22 }
 0x2c6   :  { %3109 = vst.msk [vmem:[#allocation2] sm:$0xff] %vm606_vm6, %v3056_v23  ;;  %3751 = vrot.lane.b32.xlu1 %v5274_v20, %s6039_s26  ;;  %v8325_v20 = vld [vmem:[%s9939_s0 + $0x1a4] sm:$0xff] }
 0x2c7   :  { %3749 = vrot.lane.b32.xlu0 %v5273_v21, %s6039_s26 }
 0x2c8   :  { %v3166_v24 = vpop.permute.xlu1 %3165 }
 0x2c9   :  { %v3164_v25 = vpop.permute.xlu0 %3163  ;;  %3218 = vst.msk [vmem:[#allocation2 + $0x8] sm:$0xff] %vm715_vm7, %v3166_v24  ;;  %v5215_v24 = vld [vmem:[%s9939_s0 + $0x1a5] sm:$0xff] }
 0x2ca   :  { %3217 = vst.msk [vmem:[#allocation2] sm:$0xff] %vm715_vm7, %v3164_v25  ;;  %2745 = vrot.lane.b32.xlu1 %v8051_v63, %s6038_s25  ;;  %v5214_v25 = vld [vmem:[%s9939_s0 + $0x19d] sm:$0xff] }
 0x2cb   :  { %2743 = vrot.lane.b32.xlu0 %v8056_v2, %s6038_s25  ;;  %v1132_v27 = vpop.f32.mrb[24].mxu0 }
 0x2cc   :  { %v5571_v28 = vpop.f32.mrb[25].mxu0  ;;  %v1133_v29 = vadd.f32 %v7841_v16, %v1132_v27  ;;  %v3274_v50 = vpop.permute.xlu1 %3273 }
 0x2cd   :  { %v3272_v47 = vpop.permute.xlu0 %3271  ;;  %3326 = vst.msk [vmem:[#allocation2 + $0x8] sm:$0xff] %vm824_vm8, %v3274_v50  ;;  %v1135_v30 = vpop.f32.mrb[26].mxu0  ;;  %v5381_v50 = vld [vmem:[%s9939_s0 + $0x20d] sm:$0xff] }
 0x2ce   :  { %3325 = vst.msk [vmem:[#allocation2] sm:$0xff] %vm824_vm8, %v3272_v47  ;;  %v1136_v31 = vadd.f32 %v7841_v16, %v1135_v30  ;;  %v5572_v32 = vpop.f32.mrb[27].mxu0  ;;  %3859 = vrot.lane.b32.xlu1 %v8071_v40, %s6038_s25  ;;  %v1167_v35 = vmax.f32 %v1133_v29, 0.0  ;;  %v5382_v29 = vld [vmem:[%s9939_s0 + $0x215] sm:$0xff] }
 0x2cf   :  { %3857 = vrot.lane.b32.xlu0 %v8076_v0, %s6038_s25  ;;  %v2238_v63 = vpop.f32.mrb[16].mxu1  ;;  %v5090_v32 = vld [vmem:[%s9939_s0 + $0x188] sm:$0xff] }
 0x2d0   :  { %v5615_v2 = vpop.f32.mrb[17].mxu1  ;;  %v1168_v13 = vmax.f32 %v1136_v31, 0.0  ;;  %v2239_v39 = vadd.f32 %v7841_v16, %v2238_v63  ;;  %v3382_v40 = vpop.permute.xlu1 %3381  ;;  %v5091_v31 = vld [vmem:[%s9939_s0 + $0x190] sm:$0xff]  ;;  %2577 = vst.msk [vmem:[#allocation2 + $0x40] sm:$0xff] %vm61_vm0, %v5090_v32  ;;  %v2298_v32 = vlaneseq }
 0x2d1   :  { %v3380_v42 = vpop.permute.xlu0 %3379  ;;  %3434 = vst.msk [vmem:[#allocation2 + $0x8] sm:$0xff] %vm933_vm9, %v3382_v40  ;;  %v2241_v0 = vpop.f32.mrb[18].mxu1  ;;  %v5256_v63 = vld [vmem:[%s9939_s0 + $0x1f0] sm:$0xff]  ;;  %v5255_v2 = vld [vmem:[%s9939_s0 + $0x1e8] sm:$0xff] }
 0x2d2   :  { %3433 = vst.msk [vmem:[#allocation2] sm:$0xff] %vm933_vm9, %v3380_v42  ;;  %v8252_v36 = vpack.c.bf16 %v1168_v13, %v1167_v35  ;;  %v2242_v43 = vadd.f32 %v7841_v16, %v2241_v0  ;;  %v5616_v37 = vpop.f32.mrb[19].mxu1  ;;  %2853 = vrot.lane.b32.xlu1 %v8242_v33, %s6041_s11  ;;  %v2285_v44 = vmax.f32 %v2239_v39, 0.0  ;;  %v5233_v35 = vld [vmem:[%s9939_s0 + $0x1a6] sm:$0xff]  ;;  %v5232_v13 = vld [vmem:[%s9939_s0 + $0x19e] sm:$0xff] }
 0x2d3   :  { %2851 = vrot.lane.b32.xlu0 %v8247_v34, %s6041_s11  ;;  %2578 = vst.msk [vmem:[#allocation2 + $0x48] sm:$0xff] %vm61_vm0, %v5091_v31  ;;  %v5400_v37 = vld [vmem:[%s9939_s0 + $0x216] sm:$0xff]  ;;  %v8478_v31 = vld [vmem:[%s9939_s0 + $0x20a] sm:$0xff] }
 0x2d4   :  { %v2286_v51 = vmax.f32 %v2242_v43, 0.0  ;;  %v2630_v52 = vpop.permute.xlu1 %2629 }
 0x2d5   :  { %v2628_v53 = vpop.permute.xlu0 %2627  ;;  %2680 = vst.msk [vmem:[#allocation2 + $0x18] sm:$0xff] %vm170_vm2, %v2630_v52 }
 0x2d6   :  { %2679 = vst.msk [vmem:[#allocation2 + $0x10] sm:$0xff] %vm170_vm2, %v2628_v53  ;;  %v5820_v54 = vpack.c.bf16 %v2286_v51, %v2285_v44  ;;  %3967 = vrot.lane.b32.xlu1 %v8262_v48, %s6041_s11  ;;  %v5399_v44 = vld [vmem:[%s9939_s0 + $0x20e] sm:$0xff] }
 0x2d7   :  { %3965 = vrot.lane.b32.xlu0 %v8267_v49, %s6041_s11  ;;  %v5109_v53 = vld [vmem:[%s9939_s0 + $0x191] sm:$0xff] }
 0x2d8   :  { %5821 = vmatpush1.bf16.msra.mxu0 %v5820_v54  ;;  %v2738_v62 = vpop.permute.xlu1 %2737  ;;  %v8287_v4 = vld [vmem:[#allocation2 + $0x8] sm:$0xff] }
 0x2d9   :  { %v2736_v61 = vpop.permute.xlu0 %2735  ;;  %v8289_v5 = vld [vmem:[#allocation2] sm:$0xff]  ;;  %2788 = vst.msk [vmem:[#allocation2 + $0x18] sm:$0xff] %vm279_vm3, %v2738_v62  ;;  %5822 = vmatprep.subr.bf16.mxu0 %v6048_v56  ;;  %v5108_v54 = vld [vmem:[%s9939_s0 + $0x189] sm:$0xff] }
 0x2da   :  { %2787 = vst.msk [vmem:[#allocation2 + $0x10] sm:$0xff] %vm279_vm3, %v2736_v61  ;;  %v3469_v6 = vpack.c.bf16 %v8287_v4, %v8289_v5  ;;  %2961 = vrot.lane.b32.xlu1 %v5161_v58, %s6042_s16  ;;  %v5276_v58 = vld [vmem:[%s9939_s0 + $0x201] sm:$0xff] }
 0x2db   :  { %3692 = vst.msk [vmem:[#allocation2 + $0x8] sm:$0xff] %vm61_vm0, %v5254_v55  ;;  %3691 = vst.msk [vmem:[#allocation2] sm:$0xff] %vm61_vm0, %v5253_v57  ;;  %2959 = vrot.lane.b32.xlu0 %v5160_v59, %s6042_s16  ;;  %v5275_v59 = vld [vmem:[%s9939_s0 + $0x1f9] sm:$0xff] }
 0x2dc   :  { %v2846_v10 = vpop.permute.xlu1 %2845 }
 0x2dd   :  { %v2844_v12 = vpop.permute.xlu0 %2843  ;;  %2896 = vst.msk [vmem:[#allocation2 + $0x18] sm:$0xff] %vm388_vm4, %v2846_v10 }
 0x2de   :  { %2895 = vst.msk [vmem:[#allocation2 + $0x10] sm:$0xff] %vm388_vm4, %v2844_v12  ;;  %4075 = vrot.lane.b32.xlu1 %v5328_v7, %s6042_s16 }
 0x2df   :  { %4073 = vrot.lane.b32.xlu0 %v5327_v60, %s6042_s16 }
 0x2e0   :  { %v2954_v1 = vpop.permute.xlu1 %2953 }
 0x2e1   :  { %v2952_v41 = vpop.permute.xlu0 %2951  ;;  %3004 = vst.msk [vmem:[#allocation2 + $0x18] sm:$0xff] %vm497_vm5, %v2954_v1 }
 0x2e2   :  { %3003 = vst.msk [vmem:[#allocation2 + $0x10] sm:$0xff] %vm497_vm5, %v2952_v41  ;;  %3069 = vrot.lane.b32.xlu1 %v8126_v11, %s6043_s21  ;;  %v8330_v11 = vld [vmem:[%s9939_s0 + $0x19c] sm:$0xff] }
 0x2e3   :  { %3067 = vrot.lane.b32.xlu0 %v8131_v15, %s6043_s21 }
 0x2e4   :  { %v3062_v17 = vpop.permute.xlu1 %3061 }
 0x2e5   :  { %v3060_v18 = vpop.permute.xlu0 %3059  ;;  %3112 = vst.msk [vmem:[#allocation2 + $0x18] sm:$0xff] %vm606_vm6, %v3062_v17 }
 0x2e6   :  { %3111 = vst.msk [vmem:[#allocation2 + $0x10] sm:$0xff] %vm606_vm6, %v3060_v18  ;;  %4183 = vrot.lane.b32.xlu1 %v8142_v45, %s6043_s21  ;;  %v8341_v45 = vld [vmem:[%s9939_s0 + $0x214] sm:$0xff] }
 0x2e7   :  { %4181 = vrot.lane.b32.xlu0 %v8147_v46, %s6043_s21  ;;  %v8346_v46 = vld [vmem:[%s9939_s0 + $0x20c] sm:$0xff] }
 0x2e8   :  { %v3170_v15 = vpop.permute.xlu1 %3169 }
 0x2e9   :  { %v3168_v21 = vpop.permute.xlu0 %3167  ;;  %3220 = vst.msk [vmem:[#allocation2 + $0x18] sm:$0xff] %vm715_vm7, %v3170_v15 }
 0x2ea   :  { %3219 = vst.msk [vmem:[#allocation2 + $0x10] sm:$0xff] %vm715_vm7, %v3168_v21  ;;  %3177 = vrot.lane.b32.xlu1 %v8325_v20, %s6044_s8 }
 0x2eb   :  { %3175 = vrot.lane.b32.xlu0 %v8330_v11, %s6044_s8 }
 0x2ec   :  { %v3278_v22 = vpop.permute.xlu1 %3277 }
 0x2ed   :  { %v3276_v23 = vpop.permute.xlu0 %3275  ;;  %3328 = vst.msk [vmem:[#allocation2 + $0x18] sm:$0xff] %vm824_vm8, %v3278_v22  ;;  %v8453_v22 = vld [vmem:[%s9939_s0 + $0x1a2] sm:$0xff] }
 0x2ee   :  { %3327 = vst.msk [vmem:[#allocation2 + $0x10] sm:$0xff] %vm824_vm8, %v3276_v23  ;;  %4291 = vrot.lane.b32.xlu1 %v8341_v45, %s6044_s8  ;;  %v8458_v23 = vld [vmem:[%s9939_s0 + $0x19a] sm:$0xff] }
 0x2ef   :  { %4289 = vrot.lane.b32.xlu0 %v8346_v46, %s6044_s8 }
 0x2f0   :  { %v3386_v27 = vpop.permute.xlu1 %3385 }
 0x2f1   :  { %v3384_v28 = vpop.permute.xlu0 %3383  ;;  %3436 = vst.msk [vmem:[#allocation2 + $0x18] sm:$0xff] %vm933_vm9, %v3386_v27 }
 0x2f2   :  { %3435 = vst.msk [vmem:[#allocation2 + $0x10] sm:$0xff] %vm933_vm9, %v3384_v28  ;;  %3285 = vrot.lane.b32.xlu1 %v5215_v24, %s6045_s19 }
 0x2f3   :  { %3283 = vrot.lane.b32.xlu0 %v5214_v25, %s6045_s19 }
 0x2f4   :  { %v2634_v47 = vpop.permute.xlu1 %2633 }
 0x2f5   :  { %v2632_v30 = vpop.permute.xlu0 %2631  ;;  %2682 = vst.msk [vmem:[#allocation2 + $0x28] sm:$0xff] %vm170_vm2, %v2634_v47 }
 0x2f6   :  { %2681 = vst.msk [vmem:[#allocation2 + $0x20] sm:$0xff] %vm170_vm2, %v2632_v30  ;;  %4399 = vrot.lane.b32.xlu1 %v5382_v29, %s6045_s19  ;;  %v8473_v30 = vld [vmem:[%s9939_s0 + $0x212] sm:$0xff] }
 0x2f7   :  { %4397 = vrot.lane.b32.xlu0 %v5381_v50, %s6045_s19 }
 0x2f8   :  { %v3748_v39 = vpop.permute.xlu1 %3747  ;;  %v8394_v42 = vld [vmem:[#allocation2 + $0x18] sm:$0xff] }
 0x2f9   :  { %v3746_v40 = vpop.permute.xlu0 %3745  ;;  %v8396_v0 = vld [vmem:[#allocation2 + $0x10] sm:$0xff]  ;;  %3800 = vst.msk [vmem:[#allocation2 + $0x8] sm:$0xff] %vm170_vm2, %v3748_v39 }
 0x2fa   :  { %3799 = vst.msk [vmem:[#allocation2] sm:$0xff] %vm170_vm2, %v3746_v40  ;;  %v3470_v43 = vpack.c.bf16 %v8394_v42, %v8396_v0  ;;  %3393 = vrot.lane.b32.xlu1 %v5233_v35, %s6047_s29  ;;  %v5163_v40 = vld [vmem:[%s9939_s0 + $0x1a3] sm:$0xff] }
 0x2fb   :  { %3694 = vst.msk [vmem:[#allocation2 + $0x18] sm:$0xff] %vm61_vm0, %v5256_v63  ;;  %3693 = vst.msk [vmem:[#allocation2 + $0x10] sm:$0xff] %vm61_vm0, %v5255_v2  ;;  %3391 = vrot.lane.b32.xlu0 %v5232_v13, %s6047_s29  ;;  %v8482_v13 = vshrl.u32 %v2298_v32, 7 }
 0x2fc   :  { %v2742_v51 = vpop.permute.xlu1 %2741 }
 0x2fd   :  { %v2740_v52 = vpop.permute.xlu0 %2739  ;;  %2790 = vst.msk [vmem:[#allocation2 + $0x28] sm:$0xff] %vm279_vm3, %v2742_v51 }
 0x2fe   :  { %2789 = vst.msk [vmem:[#allocation2 + $0x20] sm:$0xff] %vm279_vm3, %v2740_v52  ;;  %4507 = vrot.lane.b32.xlu1 %v5400_v37, %s6047_s29  ;;  %v5162_v37 = vld [vmem:[%s9939_s0 + $0x19b] sm:$0xff] }
 0x2ff   :  { %4505 = vrot.lane.b32.xlu0 %v5399_v44, %s6047_s29  ;;  %v8495_v44 = vsub.s32 1, %v8482_v13 }
 0x300   :  { %v3856_v55 = vpop.permute.xlu1 %3855 }
 0x301   :  { %v3854_v57 = vpop.permute.xlu0 %3853  ;;  %3908 = vst.msk [vmem:[#allocation2 + $0x8] sm:$0xff] %vm279_vm3, %v3856_v55  ;;  %v5330_v55 = vld [vmem:[%s9939_s0 + $0x213] sm:$0xff] }
 0x302   :  { %3907 = vst.msk [vmem:[#allocation2] sm:$0xff] %vm279_vm3, %v3854_v57  ;;  %2641 = vrot.lane.b32.xlu1 %v5109_v53, %s6039_s26  ;;  %v8500_v53 = vld [vmem:[%s9942_s3 + $0x1] ss:$2 sm:$0x3]  ;;  %v5329_v57 = vld [vmem:[%s9939_s0 + $0x20b] sm:$0xff] }
 0x303   :  { %2639 = vrot.lane.b32.xlu0 %v5108_v54, %s6039_s26  ;;  %v2305_v54 = vrot.slane %v8500_v53, %v8495_v44 }
 0x304   :  { %v2850_v62 = vpop.permute.xlu1 %2849 }
 0x305   :  { %v2848_v61 = vpop.permute.xlu0 %2847  ;;  %2898 = vst.msk [vmem:[#allocation2 + $0x28] sm:$0xff] %vm388_vm4, %v2850_v62  ;;  %5080 = vmatprep.mubr.msk.f32.mxu0 %vm2307_vm10, %v2305_v54  ;;  %v5110_v54 = vld [vmem:[%s9939_s0 + $0x199] sm:$0xff] }
 0x306   :  { %2897 = vst.msk [vmem:[#allocation2 + $0x20] sm:$0xff] %vm388_vm4, %v2848_v61  ;;  %3755 = vrot.lane.b32.xlu1 %v5276_v58, %s6039_s26 }
 0x307   :  { %3753 = vrot.lane.b32.xlu0 %v5275_v59, %s6039_s26 }
 0x308   :  { %v3964_v7 = vpop.permute.xlu1 %3963 }
 0x309   :  { %v3962_v60 = vpop.permute.xlu0 %3961  ;;  %4016 = vst.msk [vmem:[#allocation2 + $0x8] sm:$0xff] %vm388_vm4, %v3964_v7 }
 0x30a   :  { %4015 = vst.msk [vmem:[#allocation2] sm:$0xff] %vm388_vm4, %v3962_v60  ;;  %2749 = vrot.lane.b32.xlu1 %v8242_v33, %s6038_s25 }
 0x30b   :  { %2747 = vrot.lane.b32.xlu0 %v8247_v34, %s6038_s25  ;;  %v1140_v10 = vpop.f32.mrb[28].mxu0 }
 0x30c   :  { %v5575_v12 = vpop.f32.mrb[29].mxu0  ;;  %v1141_v1 = vadd.f32 %v7841_v16, %v1140_v10  ;;  %v2958_v41 = vpop.permute.xlu1 %2957  ;;  %v8535_v10 = vld [vmem:[%s9939_s0 + $0x1b4] sm:$0xff] }
 0x30d   :  { %v2956_v17 = vpop.permute.xlu0 %2955  ;;  %3006 = vst.msk [vmem:[#allocation2 + $0x28] sm:$0xff] %vm497_vm5, %v2958_v41  ;;  %v1143_v18 = vpop.f32.mrb[30].mxu0 }
 0x30e   :  { %3005 = vst.msk [vmem:[#allocation2 + $0x20] sm:$0xff] %vm497_vm5, %v2956_v17  ;;  %v1144_v15 = vadd.f32 %v7841_v16, %v1143_v18  ;;  %v5576_v21 = vpop.f32.mrb[31].mxu0  ;;  %3863 = vrot.lane.b32.xlu1 %v8262_v48, %s6038_s25  ;;  %v1169_v24 = vmax.f32 %v1141_v1, 0.0  ;;  %v5217_v17 = vld [vmem:[%s9939_s0 + $0x1b5] sm:$0xff]  ;;  %v5216_v18 = vld [vmem:[%s9939_s0 + $0x1ad] sm:$0xff] }
 0x30f   :  { %3861 = vrot.lane.b32.xlu0 %v8267_v49, %s6038_s25  ;;  %v2246_v33 = vpop.f32.mrb[20].mxu1 }
 0x310   :  { %v5619_v34 = vpop.f32.mrb[21].mxu1  ;;  %v1170_v25 = vmax.f32 %v1144_v15, 0.0  ;;  %v2247_v27 = vadd.f32 %v7841_v16, %v2246_v33  ;;  %v4072_v48 = vpop.permute.xlu1 %4071  ;;  %v5258_v33 = vld [vmem:[%s9939_s0 + $0x200] sm:$0xff] }
 0x311   :  { %v4070_v28 = vpop.permute.xlu0 %4069  ;;  %4124 = vst.msk [vmem:[#allocation2 + $0x8] sm:$0xff] %vm497_vm5, %v4072_v48  ;;  %v2249_v49 = vpop.f32.mrb[22].mxu1  ;;  %v5257_v34 = vld [vmem:[%s9939_s0 + $0x1f8] sm:$0xff] }
 0x312   :  { %4123 = vst.msk [vmem:[#allocation2] sm:$0xff] %vm497_vm5, %v4070_v28  ;;  %v8463_v29 = vpack.c.bf16 %v1170_v25, %v1169_v24  ;;  %v2250_v50 = vadd.f32 %v7841_v16, %v2249_v49  ;;  %v5620_v47 = vpop.f32.mrb[23].mxu1  ;;  %2857 = vrot.lane.b32.xlu1 %v8453_v22, %s6041_s11  ;;  %v2287_v63 = vmax.f32 %v2247_v27, 0.0  ;;  %v5384_v24 = vld [vmem:[%s9939_s0 + $0x225] sm:$0xff]  ;;  %v5383_v25 = vld [vmem:[%s9939_s0 + $0x21d] sm:$0xff] }
 0x313   :  { %2855 = vrot.lane.b32.xlu0 %v8458_v23, %s6041_s11  ;;  %v5092_v47 = vld [vmem:[%s9939_s0 + $0x198] sm:$0xff] }
 0x314   :  { %v2288_v16 = vmax.f32 %v2250_v50, 0.0  ;;  %v3066_v2 = vpop.permute.xlu1 %3065  ;;  %v5093_v50 = vld [vmem:[%s9939_s0 + $0x1a0] sm:$0xff]  ;;  %2579 = vst.msk [vmem:[#allocation2 + $0x50] sm:$0xff] %vm61_vm0, %v5092_v47 }
 0x315   :  { %v3064_v35 = vpop.permute.xlu0 %3063  ;;  %3114 = vst.msk [vmem:[#allocation2 + $0x28] sm:$0xff] %vm606_vm6, %v3066_v2 }
 0x316   :  { %3113 = vst.msk [vmem:[#allocation2 + $0x20] sm:$0xff] %vm606_vm6, %v3064_v35  ;;  %v5823_v39 = vpack.c.bf16 %v2288_v16, %v2287_v63  ;;  %3971 = vrot.lane.b32.xlu1 %v8473_v30, %s6041_s11  ;;  %v5235_v63 = vld [vmem:[%s9939_s0 + $0x1b6] sm:$0xff]  ;;  %v5234_v16 = vld [vmem:[%s9939_s0 + $0x1ae] sm:$0xff] }
 0x317   :  { %3969 = vrot.lane.b32.xlu0 %v8478_v31, %s6041_s11  ;;  %2580 = vst.msk [vmem:[#allocation2 + $0x58] sm:$0xff] %vm61_vm0, %v5093_v50 }
 0x318   :  { %5824 = vmatpush1.bf16.msra.mxu0 %v5823_v39  ;;  %v4180_v51 = vpop.permute.xlu1 %4179  ;;  %v5402_v39 = vld [vmem:[%s9939_s0 + $0x226] sm:$0xff] }
 0x319   :  { %v4178_v52 = vpop.permute.xlu0 %4177  ;;  %4232 = vst.msk [vmem:[#allocation2 + $0x8] sm:$0xff] %vm606_vm6, %v4180_v51  ;;  %5825 = vmatprep.subr.bf16.mxu0 %v6048_v56 }
 0x31a   :  { %4231 = vst.msk [vmem:[#allocation2] sm:$0xff] %vm606_vm6, %v4178_v52  ;;  %2965 = vrot.lane.b32.xlu1 %v5163_v40, %s6042_s16  ;;  %v5401_v40 = vld [vmem:[%s9939_s0 + $0x21e] sm:$0xff] }
 0x31b   :  { %2963 = vrot.lane.b32.xlu0 %v5162_v37, %s6042_s16  ;;  %v5111_v52 = vld [vmem:[%s9939_s0 + $0x1a1] sm:$0xff] }
 0x31c   :  { %v3174_v58 = vpop.permute.xlu1 %3173 }
 0x31d   :  { %v3172_v59 = vpop.permute.xlu0 %3171  ;;  %3222 = vst.msk [vmem:[#allocation2 + $0x28] sm:$0xff] %vm715_vm7, %v3174_v58  ;;  %v5278_v58 = vld [vmem:[%s9939_s0 + $0x211] sm:$0xff] }
 0x31e   :  { %3221 = vst.msk [vmem:[#allocation2 + $0x20] sm:$0xff] %vm715_vm7, %v3172_v59  ;;  %4079 = vrot.lane.b32.xlu1 %v5330_v55, %s6042_s16  ;;  %v5277_v59 = vld [vmem:[%s9939_s0 + $0x209] sm:$0xff] }
 0x31f   :  { %4077 = vrot.lane.b32.xlu0 %v5329_v57, %s6042_s16 }
 0x320   :  { %v4288_v62 = vpop.permute.xlu1 %4287 }
 0x321   :  { %v4286_v61 = vpop.permute.xlu0 %4285  ;;  %4340 = vst.msk [vmem:[#allocation2 + $0x8] sm:$0xff] %vm715_vm7, %v4288_v62 }
 0x322   :  { %4339 = vst.msk [vmem:[#allocation2] sm:$0xff] %vm715_vm7, %v4286_v61  ;;  %3073 = vrot.lane.b32.xlu1 %v8325_v20, %s6043_s21  ;;  %v8540_v20 = vld [vmem:[%s9939_s0 + $0x1ac] sm:$0xff] }
 0x323   :  { %3071 = vrot.lane.b32.xlu0 %v8330_v11, %s6043_s21 }
 0x324   :  { %v3282_v7 = vpop.permute.xlu1 %3281 }
 0x325   :  { %v3280_v60 = vpop.permute.xlu0 %3279  ;;  %3330 = vst.msk [vmem:[#allocation2 + $0x28] sm:$0xff] %vm824_vm8, %v3282_v7 }
 0x326   :  { %3329 = vst.msk [vmem:[#allocation2 + $0x20] sm:$0xff] %vm824_vm8, %v3280_v60  ;;  %4187 = vrot.lane.b32.xlu1 %v8341_v45, %s6043_s21  ;;  %v8551_v45 = vld [vmem:[%s9939_s0 + $0x224] sm:$0xff] }
 0x327   :  { %4185 = vrot.lane.b32.xlu0 %v8346_v46, %s6043_s21  ;;  %v8556_v46 = vld [vmem:[%s9939_s0 + $0x21c] sm:$0xff] }
 0x328   :  { %v4396_v11 = vpop.permute.xlu1 %4395 }
 0x329   :  { %v4394_v12 = vpop.permute.xlu0 %4393  ;;  %4448 = vst.msk [vmem:[#allocation2 + $0x8] sm:$0xff] %vm824_vm8, %v4396_v11 }
 0x32a   :  { %4447 = vst.msk [vmem:[#allocation2] sm:$0xff] %vm824_vm8, %v4394_v12  ;;  %3181 = vrot.lane.b32.xlu1 %v8535_v10, %s6044_s8 }
 0x32b   :  { %3179 = vrot.lane.b32.xlu0 %v8540_v20, %s6044_s8 }
 0x32c   :  { %v3390_v1 = vpop.permute.xlu1 %3389 }
 0x32d   :  { %v3388_v41 = vpop.permute.xlu0 %3387  ;;  %3438 = vst.msk [vmem:[#allocation2 + $0x28] sm:$0xff] %vm933_vm9, %v3390_v1  ;;  %v8655_v1 = vld [vmem:[%s9941_s2] ss:$0 sm:$0xff] }
 0x32e   :  { %3437 = vst.msk [vmem:[#allocation2 + $0x20] sm:$0xff] %vm933_vm9, %v3388_v41  ;;  %4295 = vrot.lane.b32.xlu1 %v8551_v45, %s6044_s8 }
 0x32f   :  { %4293 = vrot.lane.b32.xlu0 %v8556_v46, %s6044_s8 }
 0x330   :  { %v4504_v15 = vpop.permute.xlu1 %4503 }
 0x331   :  { %v4502_v21 = vpop.permute.xlu0 %4501  ;;  %4556 = vst.msk [vmem:[#allocation2 + $0x8] sm:$0xff] %vm933_vm9, %v4504_v15 }
 0x332   :  { %4555 = vst.msk [vmem:[#allocation2] sm:$0xff] %vm933_vm9, %v4502_v21  ;;  %3289 = vrot.lane.b32.xlu1 %v5217_v17, %s6045_s19 }
 0x333   :  { %3287 = vrot.lane.b32.xlu0 %v5216_v18, %s6045_s19 }
 0x334   :  { %v2638_v27 = vpop.permute.xlu1 %2637  ;;  %v8586_v28 = vld [vmem:[#allocation2 + $0x28] sm:$0xff] }
 0x335   :  { %v2636_v48 = vpop.permute.xlu0 %2635  ;;  %v8588_v49 = vld [vmem:[#allocation2 + $0x20] sm:$0xff]  ;;  %2684 = vst.msk [vmem:[#allocation2 + $0x38] sm:$0xff] %vm170_vm2, %v2638_v27 }
 0x336   :  { %2683 = vst.msk [vmem:[#allocation2 + $0x30] sm:$0xff] %vm170_vm2, %v2636_v48  ;;  %v3471_v32 = vpack.c.bf16 %v8586_v28, %v8588_v49  ;;  %4403 = vrot.lane.b32.xlu1 %v5384_v24, %s6045_s19  ;;  %v8673_v24 = vld [vmem:[%s9939_s0 + $0x1aa] sm:$0xff] }
 0x337   :  { %3696 = vst.msk [vmem:[#allocation2 + $0x28] sm:$0xff] %vm61_vm0, %v5258_v33  ;;  %3695 = vst.msk [vmem:[#allocation2 + $0x20] sm:$0xff] %vm61_vm0, %v5257_v34  ;;  %4401 = vrot.lane.b32.xlu0 %v5383_v25, %s6045_s19  ;;  %v8668_v34 = vld [vmem:[%s9939_s0 + $0x1b2] sm:$0xff] }
 0x338   :  { %v3752_v2 = vpop.permute.xlu1 %3751 }
 0x339   :  { %v3750_v35 = vpop.permute.xlu0 %3749  ;;  %3802 = vst.msk [vmem:[#allocation2 + $0x18] sm:$0xff] %vm170_vm2, %v3752_v2  ;;  %v8688_v2 = vld [vmem:[%s9939_s0 + $0x222] sm:$0xff] }
 0x33a   :  { %3801 = vst.msk [vmem:[#allocation2 + $0x10] sm:$0xff] %vm170_vm2, %v3750_v35  ;;  %3397 = vrot.lane.b32.xlu1 %v5235_v63, %s6047_s29  ;;  %v8693_v35 = vld [vmem:[%s9939_s0 + $0x21a] sm:$0xff] }
 0x33b   :  { %3395 = vrot.lane.b32.xlu0 %v5234_v16, %s6047_s29 }
 0x33c   :  { %v2746_v37 = vpop.permute.xlu1 %2745 }
 0x33d   :  { %v2744_v51 = vpop.permute.xlu0 %2743  ;;  %2792 = vst.msk [vmem:[#allocation2 + $0x38] sm:$0xff] %vm279_vm3, %v2746_v37 }
 0x33e   :  { %2791 = vst.msk [vmem:[#allocation2 + $0x30] sm:$0xff] %vm279_vm3, %v2744_v51  ;;  %4511 = vrot.lane.b32.xlu1 %v5402_v39, %s6047_s29 }
 0x33f   :  { %4509 = vrot.lane.b32.xlu0 %v5401_v40, %s6047_s29 }
 0x340   :  { %v3860_v55 = vpop.permute.xlu1 %3859 }
 0x341   :  { %v3858_v57 = vpop.permute.xlu0 %3857  ;;  %3910 = vst.msk [vmem:[#allocation2 + $0x18] sm:$0xff] %vm279_vm3, %v3860_v55  ;;  %v5164_v55 = vld [vmem:[%s9939_s0 + $0x1ab] sm:$0xff] }
 0x342   :  { %3909 = vst.msk [vmem:[#allocation2 + $0x10] sm:$0xff] %vm279_vm3, %v3858_v57  ;;  %2645 = vrot.lane.b32.xlu1 %v5111_v52, %s6039_s26 }
 0x343   :  { %2643 = vrot.lane.b32.xlu0 %v5110_v54, %s6039_s26  ;;  %v5165_v54 = vld [vmem:[%s9939_s0 + $0x1b3] sm:$0xff] }
 0x344   :  { %v2854_v62 = vpop.permute.xlu1 %2853 }
 0x345   :  { %v2852_v61 = vpop.permute.xlu0 %2851  ;;  %2900 = vst.msk [vmem:[#allocation2 + $0x38] sm:$0xff] %vm388_vm4, %v2854_v62  ;;  %v5331_v62 = vld [vmem:[%s9939_s0 + $0x21b] sm:$0xff] }
 0x346   :  { %2899 = vst.msk [vmem:[#allocation2 + $0x30] sm:$0xff] %vm388_vm4, %v2852_v61  ;;  %3759 = vrot.lane.b32.xlu1 %v5278_v58, %s6039_s26 }
 0x347   :  { %3757 = vrot.lane.b32.xlu0 %v5277_v59, %s6039_s26  ;;  %v5332_v59 = vld [vmem:[%s9939_s0 + $0x223] sm:$0xff] }
 0x348   :  { %v3968_v7 = vpop.permute.xlu1 %3967 }
 0x349   :  { %v3966_v60 = vpop.permute.xlu0 %3965  ;;  %4018 = vst.msk [vmem:[#allocation2 + $0x18] sm:$0xff] %vm388_vm4, %v3968_v7 }
 0x34a   :  { %4017 = vst.msk [vmem:[#allocation2 + $0x10] sm:$0xff] %vm388_vm4, %v3966_v60  ;;  %2753 = vrot.lane.b32.xlu1 %v8453_v22, %s6038_s25 }
 0x34b   :  { %2751 = vrot.lane.b32.xlu0 %v8458_v23, %s6038_s25  ;;  %v1148_v11 = vpop.f32.mrb[32].mxu0 }
 0x34c   :  { %v5579_v12 = vpop.f32.mrb[33].mxu0  ;;  %v1149_v41 = vadd.f32 %v8655_v1, %v1148_v11  ;;  %v2962_v17 = vpop.permute.xlu1 %2961 }
 0x34d   :  { %v2960_v18 = vpop.permute.xlu0 %2959  ;;  %3008 = vst.msk [vmem:[#allocation2 + $0x38] sm:$0xff] %vm497_vm5, %v2962_v17  ;;  %v1151_v15 = vpop.f32.mrb[34].mxu0  ;;  %v8737_v17 = vld [vmem:[%s9939_s0 + $0x1c4] sm:$0xff] }
 0x34e   :  { %3007 = vst.msk [vmem:[#allocation2 + $0x30] sm:$0xff] %vm497_vm5, %v2960_v18  ;;  %v1152_v22 = vadd.f32 %v8655_v1, %v1151_v15  ;;  %v5580_v21 = vpop.f32.mrb[35].mxu0  ;;  %3867 = vrot.lane.b32.xlu1 %v8473_v30, %s6038_s25  ;;  %v1171_v25 = vmax.f32 %v1149_v41, 0.0 }
 0x34f   :  { %3865 = vrot.lane.b32.xlu0 %v8478_v31, %s6038_s25  ;;  %v2254_v23 = vpop.f32.mrb[24].mxu1 }
 0x350   :  { %v5623_v33 = vpop.f32.mrb[25].mxu1  ;;  %v1172_v27 = vmax.f32 %v1152_v22, 0.0  ;;  %v2255_v48 = vadd.f32 %v8655_v1, %v2254_v23  ;;  %v4076_v30 = vpop.permute.xlu1 %4075 }
 0x351   :  { %v4074_v50 = vpop.permute.xlu0 %4073  ;;  %4126 = vst.msk [vmem:[#allocation2 + $0x18] sm:$0xff] %vm497_vm5, %v4076_v30  ;;  %v2257_v31 = vpop.f32.mrb[26].mxu1  ;;  %v5219_v33 = vld [vmem:[%s9939_s0 + $0x1c5] sm:$0xff] }
 0x352   :  { %4125 = vst.msk [vmem:[#allocation2 + $0x10] sm:$0xff] %vm497_vm5, %v4074_v50  ;;  %v8678_v47 = vpack.c.bf16 %v1172_v27, %v1171_v25  ;;  %v2258_v63 = vadd.f32 %v8655_v1, %v2257_v31  ;;  %v5624_v16 = vpop.f32.mrb[27].mxu1  ;;  %2861 = vrot.lane.b32.xlu1 %v8668_v34, %s6041_s11  ;;  %v2289_v39 = vmax.f32 %v2255_v48, 0.0  ;;  %v5218_v25 = vld [vmem:[%s9939_s0 + $0x1bd] sm:$0xff]  ;;  %v5260_v31 = vld [vmem:[%s9939_s0 + $0x210] sm:$0xff] }
 0x353   :  { %2859 = vrot.lane.b32.xlu0 %v8673_v24, %s6041_s11 }
 0x354   :  { %v2290_v40 = vmax.f32 %v2258_v63, 0.0  ;;  %v3070_v37 = vpop.permute.xlu1 %3069 }
 0x355   :  { %v3068_v51 = vpop.permute.xlu0 %3067  ;;  %3116 = vst.msk [vmem:[#allocation2 + $0x38] sm:$0xff] %vm606_vm6, %v3070_v37  ;;  %v5386_v37 = vld [vmem:[%s9939_s0 + $0x235] sm:$0xff] }
 0x356   :  { %3115 = vst.msk [vmem:[#allocation2 + $0x30] sm:$0xff] %vm606_vm6, %v3068_v51  ;;  %v5826_v52 = vpack.c.bf16 %v2290_v40, %v2289_v39  ;;  %3975 = vrot.lane.b32.xlu1 %v8688_v2, %s6041_s11  ;;  %v5259_v39 = vld [vmem:[%s9939_s0 + $0x208] sm:$0xff]  ;;  %v5095_v40 = vld [vmem:[%s9939_s0 + $0x1b0] sm:$0xff] }
 0x357   :  { %3973 = vrot.lane.b32.xlu0 %v8693_v35, %s6041_s11  ;;  %v5385_v51 = vld [vmem:[%s9939_s0 + $0x22d] sm:$0xff]  ;;  %2582 = vst.msk [vmem:[#allocation2 + $0x68] sm:$0xff] %vm61_vm0, %v5095_v40 }
 0x358   :  { %5827 = vmatpush1.bf16.msra.mxu0 %v5826_v52  ;;  %v4184_v57 = vpop.permute.xlu1 %4183 }
 0x359   :  { %v4182_v58 = vpop.permute.xlu0 %4181  ;;  %4234 = vst.msk [vmem:[#allocation2 + $0x18] sm:$0xff] %vm606_vm6, %v4184_v57  ;;  %5828 = vmatprep.subr.bf16.mxu0 %v6048_v56 }
 0x35a   :  { %4233 = vst.msk [vmem:[#allocation2 + $0x10] sm:$0xff] %vm606_vm6, %v4182_v58  ;;  %2969 = vrot.lane.b32.xlu1 %v5165_v54, %s6042_s16 }
 0x35b   :  { %2967 = vrot.lane.b32.xlu0 %v5164_v55, %s6042_s16 }
 0x35c   :  { %v3178_v61 = vpop.permute.xlu1 %3177 }
 0x35d   :  { %v3176_v7 = vpop.permute.xlu0 %3175  ;;  %3224 = vst.msk [vmem:[#allocation2 + $0x38] sm:$0xff] %vm715_vm7, %v3178_v61 }
 0x35e   :  { %3223 = vst.msk [vmem:[#allocation2 + $0x30] sm:$0xff] %vm715_vm7, %v3176_v7  ;;  %4083 = vrot.lane.b32.xlu1 %v5332_v59, %s6042_s16 }
 0x35f   :  { %4081 = vrot.lane.b32.xlu0 %v5331_v62, %s6042_s16  ;;  %v5094_v62 = vld [vmem:[%s9939_s0 + $0x1a8] sm:$0xff] }
 0x360   :  { %v4292_v60 = vpop.permute.xlu1 %4291  ;;  %2581 = vst.msk [vmem:[#allocation2 + $0x60] sm:$0xff] %vm61_vm0, %v5094_v62  ;;  %v8889_v62 = vld [vmem:[%s9939_s0 + $0x22a] sm:$0xff] }
 0x361   :  { %v4290_v11 = vpop.permute.xlu0 %4289  ;;  %4342 = vst.msk [vmem:[#allocation2 + $0x18] sm:$0xff] %vm715_vm7, %v4292_v60  ;;  %v5237_v60 = vld [vmem:[%s9939_s0 + $0x1c6] sm:$0xff] }
 0x362   :  { %4341 = vst.msk [vmem:[#allocation2 + $0x10] sm:$0xff] %vm715_vm7, %v4290_v11  ;;  %3077 = vrot.lane.b32.xlu1 %v8535_v10, %s6043_s21  ;;  %v8742_v10 = vld [vmem:[%s9939_s0 + $0x1bc] sm:$0xff] }
 0x363   :  { %3075 = vrot.lane.b32.xlu0 %v8540_v20, %s6043_s21  ;;  %v5236_v11 = vld [vmem:[%s9939_s0 + $0x1be] sm:$0xff] }
 0x364   :  { %v3286_v12 = vpop.permute.xlu1 %3285 }
 0x365   :  { %v3284_v41 = vpop.permute.xlu0 %3283  ;;  %3332 = vst.msk [vmem:[#allocation2 + $0x38] sm:$0xff] %vm824_vm8, %v3286_v12 }
 0x366   :  { %3331 = vst.msk [vmem:[#allocation2 + $0x30] sm:$0xff] %vm824_vm8, %v3284_v41  ;;  %4191 = vrot.lane.b32.xlu1 %v8551_v45, %s6043_s21  ;;  %v8753_v45 = vld [vmem:[%s9939_s0 + $0x234] sm:$0xff] }
 0x367   :  { %4189 = vrot.lane.b32.xlu0 %v8556_v46, %s6043_s21  ;;  %v8758_v46 = vld [vmem:[%s9939_s0 + $0x22c] sm:$0xff] }
 0x368   :  { %v4400_v20 = vpop.permute.xlu1 %4399 }
 0x369   :  { %v4398_v18 = vpop.permute.xlu0 %4397  ;;  %4450 = vst.msk [vmem:[#allocation2 + $0x18] sm:$0xff] %vm824_vm8, %v4400_v20  ;;  %v5404_v20 = vld [vmem:[%s9939_s0 + $0x236] sm:$0xff] }
 0x36a   :  { %4449 = vst.msk [vmem:[#allocation2 + $0x10] sm:$0xff] %vm824_vm8, %v4398_v18  ;;  %3185 = vrot.lane.b32.xlu1 %v8737_v17, %s6044_s8  ;;  %v5403_v18 = vld [vmem:[%s9939_s0 + $0x22e] sm:$0xff] }
 0x36b   :  { %3183 = vrot.lane.b32.xlu0 %v8742_v10, %s6044_s8 }
 0x36c   :  { %v3394_v15 = vpop.permute.xlu1 %3393 }
 0x36d   :  { %v3392_v22 = vpop.permute.xlu0 %3391  ;;  %3440 = vst.msk [vmem:[#allocation2 + $0x38] sm:$0xff] %vm933_vm9, %v3394_v15 }
 0x36e   :  { %3439 = vst.msk [vmem:[#allocation2 + $0x30] sm:$0xff] %vm933_vm9, %v3392_v22  ;;  %4299 = vrot.lane.b32.xlu1 %v8753_v45, %s6044_s8 }
 0x36f   :  { %4297 = vrot.lane.b32.xlu0 %v8758_v46, %s6044_s8  ;;  %v2262_v21 = vpop.f32.mrb[28].mxu1 }
 0x370   :  { %v5627_v23 = vpop.f32.mrb[29].mxu1  ;;  %v2263_v27 = vadd.f32 %v8655_v1, %v2262_v21  ;;  %v4508_v48 = vpop.permute.xlu1 %4507  ;;  %v5113_v21 = vld [vmem:[%s9939_s0 + $0x1b1] sm:$0xff] }
 0x371   :  { %v4506_v30 = vpop.permute.xlu0 %4505  ;;  %4558 = vst.msk [vmem:[#allocation2 + $0x18] sm:$0xff] %vm933_vm9, %v4508_v48  ;;  %v2265_v50 = vpop.f32.mrb[30].mxu1  ;;  %v5112_v23 = vld [vmem:[%s9939_s0 + $0x1a9] sm:$0xff]  ;;  %v5279_v48 = vld [vmem:[%s9939_s0 + $0x219] sm:$0xff] }
 0x372   :  { %4557 = vst.msk [vmem:[#allocation2 + $0x10] sm:$0xff] %vm933_vm9, %v4506_v30  ;;  %v2266_v63 = vadd.f32 %v8655_v1, %v2265_v50  ;;  %v5628_v16 = vpop.f32.mrb[31].mxu1  ;;  %3293 = vrot.lane.b32.xlu1 %v5219_v33, %s6045_s19  ;;  %v2291_v52 = vmax.f32 %v2263_v27, 0.0  ;;  %v5280_v27 = vld [vmem:[%s9939_s0 + $0x221] sm:$0xff] }
 0x373   :  { %3291 = vrot.lane.b32.xlu0 %v5218_v25, %s6045_s19 }
 0x374   :  { %v2292_v54 = vmax.f32 %v2266_v63, 0.0  ;;  %v2642_v55 = vpop.permute.xlu1 %2641  ;;  %v8794_v58 = vld [vmem:[#allocation2 + $0x38] sm:$0xff] }
 0x375   :  { %v2640_v57 = vpop.permute.xlu0 %2639  ;;  %v8796_v59 = vld [vmem:[#allocation2 + $0x30] sm:$0xff]  ;;  %2686 = vst.msk [vmem:[#allocation2 + $0x48] sm:$0xff] %vm170_vm2, %v2642_v55 }
 0x376   :  { %2685 = vst.msk [vmem:[#allocation2 + $0x40] sm:$0xff] %vm170_vm2, %v2640_v57  ;;  %v3472_v61 = vpack.c.bf16 %v8794_v58, %v8796_v59  ;;  %v5829_v7 = vpack.c.bf16 %v2292_v54, %v2291_v52  ;;  %4407 = vrot.lane.b32.xlu1 %v5386_v37, %s6045_s19  ;;  %v8884_v57 = vld [vmem:[%s9939_s0 + $0x232] sm:$0xff] }
 0x377   :  { %3698 = vst.msk [vmem:[#allocation2 + $0x38] sm:$0xff] %vm61_vm0, %v5260_v31  ;;  %3697 = vst.msk [vmem:[#allocation2 + $0x30] sm:$0xff] %vm61_vm0, %v5259_v39  ;;  %4405 = vrot.lane.b32.xlu0 %v5385_v51, %s6045_s19 }
 0x378   :  { %5830 = vmatpush1.bf16.msra.mxu0 %v5829_v7  ;;  %v3756_v12 = vpop.permute.xlu1 %3755  ;;  %v8892_v7 = vsub.s32 0, %v8482_v13  ;;  %v5167_v13 = vld [vmem:[%s9939_s0 + $0x1c3] sm:$0xff] }
 0x379   :  { %v3754_v41 = vpop.permute.xlu0 %3753  ;;  %3804 = vst.msk [vmem:[#allocation2 + $0x28] sm:$0xff] %vm170_vm2, %v3756_v12  ;;  %5831 = vmatprep.subr.bf16.mxu0 %v6048_v56 }
 0x37a   :  { %3803 = vst.msk [vmem:[#allocation2 + $0x20] sm:$0xff] %vm170_vm2, %v3754_v41  ;;  %3401 = vrot.lane.b32.xlu1 %v5237_v60, %s6047_s29  ;;  %v8899_v41 = vld [vmem:[%s9942_s3] ss:$2 sm:$0x3] }
 0x37b   :  { %3399 = vrot.lane.b32.xlu0 %v5236_v11, %s6047_s29 }
 0x37c   :  { %v2750_v15 = vpop.permute.xlu1 %2749 }
 0x37d   :  { %v2748_v22 = vpop.permute.xlu0 %2747  ;;  %2794 = vst.msk [vmem:[#allocation2 + $0x48] sm:$0xff] %vm279_vm3, %v2750_v15  ;;  %v2301_v15 = vrot.slane %v8500_v53, %v8892_v7  ;;  %v5334_v53 = vld [vmem:[%s9939_s0 + $0x233] sm:$0xff] }
 0x37e   :  { %2793 = vst.msk [vmem:[#allocation2 + $0x40] sm:$0xff] %vm279_vm3, %v2748_v22  ;;  %4515 = vrot.lane.b32.xlu1 %v5404_v20, %s6047_s29 }
 0x37f   :  { %4513 = vrot.lane.b32.xlu0 %v5403_v18, %s6047_s29  ;;  %v5166_v18 = vld [vmem:[%s9939_s0 + $0x1bb] sm:$0xff] }
 0x380   :  { %v3864_v33 = vpop.permute.xlu1 %3863 }
 0x381   :  { %v3862_v25 = vpop.permute.xlu0 %3861  ;;  %3912 = vst.msk [vmem:[#allocation2 + $0x28] sm:$0xff] %vm279_vm3, %v3864_v33  ;;  %v5333_v33 = vld [vmem:[%s9939_s0 + $0x22b] sm:$0xff] }
 0x382   :  { %3911 = vst.msk [vmem:[#allocation2 + $0x20] sm:$0xff] %vm279_vm3, %v3862_v25  ;;  %2649 = vrot.lane.b32.xlu1 %v5113_v21, %s6039_s26 }
 0x383   :  { %2647 = vrot.lane.b32.xlu0 %v5112_v23, %s6039_s26  ;;  %v2388_v23 = vrot.slane %v8899_v41, %v8495_v44 }
 0x384   :  { %v2858_v30 = vpop.permute.xlu1 %2857 }
 0x385   :  { %v2856_v50 = vpop.permute.xlu0 %2855  ;;  %2902 = vst.msk [vmem:[#allocation2 + $0x48] sm:$0xff] %vm388_vm4, %v2858_v30 }
 0x386   :  { %2901 = vst.msk [vmem:[#allocation2 + $0x40] sm:$0xff] %vm388_vm4, %v2856_v50  ;;  %3763 = vrot.lane.b32.xlu1 %v5280_v27, %s6039_s26 }
 0x387   :  { %3761 = vrot.lane.b32.xlu0 %v5279_v48, %s6039_s26 }
 0x388   :  { %v3972_v31 = vpop.permute.xlu1 %3971 }
 0x389   :  { %v3970_v63 = vpop.permute.xlu0 %3969  ;;  %4020 = vst.msk [vmem:[#allocation2 + $0x28] sm:$0xff] %vm388_vm4, %v3972_v31 }
 0x38a   :  { %4019 = vst.msk [vmem:[#allocation2 + $0x20] sm:$0xff] %vm388_vm4, %v3970_v63  ;;  %2757 = vrot.lane.b32.xlu1 %v8668_v34, %s6038_s25  ;;  %v8866_v34 = vld [vmem:[%s9939_s0 + $0x1c2] sm:$0xff]  ;;  %v5221_v63 = vld [vmem:[%s9939_s0 + $0x1d5] sm:$0xff] }
 0x38b   :  { %2755 = vrot.lane.b32.xlu0 %v8673_v24, %s6038_s25  ;;  %v8871_v24 = vld [vmem:[%s9939_s0 + $0x1ba] sm:$0xff] }
 0x38c   :  { %v2966_v16 = vpop.permute.xlu1 %2965 }
 0x38d   :  { %v2964_v39 = vpop.permute.xlu0 %2963  ;;  %3010 = vst.msk [vmem:[#allocation2 + $0x48] sm:$0xff] %vm497_vm5, %v2966_v16 }
 0x38e   :  { %3009 = vst.msk [vmem:[#allocation2 + $0x40] sm:$0xff] %vm497_vm5, %v2964_v39  ;;  %3871 = vrot.lane.b32.xlu1 %v8688_v2, %s6038_s25 }
 0x38f   :  { %3869 = vrot.lane.b32.xlu0 %v8693_v35, %s6038_s25  ;;  %v2270_v40 = vpop.f32.mrb[32].mxu1 }
 0x390   :  { %v5631_v37 = vpop.f32.mrb[33].mxu1  ;;  %v2271_v51 = vadd.f32 %v8655_v1, %v2270_v40  ;;  %v4080_v52 = vpop.permute.xlu1 %4079  ;;  %v5262_v40 = vld [vmem:[%s9939_s0 + $0x220] sm:$0xff] }
 0x391   :  { %v4078_v54 = vpop.permute.xlu0 %4077  ;;  %4128 = vst.msk [vmem:[#allocation2 + $0x28] sm:$0xff] %vm497_vm5, %v4080_v52  ;;  %v2273_v2 = vpop.f32.mrb[34].mxu1  ;;  %v5097_v37 = vld [vmem:[%s9939_s0 + $0x1c0] sm:$0xff] }
 0x392   :  { %4127 = vst.msk [vmem:[#allocation2 + $0x20] sm:$0xff] %vm497_vm5, %v4078_v54  ;;  %v2274_v35 = vadd.f32 %v8655_v1, %v2273_v2  ;;  %v5632_v55 = vpop.f32.mrb[35].mxu1  ;;  %2865 = vrot.lane.b32.xlu1 %v8866_v34, %s6041_s11  ;;  %v2293_v1 = vmax.f32 %v2271_v51, 0.0  ;;  %v5388_v51 = vld [vmem:[%s9939_s0 + $0x245] sm:$0xff]  ;;  %v5387_v52 = vld [vmem:[%s9939_s0 + $0x23d] sm:$0xff] }
 0x393   :  { %2863 = vrot.lane.b32.xlu0 %v8871_v24, %s6041_s11  ;;  %2584 = vst.msk [vmem:[#allocation2 + $0x78] sm:$0xff] %vm61_vm0, %v5097_v37  ;;  %v6001_v37 = vld [vmem:[%s9940_s1 + $0x30] sm:$0xff]  }
 0x394   :  { %v2294_v60 = vmax.f32 %v2274_v35, 0.0  ;;  %v3074_v11 = vpop.permute.xlu1 %3073 }
 0x395   :  { %v3072_v12 = vpop.permute.xlu0 %3071  ;;  %3118 = vst.msk [vmem:[#allocation2 + $0x48] sm:$0xff] %vm606_vm6, %v3074_v11  ;;  %v5238_v11 = vld [vmem:[%s9939_s0 + $0x1ce] sm:$0xff] }
 0x396   :  { %3117 = vst.msk [vmem:[#allocation2 + $0x40] sm:$0xff] %vm606_vm6, %v3072_v12  ;;  %v5832_v20 = vpack.c.bf16 %v2294_v60, %v2293_v1  ;;  %3979 = vrot.lane.b32.xlu1 %v8884_v57, %s6041_s11  ;;  %v5096_v1 = vld [vmem:[%s9939_s0 + $0x1b8] sm:$0xff] }
 0x397   :  { %3977 = vrot.lane.b32.xlu0 %v8889_v62, %s6041_s11  ;;  %2583 = vst.msk [vmem:[#allocation2 + $0x70] sm:$0xff] %vm61_vm0, %v5096_v1  ;;  %v5239_v60 = vld [vmem:[%s9939_s0 + $0x1d6] sm:$0xff] }
 0x398   :  { %5833 = vmatpush1.bf16.msra.mxu0 %v5832_v20  ;;  %v4188_v22 = vpop.permute.xlu1 %4187  ;;  %v6002_v1 = vld [vmem:[%s9940_s1 + $0x38] sm:$0xff]  }
 0x399   :  { %v4186_v21 = vpop.permute.xlu0 %4185  ;;  %4236 = vst.msk [vmem:[#allocation2 + $0x28] sm:$0xff] %vm606_vm6, %v4188_v22  ;;  %5834 = vmatprep.subr.bf16.mxu0 %v6048_v56 }
 0x39a   :  { %4235 = vst.msk [vmem:[#allocation2 + $0x20] sm:$0xff] %vm606_vm6, %v4186_v21  ;;  %2973 = vrot.lane.b32.xlu1 %v5167_v13, %s6042_s16  ;;  %v5406_v13 = vld [vmem:[%s9939_s0 + $0x246] sm:$0xff] }
 0x39b   :  { %2971 = vrot.lane.b32.xlu0 %v5166_v18, %s6042_s16  ;;  %2375 = vmatmul.mubr.f32.vlgmr.msra.gmra.mrb[36].mxu0 %v2301_v15  ;;  %v2384_v18 = vrot.slane %v8899_v41, %v8892_v7  ;;  %v5995_v21 = vld [vmem:[%s9940_s1] sm:$0xff]  }
 0x39c   :  { %5836 = vmatpush1.bf16.msra.mxu0 %v7217_v38  ;;  %v3182_v25 = vpop.permute.xlu1 %3181  ;;  %5081 = vmatprep.mubr.msk.f32.mxu0 %vm2307_vm10, %v2388_v23  ;;  %v5114_v41 = vld [vmem:[%s9939_s0 + $0x1b9] sm:$0xff] }
 0x39d   :  { %v3180_v27 = vpop.permute.xlu0 %3179  ;;  %3226 = vst.msk [vmem:[#allocation2 + $0x48] sm:$0xff] %vm715_vm7, %v3182_v25  ;;  %5837 = vmatprep.subr.bf16.mxu0 %v6048_v56  ;;  %v5282_v25 = vld [vmem:[%s9939_s0 + $0x231] sm:$0xff] }
 0x39e   :  { %3225 = vst.msk [vmem:[#allocation2 + $0x40] sm:$0xff] %vm715_vm7, %v3180_v27  ;;  %4087 = vrot.lane.b32.xlu1 %v5334_v53, %s6042_s16  ;;  %v5281_v27 = vld [vmem:[%s9939_s0 + $0x229] sm:$0xff] }
 0x39f   :  { %4085 = vrot.lane.b32.xlu0 %v5333_v33, %s6042_s16  ;;  %v5996_v33 = vld [vmem:[%s9940_s1 + $0x8] sm:$0xff]  }
 0x3a0   :  { %5839 = vmatpush1.bf16.msra.mxu0 %v7308_v19  ;;  %v4296_v48 = vpop.permute.xlu1 %4295  ;;  %v8952_v19 = vld [vmem:[%s9939_s0 + $0x1d4] sm:$0xff] }
 0x3a1   :  { %v4294_v30 = vpop.permute.xlu0 %4293  ;;  %4344 = vst.msk [vmem:[#allocation2 + $0x28] sm:$0xff] %vm715_vm7, %v4296_v48  ;;  %5840 = vmatprep.subr.bf16.mxu0 %v6048_v56 }
 0x3a2   :  { %4343 = vst.msk [vmem:[#allocation2 + $0x20] sm:$0xff] %vm715_vm7, %v4294_v30  ;;  %3081 = vrot.lane.b32.xlu1 %v8737_v17, %s6043_s21 }
 0x3a3   :  { %3079 = vrot.lane.b32.xlu0 %v8742_v10, %s6043_s21 }
 0x3a4   :  { %5842 = vmatpush1.bf16.msra.mxu0 %v7481_v14  ;;  %v3290_v38 = vpop.permute.xlu1 %3289  ;;  %v8957_v14 = vld [vmem:[%s9939_s0 + $0x1cc] sm:$0xff] }
 0x3a5   :  { %v3288_v50 = vpop.permute.xlu0 %3287  ;;  %3334 = vst.msk [vmem:[#allocation2 + $0x48] sm:$0xff] %vm824_vm8, %v3290_v38  ;;  %5843 = vmatprep.subr.bf16.mxu0 %v6048_v56  ;;  %v5997_v38 = vld [vmem:[%s9940_s1 + $0x10] sm:$0xff]  }
 0x3a6   :  { %3333 = vst.msk [vmem:[#allocation2 + $0x40] sm:$0xff] %vm824_vm8, %v3288_v50  ;;  %4195 = vrot.lane.b32.xlu1 %v8753_v45, %s6043_s21  ;;  %v8970_v45 = vld [vmem:[%s9939_s0 + $0x244] sm:$0xff] }
 0x3a7   :  { %4193 = vrot.lane.b32.xlu0 %v8758_v46, %s6043_s21 }
 0x3a8   :  { %5845 = vmatpush1.bf16.msra.mxu0 %v7660_v8  ;;  %v4404_v17 = vpop.permute.xlu1 %4403  ;;  %v8975_v8 = vld [vmem:[%s9939_s0 + $0x23c] sm:$0xff] }
 0x3a9   :  { %v4402_v10 = vpop.permute.xlu0 %4401  ;;  %4452 = vst.msk [vmem:[#allocation2 + $0x28] sm:$0xff] %vm824_vm8, %v4404_v17  ;;  %5846 = vmatprep.subr.bf16.mxu0 %v6048_v56 }
 0x3aa   :  { %4451 = vst.msk [vmem:[#allocation2 + $0x20] sm:$0xff] %vm824_vm8, %v4402_v10  ;;  %3189 = vrot.lane.b32.xlu1 %v8952_v19, %s6044_s8  ;;  %v5998_v10 = vld [vmem:[%s9940_s1 + $0x18] sm:$0xff]  }
 0x3ab   :  { %3187 = vrot.lane.b32.xlu0 %v8957_v14, %s6044_s8 }
 0x3ac   :  { %5848 = vmatpush1.bf16.msra.mxu0 %v7858_v3  ;;  %v3398_v46 = vpop.permute.xlu1 %3397  ;;  %v5220_v3 = vld [vmem:[%s9939_s0 + $0x1cd] sm:$0xff] }
 0x3ad   :  { %v3396_v31 = vpop.permute.xlu0 %3395  ;;  %3442 = vst.msk [vmem:[#allocation2 + $0x48] sm:$0xff] %vm933_vm9, %v3398_v46  ;;  %5849 = vmatprep.subr.bf16.mxu0 %v6048_v56 }
 0x3ae   :  { %3441 = vst.msk [vmem:[#allocation2 + $0x40] sm:$0xff] %vm933_vm9, %v3396_v31  ;;  %4303 = vrot.lane.b32.xlu1 %v8970_v45, %s6044_s8 }
 0x3af   :  { %4301 = vrot.lane.b32.xlu0 %v8975_v8, %s6044_s8 }
 0x3b0   :  { %5851 = vmatpush1.bf16.msra.mxu0 %v8061_v9  ;;  %v4512_v16 = vpop.permute.xlu1 %4511  ;;  %v5261_v9 = vld [vmem:[%s9939_s0 + $0x218] sm:$0xff] }
 0x3b1   :  { %v4510_v39 = vpop.permute.xlu0 %4509  ;;  %4560 = vst.msk [vmem:[#allocation2 + $0x28] sm:$0xff] %vm933_vm9, %v4512_v16  ;;  %5852 = vmatprep.subr.bf16.mxu0 %v6048_v56 }
 0x3b2   :  { %4559 = vst.msk [vmem:[#allocation2 + $0x20] sm:$0xff] %vm933_vm9, %v4510_v39  ;;  %3297 = vrot.lane.b32.xlu1 %v5221_v63, %s6045_s19  ;;  %v5999_v63 = vld [vmem:[%s9940_s1 + $0x20] sm:$0xff]  }
 0x3b3   :  { %3295 = vrot.lane.b32.xlu0 %v5220_v3, %s6045_s19  ;;  %v9138_v39 = vld [vmem:[%s9939_s0 + $0x23a] sm:$0xff] }
 0x3b4   :  { %5854 = vmatpush1.bf16.msra.mxu0 %v8252_v36  ;;  %v2646_v54 = vpop.permute.xlu1 %2645  ;;  %v9014_v35 = vld [vmem:[#allocation2 + $0x48] sm:$0xff] }
 0x3b5   :  { %v2644_v2 = vpop.permute.xlu0 %2643  ;;  %v9016_v55 = vld [vmem:[#allocation2 + $0x40] sm:$0xff]  ;;  %2688 = vst.msk [vmem:[#allocation2 + $0x58] sm:$0xff] %vm170_vm2, %v2646_v54  ;;  %5855 = vmatprep.subr.bf16.mxu0 %v6048_v56 }
 0x3b6   :  { %2687 = vst.msk [vmem:[#allocation2 + $0x50] sm:$0xff] %vm170_vm2, %v2644_v2  ;;  %v3473_v36 = vpack.c.bf16 %v9014_v35, %v9016_v55  ;;  %4411 = vrot.lane.b32.xlu1 %v5388_v51, %s6045_s19  ;;  %v5169_v51 = vld [vmem:[%s9939_s0 + $0x1d3] sm:$0xff] }
 0x3b7   :  { %3700 = vst.msk [vmem:[#allocation2 + $0x48] sm:$0xff] %vm61_vm0, %v5262_v40  ;;  %3699 = vst.msk [vmem:[#allocation2 + $0x40] sm:$0xff] %vm61_vm0, %v5261_v9  ;;  %4409 = vrot.lane.b32.xlu0 %v5387_v52, %s6045_s19  ;;  %v5168_v52 = vld [vmem:[%s9939_s0 + $0x1cb] sm:$0xff] }
 0x3b8   :  { %5857 = vmatpush1.bf16.msra.mxu0 %v8463_v29  ;;  %v3760_v12 = vpop.permute.xlu1 %3759  ;;  %v5405_v29 = vld [vmem:[%s9939_s0 + $0x23e] sm:$0xff] }
 0x3b9   :  { %v3758_v20 = vpop.permute.xlu0 %3757  ;;  %3806 = vst.msk [vmem:[#allocation2 + $0x38] sm:$0xff] %vm170_vm2, %v3760_v12  ;;  %5858 = vmatprep.subr.bf16.mxu0 %v6048_v56  ;;  %v5336_v12 = vld [vmem:[%s9939_s0 + $0x243] sm:$0xff] }
 0x3ba   :  { %3805 = vst.msk [vmem:[#allocation2 + $0x30] sm:$0xff] %vm170_vm2, %v3758_v20  ;;  %3405 = vrot.lane.b32.xlu1 %v5239_v60, %s6047_s29  ;;  %v4573_v60 = vld [vmem:[#allocation2] sm:$0xff] }
 0x3bb   :  { %3403 = vrot.lane.b32.xlu0 %v5238_v11, %s6047_s29  ;;  %v4574_v11 = vld [vmem:[#allocation2 + $0x8] sm:$0xff]  ;;  %v5335_v20 = vld [vmem:[%s9939_s0 + $0x23b] sm:$0xff] }
 0x3bc   :  { %5860 = vmatpush1.bf16.msra.mxu0 %v8678_v47  ;;  %v2754_v15 = vpop.permute.xlu1 %2753  ;;  %v5115_v47 = vld [vmem:[%s9939_s0 + $0x1c1] sm:$0xff] }
 0x3bd   :  { %v2752_v22 = vpop.permute.xlu0 %2751  ;;  %2796 = vst.msk [vmem:[#allocation2 + $0x58] sm:$0xff] %vm279_vm3, %v2754_v15  ;;  %5720 = vmatprep.subr.bf16.mxu0 %v6839_v26 }
 0x3be   :  { %2795 = vst.msk [vmem:[#allocation2 + $0x50] sm:$0xff] %vm279_vm3, %v2752_v22  ;;  %4519 = vrot.lane.b32.xlu1 %v5406_v13, %s6047_s29 }
 0x3bf   :  { %4517 = vrot.lane.b32.xlu0 %v5405_v29, %s6047_s29  ;;  %2457 = vmatmul.mubr.f32.vlgmr.msra.gmra.mrb[36].mxu0 %v2384_v18  ;;  %v4591_v18 = vpack.c.bf16 %v4574_v11, %v4573_v60  ;;  %v5098_v60 = vld [vmem:[%s9939_s0 + $0x1c8] sm:$0xff]  ;;  %v2464_v11 = vld [vmem:[%s9943_s4 + $0x10] sm:$0xff] }
 0x3c0   :  { %5721 = vmatpush3.bf16.msra.mxu0 %v5995_v21  ;;  %v3868_v23 = vpop.permute.xlu1 %3867  ;;  %5736 = vmatprep.mubr.msk.bf16.mxu0 %vm6046_vm1, %v6839_v26  ;;  %v4575_v21 = vld [vmem:[#allocation2 + $0x10] sm:$0xff]  ;;  %2585 = vst.msk [vmem:[#allocation2 + $0x80] sm:$0xff] %vm61_vm0, %v5098_v60 }
 0x3c1   :  { %v3866_v53 = vpop.permute.xlu0 %3865  ;;  %3914 = vst.msk [vmem:[#allocation2 + $0x38] sm:$0xff] %vm279_vm3, %v3868_v23  ;;  %5722 = vmatprep.subr.bf16.mxu0 %v6839_v26 }
 0x3c2   :  { %3913 = vst.msk [vmem:[#allocation2 + $0x30] sm:$0xff] %vm279_vm3, %v3866_v53  ;;  %2653 = vrot.lane.b32.xlu1 %v5115_v47, %s6039_s26  ;;  %v4576_v47 = vld [vmem:[#allocation2 + $0x18] sm:$0xff] }
 0x3c3   :  { %2651 = vrot.lane.b32.xlu0 %v5114_v41, %s6039_s26  ;;  %v4592_v53 = vpack.c.bf16 %v4576_v47, %v4575_v21 }
 0x3c4   :  { %5723 = vmatpush3.bf16.msra.mxu0 %v5996_v33  ;;  %v2862_v48 = vpop.permute.xlu1 %2861 }
 0x3c5   :  { %v2860_v30 = vpop.permute.xlu0 %2859  ;;  %2904 = vst.msk [vmem:[#allocation2 + $0x58] sm:$0xff] %vm388_vm4, %v2862_v48  ;;  %5724 = vmatprep.subr.bf16.mxu0 %v6839_v26  ;;  %v9215_v48 = vld [vmem:[%s9939_s0 + $0x24c] sm:$0xff] }
 0x3c6   :  { %2903 = vst.msk [vmem:[#allocation2 + $0x50] sm:$0xff] %vm388_vm4, %v2860_v30  ;;  %3767 = vrot.lane.b32.xlu1 %v5282_v25, %s6039_s26 }
 0x3c7   :  { %3765 = vrot.lane.b32.xlu0 %v5281_v27, %s6039_s26  ;;  %v9210_v27 = vld [vmem:[%s9939_s0 + $0x254] sm:$0xff] }
 0x3c8   :  { %5725 = vmatpush3.bf16.msra.mxu0 %v5997_v38  ;;  %v3976_v50 = vpop.permute.xlu1 %3975 }
 0x3c9   :  { %v3974_v17 = vpop.permute.xlu0 %3973  ;;  %4022 = vst.msk [vmem:[#allocation2 + $0x38] sm:$0xff] %vm388_vm4, %v3976_v50  ;;  %5726 = vmatprep.subr.bf16.mxu0 %v6839_v26 }
 0x3ca   :  { %4021 = vst.msk [vmem:[#allocation2 + $0x30] sm:$0xff] %vm388_vm4, %v3974_v17  ;;  %2761 = vrot.lane.b32.xlu1 %v8866_v34, %s6038_s25  ;;  %v9113_v34 = vld [vmem:[%s9939_s0 + $0x1d2] sm:$0xff]  ;;  %v5223_v17 = vld [vmem:[%s9939_s0 + $0x1e5] sm:$0xff] }
 0x3cb   :  { %2759 = vrot.lane.b32.xlu0 %v8871_v24, %s6038_s25  ;;  %v9118_v24 = vld [vmem:[%s9939_s0 + $0x1ca] sm:$0xff] }
 0x3cc   :  { %5727 = vmatpush3.bf16.msra.mxu0 %v5998_v10  ;;  %v2970_v46 = vpop.permute.xlu1 %2969  ;;  %v5222_v10 = vld [vmem:[%s9939_s0 + $0x1dd] sm:$0xff] }
 0x3cd   :  { %v2968_v31 = vpop.permute.xlu0 %2967  ;;  %3012 = vst.msk [vmem:[#allocation2 + $0x58] sm:$0xff] %vm497_vm5, %v2970_v46  ;;  %5728 = vmatprep.subr.bf16.mxu0 %v6839_v26 }
 0x3ce   :  { %3011 = vst.msk [vmem:[#allocation2 + $0x50] sm:$0xff] %vm497_vm5, %v2968_v31  ;;  %3875 = vrot.lane.b32.xlu1 %v8884_v57, %s6038_s25  ;;  %v6000_v57 = vld [vmem:[%s9940_s1 + $0x28] sm:$0xff]  }
 0x3cf   :  { %3873 = vrot.lane.b32.xlu0 %v8889_v62, %s6038_s25  ;;  %v9133_v62 = vld [vmem:[%s9939_s0 + $0x242] sm:$0xff] }
 0x3d0   :  { %5729 = vmatpush3.bf16.msra.mxu0 %v5999_v63  ;;  %v4084_v3 = vpop.permute.xlu1 %4083  ;;  %v2462_v63 = vld [vmem:[%s9943_s4] sm:$0xff] }
 0x3d1   :  { %v4082_v16 = vpop.permute.xlu0 %4081  ;;  %4130 = vst.msk [vmem:[#allocation2 + $0x38] sm:$0xff] %vm497_vm5, %v4084_v3  ;;  %5730 = vmatprep.subr.bf16.mxu0 %v6839_v26  ;;  %v2463_v3 = vld [vmem:[%s9943_s4 + $0x8] sm:$0xff] }
 0x3d2   :  { %4129 = vst.msk [vmem:[#allocation2 + $0x30] sm:$0xff] %vm497_vm5, %v4082_v16  ;;  %2869 = vrot.lane.b32.xlu1 %v9113_v34, %s6041_s11  ;;  %v5264_v16 = vld [vmem:[%s9939_s0 + $0x230] sm:$0xff] }
 0x3d3   :  { %2867 = vrot.lane.b32.xlu0 %v9118_v24, %s6041_s11 }
 0x3d4   :  { %5731 = vmatpush3.bf16.msra.mxu0 %v6000_v57  ;;  %v3078_v40 = vpop.permute.xlu1 %3077  ;;  %v5862_v57 = vpack.c.bf16 %v2463_v3, %v2462_v63  ;;  %v2470_v3 = vld [vmem:[%s9943_s4 + $0x40] sm:$0xff] }
 0x3d5   :  { %v3076_v9 = vpop.permute.xlu0 %3075  ;;  %3120 = vst.msk [vmem:[#allocation2 + $0x58] sm:$0xff] %vm606_vm6, %v3078_v40  ;;  %5732 = vmatprep.subr.bf16.mxu0 %v6839_v26  ;;  %v5263_v40 = vld [vmem:[%s9939_s0 + $0x228] sm:$0xff] }
 0x3d6   :  { %3119 = vst.msk [vmem:[#allocation2 + $0x50] sm:$0xff] %vm606_vm6, %v3076_v9  ;;  %3983 = vrot.lane.b32.xlu1 %v9133_v62, %s6041_s11  ;;  %v5099_v9 = vld [vmem:[%s9939_s0 + $0x1d0] sm:$0xff]  ;;  %5863 = vmatpush3.bf16.msra.mxu1 %v5862_v57 }
 0x3d7   :  { %3981 = vrot.lane.b32.xlu0 %v9138_v39, %s6041_s11  ;;  %2586 = vst.msk [vmem:[#allocation2 + $0x88] sm:$0xff] %vm61_vm0, %v5099_v9  ;;  %5864 = vmatprep.subr.bf16.mxu1 %v6048_v56  ;;  %v5283_v9 = vld [vmem:[%s9939_s0 + $0x239] sm:$0xff] }
 0x3d8   :  { %5733 = vmatpush3.bf16.msra.mxu0 %v6001_v37  ;;  %v4192_v54 = vpop.permute.xlu1 %4191  ;;  %v5390_v37 = vld [vmem:[%s9939_s0 + $0x255] sm:$0xff] }
 0x3d9   :  { %v4190_v2 = vpop.permute.xlu0 %4189  ;;  %4238 = vst.msk [vmem:[#allocation2 + $0x38] sm:$0xff] %vm606_vm6, %v4192_v54  ;;  %5734 = vmatprep.subr.bf16.mxu0 %v6839_v26 }
 0x3da   :  { %4237 = vst.msk [vmem:[#allocation2 + $0x30] sm:$0xff] %vm606_vm6, %v4190_v2  ;;  %2977 = vrot.lane.b32.xlu1 %v5169_v51, %s6042_s16  ;;  %v5389_v51 = vld [vmem:[%s9939_s0 + $0x24d] sm:$0xff] }
 0x3db   :  { %2975 = vrot.lane.b32.xlu0 %v5168_v52, %s6042_s16 }
 0x3dc   :  { %5735 = vmatpush3.bf16.msra.mxu0 %v6002_v1  ;;  %v3186_v13 = vpop.permute.xlu1 %3185 }
 0x3dd   :  { %v3184_v29 = vpop.permute.xlu0 %3183  ;;  %3228 = vst.msk [vmem:[#allocation2 + $0x58] sm:$0xff] %vm715_vm7, %v3186_v13  ;;  %5939 = vmatprep.subr.bf16.mxu0 %v6048_v56 }
 0x3de   :  { %3227 = vst.msk [vmem:[#allocation2 + $0x50] sm:$0xff] %vm715_vm7, %v3184_v29  ;;  %4091 = vrot.lane.b32.xlu1 %v5336_v12, %s6042_s16  ;;  %v2465_v12 = vld [vmem:[%s9943_s4 + $0x18] sm:$0xff]  ;;  %v5241_v29 = vld [vmem:[%s9939_s0 + $0x1e6] sm:$0xff] }
 0x3df   :  { %4089 = vrot.lane.b32.xlu0 %v5335_v20, %s6042_s16  ;;  %5737 = vmatmul.mubr.bf16.vlgmr.msra.gmra.mrb[40].mxu0 %v4591_v18  ;;  %v5865_v13 = vpack.c.bf16 %v2465_v12, %v2464_v11  ;;  %v5240_v18 = vld [vmem:[%s9939_s0 + $0x1de] sm:$0xff] }
 0x3e0   :  { %v4300_v15 = vpop.permute.xlu1 %4299  ;;  %5740 = vmatprep.mubr.msk.bf16.mxu0 %vm6046_vm1, %v6839_v26  ;;  %5941 = vmatpush3.bf16.msra.mxu0 %v5862_v57 }
 0x3e1   :  { %v4298_v22 = vpop.permute.xlu0 %4297  ;;  %4346 = vst.msk [vmem:[#allocation2 + $0x38] sm:$0xff] %vm715_vm7, %v4300_v15  ;;  %5942 = vmatprep.subr.bf16.mxu0 %v6048_v56  ;;  %5866 = vmatpush3.bf16.msra.mxu1 %v5865_v13 }
 0x3e2   :  { %4345 = vst.msk [vmem:[#allocation2 + $0x30] sm:$0xff] %vm715_vm7, %v4298_v22  ;;  %3085 = vrot.lane.b32.xlu1 %v8952_v19, %s6043_s21  ;;  %v9192_v19 = vld [vmem:[%s9939_s0 + $0x1e4] sm:$0xff]  ;;  %5867 = vmatprep.subr.bf16.mxu1 %v6048_v56 }
 0x3e3   :  { %3083 = vrot.lane.b32.xlu0 %v8957_v14, %s6043_s21  ;;  %v9197_v14 = vld [vmem:[%s9939_s0 + $0x1dc] sm:$0xff] }
 0x3e4   :  { %v3294_v41 = vpop.permute.xlu1 %3293  ;;  %5944 = vmatpush3.bf16.msra.mxu0 %v5865_v13  ;;  %v2474_v13 = vld [vmem:[%s9943_s4 + $0x60] sm:$0xff] }
 0x3e5   :  { %v3292_v23 = vpop.permute.xlu0 %3291  ;;  %3336 = vst.msk [vmem:[#allocation2 + $0x58] sm:$0xff] %vm824_vm8, %v3294_v41  ;;  %5945 = vmatprep.subr.bf16.mxu0 %v6048_v56 }
 0x3e6   :  { %3335 = vst.msk [vmem:[#allocation2 + $0x50] sm:$0xff] %vm824_vm8, %v3292_v23  ;;  %4199 = vrot.lane.b32.xlu1 %v8970_v45, %s6043_s21  ;;  %v4577_v45 = vld [vmem:[#allocation2 + $0x20] sm:$0xff] }
 0x3e7   :  { %4197 = vrot.lane.b32.xlu0 %v8975_v8, %s6043_s21  ;;  %5741 = vmatmul.mubr.bf16.gmra.mrb[44].mxu0 %v4592_v53  ;;  %v4578_v8 = vld [vmem:[#allocation2 + $0x28] sm:$0xff]  ;;  %v2466_v23 = vld [vmem:[%s9943_s4 + $0x20] sm:$0xff] }
 0x3e8   :  { %v4408_v33 = vpop.permute.xlu1 %4407  ;;  %5744 = vmatprep.mubr.msk.bf16.mxu0 %vm6046_vm1, %v6839_v26  ;;  %v4593_v50 = vpack.c.bf16 %v4578_v8, %v4577_v45  ;;  %v2467_v53 = vld [vmem:[%s9943_s4 + $0x28] sm:$0xff] }
 0x3e9   :  { %v4406_v25 = vpop.permute.xlu0 %4405  ;;  %4454 = vst.msk [vmem:[#allocation2 + $0x38] sm:$0xff] %vm824_vm8, %v4408_v33  ;;  %v5868_v33 = vpack.c.bf16 %v2467_v53, %v2466_v23  ;;  %v5407_v45 = vld [vmem:[%s9939_s0 + $0x24e] sm:$0xff] }
 0x3ea   :  { %4453 = vst.msk [vmem:[#allocation2 + $0x30] sm:$0xff] %vm824_vm8, %v4406_v25  ;;  %3193 = vrot.lane.b32.xlu1 %v9192_v19, %s6044_s8  ;;  %v5408_v25 = vld [vmem:[%s9939_s0 + $0x256] sm:$0xff] }
 0x3eb   :  { %3191 = vrot.lane.b32.xlu0 %v9197_v14, %s6044_s8  ;;  %5869 = vmatpush3.bf16.msra.mxu1 %v5868_v33 }
 0x3ec   :  { %v3402_v30 = vpop.permute.xlu1 %3401  ;;  %5870 = vmatprep.subr.bf16.mxu1 %v6048_v56  ;;  %5947 = vmatpush3.bf16.msra.mxu0 %v5868_v33 }
 0x3ed   :  { %v3400_v38 = vpop.permute.xlu0 %3399  ;;  %3444 = vst.msk [vmem:[#allocation2 + $0x58] sm:$0xff] %vm933_vm9, %v3402_v30  ;;  %5948 = vmatprep.subr.bf16.mxu0 %v6048_v56 }
 0x3ee   :  { %3443 = vst.msk [vmem:[#allocation2 + $0x50] sm:$0xff] %vm933_vm9, %v3400_v38  ;;  %4307 = vrot.lane.b32.xlu1 %v9210_v27, %s6044_s8  ;;  %v2468_v38 = vld [vmem:[%s9943_s4 + $0x30] sm:$0xff] }
 0x3ef   :  { %4305 = vrot.lane.b32.xlu0 %v9215_v48, %s6044_s8  ;;  %5745 = vmatmul.mubr.bf16.gmra.mrb[48].mxu0 %v4593_v50  ;;  %v2469_v50 = vld [vmem:[%s9943_s4 + $0x38] sm:$0xff] }
 0x3f0   :  { %v4516_v46 = vpop.permute.xlu1 %4515  ;;  %5748 = vmatprep.mubr.msk.bf16.mxu0 %vm6046_vm1, %v6839_v26 }
 0x3f1   :  { %v4514_v31 = vpop.permute.xlu0 %4513  ;;  %4562 = vst.msk [vmem:[#allocation2 + $0x38] sm:$0xff] %vm933_vm9, %v4516_v46  ;;  %v5116_v46 = vld [vmem:[%s9939_s0 + $0x1c9] sm:$0xff] }
 0x3f2   :  { %4561 = vst.msk [vmem:[#allocation2 + $0x30] sm:$0xff] %vm933_vm9, %v4514_v31  ;;  %3301 = vrot.lane.b32.xlu1 %v5223_v17, %s6045_s19  ;;  %v5871_v17 = vpack.c.bf16 %v2469_v50, %v2468_v38  ;;  %v5338_v50 = vld [vmem:[%s9939_s0 + $0x253] sm:$0xff] }
 0x3f3   :  { %3299 = vrot.lane.b32.xlu0 %v5222_v10, %s6045_s19  ;;  %v5117_v10 = vld [vmem:[%s9939_s0 + $0x1d1] sm:$0xff] }
 0x3f4   :  { %v2650_v52 = vpop.permute.xlu1 %2649  ;;  %v9257_v2 = vld [vmem:[#allocation2 + $0x58] sm:$0xff]  ;;  %5872 = vmatpush3.bf16.msra.mxu1 %v5871_v17  ;;  %5950 = vmatpush3.bf16.msra.mxu0 %v5871_v17  ;;  %v5337_v17 = vld [vmem:[%s9939_s0 + $0x24b] sm:$0xff] }
 0x3f5   :  { %v2648_v54 = vpop.permute.xlu0 %2647  ;;  %v9259_v1 = vld [vmem:[#allocation2 + $0x50] sm:$0xff]  ;;  %2690 = vst.msk [vmem:[#allocation2 + $0x68] sm:$0xff] %vm170_vm2, %v2650_v52  ;;  %5873 = vmatprep.subr.bf16.mxu1 %v6048_v56  ;;  %5951 = vmatprep.subr.bf16.mxu0 %v6048_v56 }
 0x3f6   :  { %2689 = vst.msk [vmem:[#allocation2 + $0x60] sm:$0xff] %vm170_vm2, %v2648_v54  ;;  %v3474_v20 = vpack.c.bf16 %v9257_v2, %v9259_v1  ;;  %4415 = vrot.lane.b32.xlu1 %v5390_v37, %s6045_s19  ;;  %v2472_v52 = vld [vmem:[%s9943_s4 + $0x50] sm:$0xff]  ;;  %v2473_v54 = vld [vmem:[%s9943_s4 + $0x58] sm:$0xff] }
 0x3f7   :  { %3702 = vst.msk [vmem:[#allocation2 + $0x58] sm:$0xff] %vm61_vm0, %v5264_v16  ;;  %3701 = vst.msk [vmem:[#allocation2 + $0x50] sm:$0xff] %vm61_vm0, %v5263_v40  ;;  %4413 = vrot.lane.b32.xlu0 %v5389_v51, %s6045_s19  ;;  %v2471_v16 = vld [vmem:[%s9943_s4 + $0x48] sm:$0xff]  ;;  %v5877_v60 = vpack.c.bf16 %v2473_v54, %v2472_v52 }
 0x3f8   :  { %v3764_v15 = vpop.permute.xlu1 %3763  ;;  %v4580_v47 = vld [vmem:[#allocation2 + $0x38] sm:$0xff]  ;;  %v5874_v57 = vpack.c.bf16 %v2471_v16, %v2470_v3  ;;  %v5284_v40 = vld [vmem:[%s9939_s0 + $0x241] sm:$0xff]  ;;  %v5224_v52 = vld [vmem:[%s9939_s0 + $0x1ed] sm:$0xff] }
 0x3f9   :  { %v3762_v22 = vpop.permute.xlu0 %3761  ;;  %v4579_v21 = vld [vmem:[#allocation2 + $0x30] sm:$0xff]  ;;  %3808 = vst.msk [vmem:[#allocation2 + $0x48] sm:$0xff] %vm170_vm2, %v3764_v15 }
 0x3fa   :  { %3807 = vst.msk [vmem:[#allocation2 + $0x40] sm:$0xff] %vm170_vm2, %v3762_v22  ;;  %v4594_v41 = vpack.c.bf16 %v4580_v47, %v4579_v21  ;;  %3409 = vrot.lane.b32.xlu1 %v5241_v29, %s6047_s29  ;;  %5875 = vmatpush3.bf16.msra.mxu1 %v5874_v57  ;;  %v2475_v29 = vld [vmem:[%s9943_s4 + $0x68] sm:$0xff]  ;;  %v2476_v21 = vld [vmem:[%s9943_s4 + $0x70] sm:$0xff]  ;;  %v2477_v47 = vld [vmem:[%s9943_s4 + $0x78] sm:$0xff] }
 0x3fb   :  { %3407 = vrot.lane.b32.xlu0 %v5240_v18, %s6047_s29  ;;  %5876 = vmatprep.subr.bf16.mxu1 %v6048_v56  ;;  %v5880_v18 = vpack.c.bf16 %v2475_v29, %v2474_v13  ;;  %v5392_v13 = vld [vmem:[%s9939_s0 + $0x265] sm:$0xff]  ;;  %v5391_v29 = vld [vmem:[%s9939_s0 + $0x25d] sm:$0xff] }
 0x3fc   :  { %5749 = vmatmul.mubr.bf16.gmra.mrb[52].mxu0 %v4594_v41  ;;  %v2758_v8 = vpop.permute.xlu1 %2757  ;;  %v5152_v41 = vld [vmem:[%s9939_s0 + $0x1da] sm:$0xff] }
 0x3fd   :  { %v2756_v30 = vpop.permute.xlu0 %2755  ;;  %5752 = vmatprep.mubr.msk.bf16.mxu0 %vm6046_vm1, %v6839_v26  ;;  %2798 = vst.msk [vmem:[#allocation2 + $0x68] sm:$0xff] %vm279_vm3, %v2758_v8  ;;  %5953 = vmatpush3.bf16.msra.mxu0 %v5874_v57  ;;  %v5170_v8 = vld [vmem:[%s9939_s0 + $0x1db] sm:$0xff] }
 0x3fe   :  { %2797 = vst.msk [vmem:[#allocation2 + $0x60] sm:$0xff] %vm279_vm3, %v2756_v30  ;;  %4523 = vrot.lane.b32.xlu1 %v5408_v25, %s6047_s29  ;;  %5954 = vmatprep.subr.bf16.mxu0 %v6048_v56  ;;  %v5207_v57 = vld [vmem:[%s9939_s0 + $0x1f4] sm:$0xff] }
 0x3ff   :  { %4521 = vrot.lane.b32.xlu0 %v5407_v45, %s6047_s29  ;;  %5878 = vmatpush3.bf16.msra.mxu1 %v5877_v60  ;;  %v5171_v45 = vld [vmem:[%s9939_s0 + $0x1e3] sm:$0xff] }
 0x400   :  { %v3872_v31 = vpop.permute.xlu1 %3871  ;;  %5879 = vmatprep.subr.bf16.mxu1 %v6048_v56 }
 0x401   :  { %v3870_v63 = vpop.permute.xlu0 %3869  ;;  %3916 = vst.msk [vmem:[#allocation2 + $0x48] sm:$0xff] %vm279_vm3, %v3872_v31  ;;  %5956 = vmatpush3.bf16.msra.mxu0 %v5877_v60 }
 0x402   :  { %3915 = vst.msk [vmem:[#allocation2 + $0x40] sm:$0xff] %vm279_vm3, %v3870_v63  ;;  %2657 = vrot.lane.b32.xlu1 %v5117_v10, %s6039_s26  ;;  %5957 = vmatprep.subr.bf16.mxu0 %v6048_v56 }
 0x403   :  { %2655 = vrot.lane.b32.xlu0 %v5116_v46, %s6039_s26  ;;  %5881 = vmatpush3.bf16.msra.mxu1 %v5880_v18 }
 0x404   :  { %v2866_v37 = vpop.permute.xlu1 %2865  ;;  %5882 = vmatprep.subr.bf16.mxu1 %v6048_v56 }
 0x405   :  { %v2864_v51 = vpop.permute.xlu0 %2863  ;;  %2906 = vst.msk [vmem:[#allocation2 + $0x68] sm:$0xff] %vm388_vm4, %v2866_v37  ;;  %5959 = vmatpush3.bf16.msra.mxu0 %v5880_v18 }
 0x406   :  { %2905 = vst.msk [vmem:[#allocation2 + $0x60] sm:$0xff] %vm388_vm4, %v2864_v51  ;;  %3771 = vrot.lane.b32.xlu1 %v5284_v40, %s6039_s26  ;;  %5960 = vmatprep.subr.bf16.mxu0 %v6048_v56  ;;  %v5225_v51 = vld [vmem:[%s9939_s0 + $0x1f5] sm:$0xff] }
 0x407   :  { %3769 = vrot.lane.b32.xlu0 %v5283_v9, %s6039_s26 }
 0x408   :  { %v3980_v11 = vpop.permute.xlu1 %3979 }
 0x409   :  { %v3978_v12 = vpop.permute.xlu0 %3977  ;;  %4024 = vst.msk [vmem:[#allocation2 + $0x48] sm:$0xff] %vm388_vm4, %v3980_v11  ;;  %v5266_v11 = vld [vmem:[%s9939_s0 + $0x240] sm:$0xff] }
 0x40a   :  { %4023 = vst.msk [vmem:[#allocation2 + $0x40] sm:$0xff] %vm388_vm4, %v3978_v12  ;;  %2765 = vrot.lane.b32.xlu1 %v9113_v34, %s6038_s25  ;;  %v5883_v34 = vpack.c.bf16 %v2477_v47, %v2476_v21  ;;  %v5265_v12 = vld [vmem:[%s9939_s0 + $0x238] sm:$0xff] }
 0x40b   :  { %2763 = vrot.lane.b32.xlu0 %v9118_v24, %s6038_s25  ;;  %v5153_v24 = vld [vmem:[%s9939_s0 + $0x1e2] sm:$0xff] }
 0x40c   :  { %v2974_v15 = vpop.permute.xlu1 %2973  ;;  %5884 = vmatpush3.bf16.msra.mxu1 %v5883_v34  ;;  %5962 = vmatpush3.bf16.msra.mxu0 %v5883_v34  ;;  %v5243_v34 = vld [vmem:[%s9939_s0 + $0x1f6] sm:$0xff] }
 0x40d   :  { %v2972_v22 = vpop.permute.xlu0 %2971  ;;  %3014 = vst.msk [vmem:[#allocation2 + $0x68] sm:$0xff] %vm497_vm5, %v2974_v15  ;;  %5668 = vmatprep.subr.bf16.mxu1 %v6839_v26 }
 0x40e   :  { %3013 = vst.msk [vmem:[#allocation2 + $0x60] sm:$0xff] %vm497_vm5, %v2972_v22  ;;  %3879 = vrot.lane.b32.xlu1 %v9133_v62, %s6038_s25  ;;  %v9397_v62 = vld [vmem:[%s9939_s0 + $0x252] sm:$0xff] }
 0x40f   :  { %3877 = vrot.lane.b32.xlu0 %v9138_v39, %s6038_s25  ;;  %v9402_v39 = vld [vmem:[%s9939_s0 + $0x24a] sm:$0xff] }
 0x410   :  { %v4088_v23 = vpop.permute.xlu1 %4087 }
 0x411   :  { %v4086_v53 = vpop.permute.xlu0 %4085  ;;  %4132 = vst.msk [vmem:[#allocation2 + $0x48] sm:$0xff] %vm497_vm5, %v4088_v23 }
 0x412   :  { %4131 = vst.msk [vmem:[#allocation2 + $0x40] sm:$0xff] %vm497_vm5, %v4086_v53  ;;  %2873 = vrot.lane.b32.xlu1 %v5153_v24, %s6041_s11  ;;  %v5242_v24 = vld [vmem:[%s9939_s0 + $0x1ee] sm:$0xff] }
 0x413   :  { %2871 = vrot.lane.b32.xlu0 %v5152_v41, %s6041_s11 }
 0x414   :  { %v3082_v33 = vpop.permute.xlu1 %3081 }
 0x415   :  { %v3080_v25 = vpop.permute.xlu0 %3079  ;;  %3122 = vst.msk [vmem:[#allocation2 + $0x68] sm:$0xff] %vm606_vm6, %v3082_v33 }
 0x416   :  { %3121 = vst.msk [vmem:[#allocation2 + $0x60] sm:$0xff] %vm606_vm6, %v3080_v25  ;;  %3987 = vrot.lane.b32.xlu1 %v9397_v62, %s6041_s11 }
 0x417   :  { %3985 = vrot.lane.b32.xlu0 %v9402_v39, %s6041_s11 }
 0x418   :  { %v4196_v30 = vpop.permute.xlu1 %4195 }
 0x419   :  { %v4194_v38 = vpop.permute.xlu0 %4193  ;;  %4240 = vst.msk [vmem:[#allocation2 + $0x48] sm:$0xff] %vm606_vm6, %v4196_v30 }
 0x41a   :  { %4239 = vst.msk [vmem:[#allocation2 + $0x40] sm:$0xff] %vm606_vm6, %v4194_v38  ;;  %2981 = vrot.lane.b32.xlu1 %v5171_v45, %s6042_s16  ;;  %v5410_v45 = vld [vmem:[%s9939_s0 + $0x266] sm:$0xff] }
 0x41b   :  { %2979 = vrot.lane.b32.xlu0 %v5170_v8, %s6042_s16  ;;  %v5409_v8 = vld [vmem:[%s9939_s0 + $0x25e] sm:$0xff] }
 0x41c   :  { %v3190_v10 = vpop.permute.xlu1 %3189 }
 0x41d   :  { %v3188_v46 = vpop.permute.xlu0 %3187  ;;  %3230 = vst.msk [vmem:[#allocation2 + $0x68] sm:$0xff] %vm715_vm7, %v3190_v10 }
 0x41e   :  { %3229 = vst.msk [vmem:[#allocation2 + $0x60] sm:$0xff] %vm715_vm7, %v3188_v46  ;;  %4095 = vrot.lane.b32.xlu1 %v5338_v50, %s6042_s16  ;;  %v5286_v50 = vld [vmem:[%s9939_s0 + $0x251] sm:$0xff] }
 0x41f   :  { %4093 = vrot.lane.b32.xlu0 %v5337_v17, %s6042_s16  ;;  %v5285_v17 = vld [vmem:[%s9939_s0 + $0x249] sm:$0xff] }
 0x420   :  { %v4304_v31 = vpop.permute.xlu1 %4303 }
 0x421   :  { %v4302_v63 = vpop.permute.xlu0 %4301  ;;  %4348 = vst.msk [vmem:[#allocation2 + $0x48] sm:$0xff] %vm715_vm7, %v4304_v31 }
 0x422   :  { %4347 = vst.msk [vmem:[#allocation2 + $0x40] sm:$0xff] %vm715_vm7, %v4302_v63  ;;  %3089 = vrot.lane.b32.xlu1 %v9192_v19, %s6043_s21  ;;  %v5206_v19 = vld [vmem:[%s9939_s0 + $0x1ec] sm:$0xff] }
 0x423   :  { %3087 = vrot.lane.b32.xlu0 %v9197_v14, %s6043_s21 }
 0x424   :  { %v3298_v3 = vpop.permute.xlu1 %3297 }
 0x425   :  { %v3296_v16 = vpop.permute.xlu0 %3295  ;;  %3338 = vst.msk [vmem:[#allocation2 + $0x68] sm:$0xff] %vm824_vm8, %v3298_v3  ;;  %v5322_v3 = vld [vmem:[%s9939_s0 + $0x262] sm:$0xff] }
 0x426   :  { %3337 = vst.msk [vmem:[#allocation2 + $0x60] sm:$0xff] %vm824_vm8, %v3296_v16  ;;  %4203 = vrot.lane.b32.xlu1 %v9210_v27, %s6043_s21  ;;  %v9455_v27 = vld [vmem:[%s9939_s0 + $0x264] sm:$0xff]  ;;  %v5321_v16 = vld [vmem:[%s9939_s0 + $0x25a] sm:$0xff] }
 0x427   :  { %4201 = vrot.lane.b32.xlu0 %v9215_v48, %s6043_s21  ;;  %v9460_v48 = vld [vmem:[%s9939_s0 + $0x25c] sm:$0xff] }
 0x428   :  { %v4412_v14 = vpop.permute.xlu1 %4411 }
 0x429   :  { %v4410_v40 = vpop.permute.xlu0 %4409  ;;  %4456 = vst.msk [vmem:[#allocation2 + $0x48] sm:$0xff] %vm824_vm8, %v4412_v14 }
 0x42a   :  { %4455 = vst.msk [vmem:[#allocation2 + $0x40] sm:$0xff] %vm824_vm8, %v4410_v40  ;;  %3197 = vrot.lane.b32.xlu1 %v5207_v57, %s6044_s8 }
 0x42b   :  { %3195 = vrot.lane.b32.xlu0 %v5206_v19, %s6044_s8 }
 0x42c   :  { %v3406_v9 = vpop.permute.xlu1 %3405 }
 0x42d   :  { %v3404_v37 = vpop.permute.xlu0 %3403  ;;  %3446 = vst.msk [vmem:[#allocation2 + $0x68] sm:$0xff] %vm933_vm9, %v3406_v9 }
 0x42e   :  { %3445 = vst.msk [vmem:[#allocation2 + $0x60] sm:$0xff] %vm933_vm9, %v3404_v37  ;;  %4311 = vrot.lane.b32.xlu1 %v9455_v27, %s6044_s8 }
 0x42f   :  { %4309 = vrot.lane.b32.xlu0 %v9460_v48, %s6044_s8 }
 0x430   :  { %v4520_v54 = vpop.permute.xlu1 %4519 }
 0x431   :  { %v4518_v60 = vpop.permute.xlu0 %4517  ;;  %4564 = vst.msk [vmem:[#allocation2 + $0x48] sm:$0xff] %vm933_vm9, %v4520_v54 }
 0x432   :  { %4563 = vst.msk [vmem:[#allocation2 + $0x40] sm:$0xff] %vm933_vm9, %v4518_v60  ;;  %3305 = vrot.lane.b32.xlu1 %v5225_v51, %s6045_s19  ;;  %v5376_v51 = vld [vmem:[%s9939_s0 + $0x274] sm:$0xff] }
 0x433   :  { %3303 = vrot.lane.b32.xlu0 %v5224_v52, %s6045_s19  ;;  %v5375_v52 = vld [vmem:[%s9939_s0 + $0x26c] sm:$0xff] }
 0x434   :  { %v2654_v18 = vpop.permute.xlu1 %2653  ;;  %v9490_v22 = vld [vmem:[#allocation2 + $0x68] sm:$0xff] }
 0x435   :  { %v2652_v15 = vpop.permute.xlu0 %2651  ;;  %v9492_v21 = vld [vmem:[#allocation2 + $0x60] sm:$0xff]  ;;  %2692 = vst.msk [vmem:[#allocation2 + $0x78] sm:$0xff] %vm170_vm2, %v2654_v18 }
 0x436   :  { %2691 = vst.msk [vmem:[#allocation2 + $0x70] sm:$0xff] %vm170_vm2, %v2652_v15  ;;  %v3475_v47 = vpack.c.bf16 %v9490_v22, %v9492_v21  ;;  %4419 = vrot.lane.b32.xlu1 %v5392_v13, %s6045_s19  ;;  %v5412_v13 = vld [vmem:[%s9939_s0 + $0x276] sm:$0xff] }
 0x437   :  { %3704 = vst.msk [vmem:[#allocation2 + $0x68] sm:$0xff] %vm61_vm0, %v5266_v11  ;;  %3703 = vst.msk [vmem:[#allocation2 + $0x60] sm:$0xff] %vm61_vm0, %v5265_v12  ;;  %4417 = vrot.lane.b32.xlu0 %v5391_v29, %s6045_s19  ;;  %v5411_v29 = vld [vmem:[%s9939_s0 + $0x26e] sm:$0xff] }
 0x438   :  { %v3768_v41 = vpop.permute.xlu1 %3767  ;;  %v4582_v33 = vld [vmem:[#allocation2 + $0x48] sm:$0xff] }
 0x439   :  { %v3766_v23 = vpop.permute.xlu0 %3765  ;;  %v4581_v53 = vld [vmem:[#allocation2 + $0x40] sm:$0xff]  ;;  %3810 = vst.msk [vmem:[#allocation2 + $0x58] sm:$0xff] %vm170_vm2, %v3768_v41 }
 0x43a   :  { %3809 = vst.msk [vmem:[#allocation2 + $0x50] sm:$0xff] %vm170_vm2, %v3766_v23  ;;  %v4595_v25 = vpack.c.bf16 %v4582_v33, %v4581_v53  ;;  %3413 = vrot.lane.b32.xlu1 %v5243_v34, %s6047_s29  ;;  %v5288_v34 = vld [vmem:[%s9939_s0 + $0x261] sm:$0xff] }
 0x43b   :  { %3411 = vrot.lane.b32.xlu0 %v5242_v24, %s6047_s29  ;;  %v5287_v24 = vld [vmem:[%s9939_s0 + $0x259] sm:$0xff] }
 0x43c   :  { %5753 = vmatmul.mubr.bf16.gmra.mrb[56].mxu0 %v4595_v25  ;;  %v2762_v30 = vpop.permute.xlu1 %2761  ;;  %v5324_v25 = vld [vmem:[%s9939_s0 + $0x272] sm:$0xff] }
 0x43d   :  { %v2760_v38 = vpop.permute.xlu0 %2759  ;;  %5756 = vmatprep.mubr.msk.bf16.mxu0 %vm6046_vm1, %v6839_v26  ;;  %2800 = vst.msk [vmem:[#allocation2 + $0x78] sm:$0xff] %vm279_vm3, %v2762_v30 }
 0x43e   :  { %2799 = vst.msk [vmem:[#allocation2 + $0x70] sm:$0xff] %vm279_vm3, %v2760_v38  ;;  %4527 = vrot.lane.b32.xlu1 %v5410_v45, %s6047_s29  ;;  %v5323_v45 = vld [vmem:[%s9939_s0 + $0x26a] sm:$0xff]  ;;  %v5342_v38 = vld [vmem:[%s9939_s0 + $0x273] sm:$0xff] }
 0x43f   :  { %4525 = vrot.lane.b32.xlu0 %v5409_v8, %s6047_s29 }
 0x440   :  { %v3876_v10 = vpop.permute.xlu1 %3875 }
 0x441   :  { %v3874_v46 = vpop.permute.xlu0 %3873  ;;  %3918 = vst.msk [vmem:[#allocation2 + $0x58] sm:$0xff] %vm279_vm3, %v3876_v10 }
 0x442   :  { %3917 = vst.msk [vmem:[#allocation2 + $0x50] sm:$0xff] %vm279_vm3, %v3874_v46  ;;  %3775 = vrot.lane.b32.xlu1 %v5286_v50, %s6039_s26  ;;  %v5341_v50 = vld [vmem:[%s9939_s0 + $0x26b] sm:$0xff] }
 0x443   :  { %3773 = vrot.lane.b32.xlu0 %v5285_v17, %s6039_s26 }
 0x444   :  { %v2870_v31 = vpop.permute.xlu1 %2869 }
 0x445   :  { %v2868_v63 = vpop.permute.xlu0 %2867  ;;  %2908 = vst.msk [vmem:[#allocation2 + $0x78] sm:$0xff] %vm388_vm4, %v2870_v31 }
 0x446   :  { %2907 = vst.msk [vmem:[#allocation2 + $0x70] sm:$0xff] %vm388_vm4, %v2868_v63  ;;  %3883 = vrot.lane.b32.xlu1 %v9397_v62, %s6038_s25  ;;  %v5340_v62 = vld [vmem:[%s9939_s0 + $0x263] sm:$0xff]  ;;  %v5268_v63 = vld [vmem:[%s9939_s0 + $0x250] sm:$0xff] }
 0x447   :  { %3881 = vrot.lane.b32.xlu0 %v9402_v39, %s6038_s25  ;;  %v5339_v39 = vld [vmem:[%s9939_s0 + $0x25b] sm:$0xff] }
 0x448   :  { %v3984_v57 = vpop.permute.xlu1 %3983 }
 0x449   :  { %v3982_v19 = vpop.permute.xlu0 %3981  ;;  %4026 = vst.msk [vmem:[#allocation2 + $0x58] sm:$0xff] %vm388_vm4, %v3984_v57  ;;  %v5377_v57 = vld [vmem:[%s9939_s0 + $0x27c] sm:$0xff] }
 0x44a   :  { %4025 = vst.msk [vmem:[#allocation2 + $0x50] sm:$0xff] %vm388_vm4, %v3982_v19  ;;  %3991 = vrot.lane.b32.xlu1 %v5322_v3, %s6041_s11 }
 0x44b   :  { %3989 = vrot.lane.b32.xlu0 %v5321_v16, %s6041_s11 }
 0x44c   :  { %v2978_v14 = vpop.permute.xlu1 %2977 }
 0x44d   :  { %v2976_v40 = vpop.permute.xlu0 %2975  ;;  %3016 = vst.msk [vmem:[#allocation2 + $0x78] sm:$0xff] %vm497_vm5, %v2978_v14 }
 0x44e   :  { %3015 = vst.msk [vmem:[#allocation2 + $0x70] sm:$0xff] %vm497_vm5, %v2976_v40  ;;  %4099 = vrot.lane.b32.xlu1 %v5340_v62, %s6042_s16 }
 0x44f   :  { %4097 = vrot.lane.b32.xlu0 %v5339_v39, %s6042_s16 }
 0x450   :  { %v4092_v9 = vpop.permute.xlu1 %4091 }
 0x451   :  { %v4090_v37 = vpop.permute.xlu0 %4089  ;;  %4134 = vst.msk [vmem:[#allocation2 + $0x58] sm:$0xff] %vm497_vm5, %v4092_v9  ;;  %v5396_v9 = vld [vmem:[%s9939_s0 + $0x285] sm:$0xff] }
 0x452   :  { %4133 = vst.msk [vmem:[#allocation2 + $0x50] sm:$0xff] %vm497_vm5, %v4090_v37  ;;  %4207 = vrot.lane.b32.xlu1 %v9455_v27, %s6043_s21  ;;  %v5394_v27 = vld [vmem:[%s9939_s0 + $0x275] sm:$0xff]  ;;  %v5395_v37 = vld [vmem:[%s9939_s0 + $0x27d] sm:$0xff] }
 0x453   :  { %4205 = vrot.lane.b32.xlu0 %v9460_v48, %s6043_s21  ;;  %v5393_v48 = vld [vmem:[%s9939_s0 + $0x26d] sm:$0xff] }
 0x454   :  { %v3086_v54 = vpop.permute.xlu1 %3085 }
 0x455   :  { %v3084_v60 = vpop.permute.xlu0 %3083  ;;  %3124 = vst.msk [vmem:[#allocation2 + $0x78] sm:$0xff] %vm606_vm6, %v3086_v54 }
 0x456   :  { %3123 = vst.msk [vmem:[#allocation2 + $0x70] sm:$0xff] %vm606_vm6, %v3084_v60  ;;  %4315 = vrot.lane.b32.xlu1 %v5376_v51, %s6044_s8 }
 0x457   :  { %4313 = vrot.lane.b32.xlu0 %v5375_v52, %s6044_s8 }
 0x458   :  { %v4200_v11 = vpop.permute.xlu1 %4199 }
 0x459   :  { %v4198_v12 = vpop.permute.xlu0 %4197  ;;  %4242 = vst.msk [vmem:[#allocation2 + $0x58] sm:$0xff] %vm606_vm6, %v4200_v11  ;;  %v5413_v11 = vld [vmem:[%s9939_s0 + $0x27e] sm:$0xff] }
 0x45a   :  { %4241 = vst.msk [vmem:[#allocation2 + $0x50] sm:$0xff] %vm606_vm6, %v4198_v12  ;;  %4423 = vrot.lane.b32.xlu1 %v5394_v27, %s6045_s19 }
 0x45b   :  { %4421 = vrot.lane.b32.xlu0 %v5393_v48, %s6045_s19  ;;  %v5414_v48 = vld [vmem:[%s9939_s0 + $0x286] sm:$0xff] }
 0x45c   :  { %v3194_v18 = vpop.permute.xlu1 %3193 }
 0x45d   :  { %v3192_v15 = vpop.permute.xlu0 %3191  ;;  %3232 = vst.msk [vmem:[#allocation2 + $0x78] sm:$0xff] %vm715_vm7, %v3194_v18 }
 0x45e   :  { %3231 = vst.msk [vmem:[#allocation2 + $0x70] sm:$0xff] %vm715_vm7, %v3192_v15  ;;  %4531 = vrot.lane.b32.xlu1 %v5412_v13, %s6047_s29 }
 0x45f   :  { %4529 = vrot.lane.b32.xlu0 %v5411_v29, %s6047_s29 }
 0x460   :  { %v4308_v41 = vpop.permute.xlu1 %4307 }
 0x461   :  { %v4306_v23 = vpop.permute.xlu0 %4305  ;;  %4350 = vst.msk [vmem:[#allocation2 + $0x58] sm:$0xff] %vm715_vm7, %v4308_v41 }
 0x462   :  { %4349 = vst.msk [vmem:[#allocation2 + $0x50] sm:$0xff] %vm715_vm7, %v4306_v23  ;;  %3779 = vrot.lane.b32.xlu1 %v5288_v34, %s6039_s26 }
 0x463   :  { %3777 = vrot.lane.b32.xlu0 %v5287_v24, %s6039_s26 }
 0x464   :  { %v3302_v53 = vpop.permute.xlu1 %3301 }
 0x465   :  { %v3300_v33 = vpop.permute.xlu0 %3299  ;;  %3340 = vst.msk [vmem:[#allocation2 + $0x78] sm:$0xff] %vm824_vm8, %v3302_v53 }
 0x466   :  { %3339 = vst.msk [vmem:[#allocation2 + $0x70] sm:$0xff] %vm824_vm8, %v3300_v33  ;;  %3887 = vrot.lane.b32.xlu1 %v5322_v3, %s6038_s25  ;;  %v5267_v3 = vld [vmem:[%s9939_s0 + $0x248] sm:$0xff] }
 0x467   :  { %3885 = vrot.lane.b32.xlu0 %v5321_v16, %s6038_s25  ;;  %v5378_v16 = vld [vmem:[%s9939_s0 + $0x284] sm:$0xff] }
 0x468   :  { %v4416_v8 = vpop.permute.xlu1 %4415 }
 0x469   :  { %v4414_v30 = vpop.permute.xlu0 %4413  ;;  %4458 = vst.msk [vmem:[#allocation2 + $0x58] sm:$0xff] %vm824_vm8, %v4416_v8 }
 0x46a   :  { %4457 = vst.msk [vmem:[#allocation2 + $0x50] sm:$0xff] %vm824_vm8, %v4414_v30  ;;  %3995 = vrot.lane.b32.xlu1 %v5324_v25, %s6041_s11 }
 0x46b   :  { %3993 = vrot.lane.b32.xlu0 %v5323_v45, %s6041_s11  ;;  %v6003_v45 = vld [vmem:[%s9940_s1] sm:$0xff]  }
 0x46c   :  { %v3410_v17 = vpop.permute.xlu1 %3409 }
 0x46d   :  { %v3408_v10 = vpop.permute.xlu0 %3407  ;;  %3448 = vst.msk [vmem:[#allocation2 + $0x78] sm:$0xff] %vm933_vm9, %v3410_v17  ;;  %v6004_v17 = vld [vmem:[%s9940_s1 + $0x8] sm:$0xff]  }
 0x46e   :  { %3447 = vst.msk [vmem:[#allocation2 + $0x70] sm:$0xff] %vm933_vm9, %v3408_v10  ;;  %4103 = vrot.lane.b32.xlu1 %v5342_v38, %s6042_s16 }
 0x46f   :  { %4101 = vrot.lane.b32.xlu0 %v5341_v50, %s6042_s16 }
 0x470   :  { %v4524_v46 = vpop.permute.xlu1 %4523 }
 0x471   :  { %v4522_v31 = vpop.permute.xlu0 %4521  ;;  %4566 = vst.msk [vmem:[#allocation2 + $0x58] sm:$0xff] %vm933_vm9, %v4524_v46 }
 0x472   :  { %4565 = vst.msk [vmem:[#allocation2 + $0x50] sm:$0xff] %vm933_vm9, %v4522_v31  ;;  %4211 = vrot.lane.b32.xlu1 %v5376_v51, %s6043_s21  ;;  %v6005_v31 = vld [vmem:[%s9940_s1 + $0x10] sm:$0xff]  }
 0x473   :  { %4209 = vrot.lane.b32.xlu0 %v5375_v52, %s6043_s21 }
 0x474   :  { %v2658_v19 = vpop.permute.xlu1 %2657  ;;  %v9646_v39 = vld [vmem:[#allocation2 + $0x78] sm:$0xff] }
 0x475   :  { %v2656_v62 = vpop.permute.xlu0 %2655  ;;  %v9648_v14 = vld [vmem:[#allocation2 + $0x70] sm:$0xff]  ;;  %2694 = vst.msk [vmem:[#allocation2 + $0x88] sm:$0xff] %vm170_vm2, %v2658_v19 }
 0x476   :  { %2693 = vst.msk [vmem:[#allocation2 + $0x80] sm:$0xff] %vm170_vm2, %v2656_v62  ;;  %v3476_v40 = vpack.c.bf16 %v9646_v39, %v9648_v14  ;;  %4319 = vrot.lane.b32.xlu1 %v5378_v16, %s6044_s8  ;;  %v6006_v16 = vld [vmem:[%s9940_s1 + $0x18] sm:$0xff]   ;;  %v6007_v62 = vld [vmem:[%s9940_s1 + $0x20] sm:$0xff]  }
 0x477   :  { %3706 = vst.msk [vmem:[#allocation2 + $0x78] sm:$0xff] %vm61_vm0, %v5268_v63  ;;  %3705 = vst.msk [vmem:[#allocation2 + $0x70] sm:$0xff] %vm61_vm0, %v5267_v3  ;;  %4317 = vrot.lane.b32.xlu0 %v5377_v57, %s6044_s8 }
 0x478   :  { %v3772_v51 = vpop.permute.xlu1 %3771  ;;  %v4584_v60 = vld [vmem:[#allocation2 + $0x58] sm:$0xff] }
 0x479   :  { %v3770_v52 = vpop.permute.xlu0 %3769  ;;  %v4583_v54 = vld [vmem:[#allocation2 + $0x50] sm:$0xff]  ;;  %3812 = vst.msk [vmem:[#allocation2 + $0x68] sm:$0xff] %vm170_vm2, %v3772_v51  ;;  %v6008_v51 = vld [vmem:[%s9940_s1 + $0x28] sm:$0xff]  }
 0x47a   :  { %3811 = vst.msk [vmem:[#allocation2 + $0x60] sm:$0xff] %vm170_vm2, %v3770_v52  ;;  %v4596_v27 = vpack.c.bf16 %v4584_v60, %v4583_v54  ;;  %4427 = vrot.lane.b32.xlu1 %v5396_v9, %s6045_s19  ;;  %v6009_v60 = vld [vmem:[%s9940_s1 + $0x30] sm:$0xff]  }
 0x47b   :  { %4425 = vrot.lane.b32.xlu0 %v5395_v37, %s6045_s19 }
 0x47c   :  { %5757 = vmatmul.mubr.bf16.gmra.mrb[60].mxu0 %v4596_v27  ;;  %v2766_v12 = vpop.permute.xlu1 %2765 }
 0x47d   :  { %v2764_v13 = vpop.permute.xlu0 %2763  ;;  %5760 = vmatprep.mubr.msk.bf16.mxu0 %vm6046_vm1, %v6839_v26  ;;  %2802 = vst.msk [vmem:[#allocation2 + $0x88] sm:$0xff] %vm279_vm3, %v2766_v12 }
 0x47e   :  { %2801 = vst.msk [vmem:[#allocation2 + $0x80] sm:$0xff] %vm279_vm3, %v2764_v13  ;;  %4535 = vrot.lane.b32.xlu1 %v5414_v48, %s6047_s29 }
 0x47f   :  { %4533 = vrot.lane.b32.xlu0 %v5413_v11, %s6047_s29  ;;  %v6010_v11 = vld [vmem:[%s9940_s1 + $0x38] sm:$0xff]   ;;  %s6049_s29 = smov [#allocation3]  }
 0x480   :  { %v3880_v29 = vpop.permute.xlu1 %3879  ;;  %s5053_s30 = sshll.u32 %s6049_s29, 4  ;;  %s5054_s30 = int_to_ptr.vmem [resolvable:$true] %s5053_s30 }
 0x481   :  { %v3878_v18 = vpop.permute.xlu0 %3877  ;;  %3920 = vst.msk [vmem:[#allocation2 + $0x68] sm:$0xff] %vm279_vm3, %v3880_v29  ;;  %v9740_v29 = vld [vmem:[%s9941_s2] ss:$0 sm:$0xff]  ;;  %s6014_s7 = scalar_lea.vmem %s5054_s30, 32  ;;  %p6019_p1 = scmp.lt.s32.totalorder %s5054_s30, %s5054_s30 }
 0x482   :  { %3919 = vst.msk [vmem:[#allocation2 + $0x60] sm:$0xff] %vm279_vm3, %v3878_v18  ;;  %p6015_p0 = scmp.ne.s32.totalorder %s5054_s30, %s6014_s7  ;;  %p6020_p2 = scmp.lt.s32.totalorder %s6014_s7, %s6014_s7 }
 0x484   :  { %v2874_v15 = vpop.permute.xlu1 %2873  ;;  %p6021_p3 = por %p6020_p2, %p6019_p1 }
 0x485   :  { %v2872_v34 = vpop.permute.xlu0 %2871  ;;  %2910 = vst.msk [vmem:[#allocation2 + $0x88] sm:$0xff] %vm388_vm4, %v2874_v15  ;;  %v5270_v15 = vld [vmem:[%s9939_s0 + $0x260] sm:$0xff] }
 0x486   :  { %2909 = vst.msk [vmem:[#allocation2 + $0x80] sm:$0xff] %vm388_vm4, %v2872_v34  ;;  %v5269_v34 = vld [vmem:[%s9939_s0 + $0x258] sm:$0xff]  ;;  %p6022_p4 = pnand %p6021_p3, %p6015_p0 }
 0x488   :  { %v3988_v24 = vpop.permute.xlu1 %3987 }
 0x489   :  { %v3986_v41 = vpop.permute.xlu0 %3985  ;;  %4028 = vst.msk [vmem:[#allocation2 + $0x68] sm:$0xff] %vm388_vm4, %v3988_v24 }
 0x48a   :  { %4027 = vst.msk [vmem:[#allocation2 + $0x60] sm:$0xff] %vm388_vm4, %v3986_v41 }
 0x48c   :  { %v2982_v23 = vpop.permute.xlu1 %2981 }
 0x48d   :  { %v2980_v53 = vpop.permute.xlu0 %2979  ;;  %3018 = vst.msk [vmem:[#allocation2 + $0x88] sm:$0xff] %vm497_vm5, %v2982_v23 }
 0x48e   :  { %3017 = vst.msk [vmem:[#allocation2 + $0x80] sm:$0xff] %vm497_vm5, %v2980_v53 }
 0x490   :  { %v4096_v33 = vpop.permute.xlu1 %4095 }
 0x491   :  { %v4094_v25 = vpop.permute.xlu0 %4093  ;;  %4136 = vst.msk [vmem:[#allocation2 + $0x68] sm:$0xff] %vm497_vm5, %v4096_v33 }
 0x492   :  { %4135 = vst.msk [vmem:[#allocation2 + $0x60] sm:$0xff] %vm497_vm5, %v4094_v25  ;;  %v2458_v8 = vpop.f32.mrb[36].mxu0 }
 0x493   :  { %5666 = vmatmul.mubr.f32.vlgmr.msra.gmra.mrb[36].mxu1 %v2458_v8  ;;  %v2460_v30 = vpop.f32.mrb[37].mxu0 }
 0x494   :  { %5669 = vmatpush3.bf16.msra.mxu1 %v6003_v45  ;;  %v3090_v38 = vpop.permute.xlu1 %3089  ;;  %5684 = vmatprep.mubr.msk.bf16.mxu1 %vm6046_vm1, %v6839_v26 }
 0x495   :  { %v3088_v50 = vpop.permute.xlu0 %3087  ;;  %3126 = vst.msk [vmem:[#allocation2 + $0x88] sm:$0xff] %vm606_vm6, %v3090_v38  ;;  %5670 = vmatprep.subr.bf16.mxu1 %v6839_v26 }
 0x496   :  { %3125 = vst.msk [vmem:[#allocation2 + $0x80] sm:$0xff] %vm606_vm6, %v3088_v50 }
 0x498   :  { %5671 = vmatpush3.bf16.msra.mxu1 %v6004_v17  ;;  %v4204_v10 = vpop.permute.xlu1 %4203 }
 0x499   :  { %v4202_v46 = vpop.permute.xlu0 %4201  ;;  %4244 = vst.msk [vmem:[#allocation2 + $0x68] sm:$0xff] %vm606_vm6, %v4204_v10  ;;  %5672 = vmatprep.subr.bf16.mxu1 %v6839_v26 }
 0x49a   :  { %4243 = vst.msk [vmem:[#allocation2 + $0x60] sm:$0xff] %vm606_vm6, %v4202_v46 }
 0x49c   :  { %5673 = vmatpush3.bf16.msra.mxu1 %v6005_v31  ;;  %v3198_v63 = vpop.permute.xlu1 %3197 }
 0x49d   :  { %v3196_v3 = vpop.permute.xlu0 %3195  ;;  %3234 = vst.msk [vmem:[#allocation2 + $0x88] sm:$0xff] %vm715_vm7, %v3198_v63  ;;  %5674 = vmatprep.subr.bf16.mxu1 %v6839_v26 }
 0x49e   :  { %3233 = vst.msk [vmem:[#allocation2 + $0x80] sm:$0xff] %vm715_vm7, %v3196_v3 }
 0x4a0   :  { %5675 = vmatpush3.bf16.msra.mxu1 %v6006_v16  ;;  %v4312_v57 = vpop.permute.xlu1 %4311 }
 0x4a1   :  { %v4310_v19 = vpop.permute.xlu0 %4309  ;;  %4352 = vst.msk [vmem:[#allocation2 + $0x68] sm:$0xff] %vm715_vm7, %v4312_v57  ;;  %5676 = vmatprep.subr.bf16.mxu1 %v6839_v26 }
 0x4a2   :  { %4351 = vst.msk [vmem:[#allocation2 + $0x60] sm:$0xff] %vm715_vm7, %v4310_v19 }
 0x4a4   :  { %5677 = vmatpush3.bf16.msra.mxu1 %v6007_v62  ;;  %v3306_v9 = vpop.permute.xlu1 %3305 }
 0x4a5   :  { %v3304_v37 = vpop.permute.xlu0 %3303  ;;  %3342 = vst.msk [vmem:[#allocation2 + $0x88] sm:$0xff] %vm824_vm8, %v3306_v9  ;;  %5678 = vmatprep.subr.bf16.mxu1 %v6839_v26 }
 0x4a6   :  { %3341 = vst.msk [vmem:[#allocation2 + $0x80] sm:$0xff] %vm824_vm8, %v3304_v37 }
 0x4a8   :  { %5679 = vmatpush3.bf16.msra.mxu1 %v6008_v51  ;;  %v4420_v52 = vpop.permute.xlu1 %4419 }
 0x4a9   :  { %v4418_v54 = vpop.permute.xlu0 %4417  ;;  %4460 = vst.msk [vmem:[#allocation2 + $0x68] sm:$0xff] %vm824_vm8, %v4420_v52  ;;  %5680 = vmatprep.subr.bf16.mxu1 %v6839_v26 }
 0x4aa   :  { %4459 = vst.msk [vmem:[#allocation2 + $0x60] sm:$0xff] %vm824_vm8, %v4418_v54 }
 0x4ac   :  { %5681 = vmatpush3.bf16.msra.mxu1 %v6009_v60  ;;  %v3414_v27 = vpop.permute.xlu1 %3413 }
 0x4ad   :  { %v3412_v48 = vpop.permute.xlu0 %3411  ;;  %3450 = vst.msk [vmem:[#allocation2 + $0x88] sm:$0xff] %vm933_vm9, %v3414_v27  ;;  %5682 = vmatprep.subr.bf16.mxu1 %v6839_v26 }
 0x4ae   :  { %3449 = vst.msk [vmem:[#allocation2 + $0x80] sm:$0xff] %vm933_vm9, %v3412_v48 }
 0x4b0   :  { %5683 = vmatpush3.bf16.msra.mxu1 %v6010_v11  ;;  %v4528_v12 = vpop.permute.xlu1 %4527 }
 0x4b1   :  { %v4526_v13 = vpop.permute.xlu0 %4525  ;;  %4568 = vst.msk [vmem:[#allocation2 + $0x68] sm:$0xff] %vm933_vm9, %v4528_v12  ;;  %5885 = vmatprep.subr.bf16.mxu1 %v6048_v56 }
 0x4b2   :  { %4567 = vst.msk [vmem:[#allocation2 + $0x60] sm:$0xff] %vm933_vm9, %v4526_v13  ;;  %v4705_v18 = vpop.f32.mrb[40].mxu0 }
 0x4b3   :  { %5685 = vmatmul.mubr.bf16.vlgmr.msra.gmra.mrb[40].mxu1 %v3469_v6  ;;  %v4706_v24 = vadd.f32 %v9740_v29, %v4705_v18  ;;  %v5738_v41 = vpop.f32.mrb[41].mxu0 }
 0x4b4   :  { %v4708_v23 = vpop.f32.mrb[42].mxu0  ;;  %v3776_v53 = vpop.permute.xlu1 %3775  ;;  %5688 = vmatprep.mubr.msk.bf16.mxu1 %vm6046_vm1, %v6839_v26  ;;  %v9757_v33 = vld [vmem:[#allocation2 + $0x88] sm:$0xff] }
 0x4b5   :  { %v9759_v25 = vld [vmem:[#allocation2 + $0x80] sm:$0xff]  ;;  %v4709_v45 = vadd.f32 %v9740_v29, %v4708_v23  ;;  %3814 = vst.msk [vmem:[#allocation2 + $0x78] sm:$0xff] %vm170_vm2, %v3776_v53  ;;  %v3774_v8 = vpop.permute.xlu0 %3773  ;;  %v5739_v30 = vpop.f32.mrb[43].mxu0  ;;  %v4776_v4 = vmax.f32 %v4706_v24, 0.0 }
 0x4b6   :  { %3708 = vst.msk [vmem:[#allocation2 + $0x88] sm:$0xff] %vm61_vm0, %v5270_v15  ;;  %3707 = vst.msk [vmem:[#allocation2 + $0x80] sm:$0xff] %vm61_vm0, %v5269_v34 }
 0x4b7   :  { %3813 = vst.msk [vmem:[#allocation2 + $0x70] sm:$0xff] %vm170_vm2, %v3774_v8  ;;  %v4777_v5 = vmax.f32 %v4709_v45, 0.0 }
 0x4b8   :  { %v3884_v6 = vpop.permute.xlu1 %3883  ;;  %v4586_v50 = vld [vmem:[#allocation2 + $0x68] sm:$0xff] }
 0x4b9   :  { %v4585_v38 = vld [vmem:[#allocation2 + $0x60] sm:$0xff]  ;;  %v5886_v17 = vpack.c.bf16 %v4777_v5, %v4776_v4  ;;  %3922 = vst.msk [vmem:[#allocation2 + $0x78] sm:$0xff] %vm279_vm3, %v3884_v6  ;;  %v3882_v10 = vpop.permute.xlu0 %3881 }
 0x4ba   :  { %v4597_v46 = vpack.c.bf16 %v4586_v50, %v4585_v38  ;;  %3921 = vst.msk [vmem:[#allocation2 + $0x70] sm:$0xff] %vm279_vm3, %v3882_v10  ;;  %v4713_v31 = vpop.f32.mrb[44].mxu0 }
 0x4bb   :  { %5689 = vmatmul.mubr.bf16.gmra.mrb[44].mxu1 %v3470_v43  ;;  %v4714_v63 = vadd.f32 %v9740_v29, %v4713_v31  ;;  %v5742_v3 = vpop.f32.mrb[45].mxu0 }
 0x4bc   :  { %5761 = vmatmul.mubr.bf16.gmra.mrb[64].mxu0 %v4597_v46  ;;  %5887 = vmatpush1.bf16.msra.mxu1 %v5886_v17  ;;  %v4716_v16 = vpop.f32.mrb[46].mxu0  ;;  %v3992_v57 = vpop.permute.xlu1 %3991 }
 0x4bd   :  { %5692 = vmatprep.mubr.msk.bf16.mxu1 %vm6046_vm1, %v6839_v26  ;;  %v4717_v19 = vadd.f32 %v9740_v29, %v4716_v16  ;;  %4030 = vst.msk [vmem:[#allocation2 + $0x78] sm:$0xff] %vm388_vm4, %v3992_v57  ;;  %v3990_v62 = vpop.permute.xlu0 %3989  ;;  %v5743_v9 = vpop.f32.mrb[47].mxu0  ;;  %5888 = vmatprep.subr.bf16.mxu1 %v6048_v56  ;;  %v4778_v42 = vmax.f32 %v4714_v63, 0.0  ;;  %v3477_v57 = vpack.c.bf16 %v9757_v33, %v9759_v25 }
 0x4be   :  { %5764 = vmatprep.mubr.msk.bf16.mxu0 %vm6046_vm1, %v6839_v26  ;;  %4029 = vst.msk [vmem:[#allocation2 + $0x70] sm:$0xff] %vm388_vm4, %v3990_v62 }
 0x4bf   :  { %v4779_v0 = vmax.f32 %v4717_v19, 0.0 }
 0x4c0   :  { %v4100_v43 = vpop.permute.xlu1 %4099 }
 0x4c1   :  { %v5889_v37 = vpack.c.bf16 %v4779_v0, %v4778_v42  ;;  %4138 = vst.msk [vmem:[#allocation2 + $0x78] sm:$0xff] %vm497_vm5, %v4100_v43  ;;  %v4098_v51 = vpop.permute.xlu0 %4097 }
 0x4c2   :  { %4137 = vst.msk [vmem:[#allocation2 + $0x70] sm:$0xff] %vm497_vm5, %v4098_v51  ;;  %v4721_v52 = vpop.f32.mrb[48].mxu0 }
 0x4c3   :  { %5693 = vmatmul.mubr.bf16.gmra.mrb[48].mxu1 %v3471_v32  ;;  %v4722_v54 = vadd.f32 %v9740_v29, %v4721_v52  ;;  %v5746_v60 = vpop.f32.mrb[49].mxu0 }
 0x4c4   :  { %5890 = vmatpush1.bf16.msra.mxu1 %v5889_v37  ;;  %v4724_v27 = vpop.f32.mrb[50].mxu0  ;;  %v4208_v48 = vpop.permute.xlu1 %4207  ;;  %5696 = vmatprep.mubr.msk.bf16.mxu1 %vm6046_vm1, %v6839_v26 }
 0x4c5   :  { %v4725_v11 = vadd.f32 %v9740_v29, %v4724_v27  ;;  %4246 = vst.msk [vmem:[#allocation2 + $0x78] sm:$0xff] %vm606_vm6, %v4208_v48  ;;  %v4206_v12 = vpop.permute.xlu0 %4205  ;;  %v5747_v13 = vpop.f32.mrb[51].mxu0  ;;  %5891 = vmatprep.subr.bf16.mxu1 %v6048_v56  ;;  %v4780_v28 = vmax.f32 %v4722_v54, 0.0 }
 0x4c6   :  { %4245 = vst.msk [vmem:[#allocation2 + $0x70] sm:$0xff] %vm606_vm6, %v4206_v12  ;;  %v9858_v13 = vld [vmem:[%s9942_s3 + $0x1] ss:$2 sm:$0x3] }
 0x4c7   :  { %v4781_v49 = vmax.f32 %v4725_v11, 0.0 }
 0x4c8   :  { %v4316_v32 = vpop.permute.xlu1 %4315 }
 0x4c9   :  { %v5892_v18 = vpack.c.bf16 %v4781_v49, %v4780_v28  ;;  %4354 = vst.msk [vmem:[#allocation2 + $0x78] sm:$0xff] %vm715_vm7, %v4316_v32  ;;  %v4314_v15 = vpop.permute.xlu0 %4313  ;;  %v4803_v28 = vrot.slane %v9858_v13, %v8495_v44  ;;  %v2478_v49 = vld [vmem:[%s9944_s5] sm:$0x1] }
 0x4ca   :  { %4353 = vst.msk [vmem:[#allocation2 + $0x70] sm:$0xff] %vm715_vm7, %v4314_v15 }
 0x4cb   :  { %5697 = vmatmul.mubr.bf16.gmra.mrb[52].mxu1 %v3472_v61 }
 0x4cc   :  { %5893 = vmatpush1.bf16.msra.mxu1 %v5892_v18  ;;  %v4424_v34 = vpop.permute.xlu1 %4423  ;;  %5700 = vmatprep.mubr.msk.bf16.mxu1 %vm6046_vm1, %v6839_v26 }
 0x4cd   :  { %4462 = vst.msk [vmem:[#allocation2 + $0x78] sm:$0xff] %vm824_vm8, %v4424_v34  ;;  %v4422_v24 = vpop.permute.xlu0 %4421  ;;  %5894 = vmatprep.subr.bf16.mxu1 %v6048_v56 }
 0x4ce   :  { %4461 = vst.msk [vmem:[#allocation2 + $0x70] sm:$0xff] %vm824_vm8, %v4422_v24 }
 0x4cf   :  { %v4729_v41 = vpop.f32.mrb[52].mxu0 }
 0x4d0   :  { %v4730_v23 = vadd.f32 %v9740_v29, %v4729_v41  ;;  %v5750_v53 = vpop.f32.mrb[53].mxu0  ;;  %v4532_v45 = vpop.permute.xlu1 %4531 }
 0x4d1   :  { %v4732_v8 = vpop.f32.mrb[54].mxu0  ;;  %4570 = vst.msk [vmem:[#allocation2 + $0x78] sm:$0xff] %vm933_vm9, %v4532_v45  ;;  %v4530_v58 = vpop.permute.xlu0 %4529 }
 0x4d2   :  { %v4733_v59 = vadd.f32 %v9740_v29, %v4732_v8  ;;  %v5751_v61 = vpop.f32.mrb[55].mxu0  ;;  %4569 = vst.msk [vmem:[#allocation2 + $0x70] sm:$0xff] %vm933_vm9, %v4530_v58  ;;  %v4782_v30 = vmax.f32 %v4730_v23, 0.0 }
 0x4d3   :  { %5701 = vmatmul.mubr.bf16.gmra.mrb[56].mxu1 %v3473_v36 }
 0x4d4   :  { %v4783_v4 = vmax.f32 %v4733_v59, 0.0  ;;  %v3780_v5 = vpop.permute.xlu1 %3779  ;;  %5704 = vmatprep.mubr.msk.bf16.mxu1 %vm6046_vm1, %v6839_v26 }
 0x4d5   :  { %3816 = vst.msk [vmem:[#allocation2 + $0x88] sm:$0xff] %vm170_vm2, %v3780_v5  ;;  %v3778_v38 = vpop.permute.xlu0 %3777 }
 0x4d6   :  { %v5895_v6 = vpack.c.bf16 %v4783_v4, %v4782_v30  ;;  %3815 = vst.msk [vmem:[#allocation2 + $0x80] sm:$0xff] %vm170_vm2, %v3778_v38 }
 0x4d8   :  { %5896 = vmatpush1.bf16.msra.mxu1 %v5895_v6  ;;  %v3888_v50 = vpop.permute.xlu1 %3887  ;;  %v4588_v17 = vld [vmem:[#allocation2 + $0x78] sm:$0xff] }
 0x4d9   :  { %5897 = vmatprep.subr.bf16.mxu1 %v6048_v56  ;;  %3924 = vst.msk [vmem:[#allocation2 + $0x88] sm:$0xff] %vm279_vm3, %v3888_v50  ;;  %v3886_v10 = vpop.permute.xlu0 %3885  ;;  %v4587_v35 = vld [vmem:[#allocation2 + $0x70] sm:$0xff] }
 0x4da   :  { %3923 = vst.msk [vmem:[#allocation2 + $0x80] sm:$0xff] %vm279_vm3, %v3886_v10  ;;  %v4598_v55 = vpack.c.bf16 %v4588_v17, %v4587_v35 }
 0x4db   :  { %5705 = vmatmul.mubr.bf16.gmra.mrb[60].mxu1 %v3474_v20 }
 0x4dc   :  { %5765 = vmatmul.mubr.bf16.gmra.mrb[68].mxu0 %v4598_v55  ;;  %v3996_v36 = vpop.permute.xlu1 %3995  ;;  %5708 = vmatprep.mubr.msk.bf16.mxu1 %vm6046_vm1, %v6839_v26 }
 0x4dd   :  { %4032 = vst.msk [vmem:[#allocation2 + $0x88] sm:$0xff] %vm388_vm4, %v3996_v36  ;;  %v3994_v46 = vpop.permute.xlu0 %3993  ;;  %5768 = vmatprep.mubr.msk.bf16.mxu0 %vm6046_vm1, %v6839_v26 }
 0x4de   :  { %4031 = vst.msk [vmem:[#allocation2 + $0x80] sm:$0xff] %vm388_vm4, %v3994_v46 }
 0x4e0   :  { %v4104_v31 = vpop.permute.xlu1 %4103 }
 0x4e1   :  { %4140 = vst.msk [vmem:[#allocation2 + $0x88] sm:$0xff] %vm497_vm5, %v4104_v31  ;;  %v4102_v63 = vpop.permute.xlu0 %4101 }
 0x4e2   :  { %4139 = vst.msk [vmem:[#allocation2 + $0x80] sm:$0xff] %vm497_vm5, %v4102_v63 }
 0x4e3   :  { %5709 = vmatmul.mubr.bf16.gmra.mrb[64].mxu1 %v3475_v47 }
 0x4e4   :  { %v4212_v2 = vpop.permute.xlu1 %4211  ;;  %5712 = vmatprep.mubr.msk.bf16.mxu1 %vm6046_vm1, %v6839_v26 }
 0x4e5   :  { %4248 = vst.msk [vmem:[#allocation2 + $0x88] sm:$0xff] %vm606_vm6, %v4212_v2  ;;  %v4210_v1 = vpop.permute.xlu0 %4209 }
 0x4e6   :  { %4247 = vst.msk [vmem:[#allocation2 + $0x80] sm:$0xff] %vm606_vm6, %v4210_v1 }
 0x4e8   :  { %v4320_v20 = vpop.permute.xlu1 %4319 }
 0x4e9   :  { %4356 = vst.msk [vmem:[#allocation2 + $0x88] sm:$0xff] %vm715_vm7, %v4320_v20  ;;  %v4318_v3 = vpop.permute.xlu0 %4317 }
 0x4ea   :  { %4355 = vst.msk [vmem:[#allocation2 + $0x80] sm:$0xff] %vm715_vm7, %v4318_v3 }
 0x4eb   :  { %5713 = vmatmul.mubr.bf16.gmra.mrb[68].mxu1 %v3476_v40 }
 0x4ec   :  { %v4428_v22 = vpop.permute.xlu1 %4427  ;;  %5716 = vmatprep.mubr.msk.bf16.mxu1 %vm6046_vm1, %v6839_v26 }
 0x4ed   :  { %4464 = vst.msk [vmem:[#allocation2 + $0x88] sm:$0xff] %vm824_vm8, %v4428_v22  ;;  %v4426_v21 = vpop.permute.xlu0 %4425 }
 0x4ee   :  { %4463 = vst.msk [vmem:[#allocation2 + $0x80] sm:$0xff] %vm824_vm8, %v4426_v21 }
 0x4f0   :  { %v4536_v47 = vpop.permute.xlu1 %4535 }
 0x4f1   :  { %4572 = vst.msk [vmem:[#allocation2 + $0x88] sm:$0xff] %vm933_vm9, %v4536_v47  ;;  %v4534_v16 = vpop.permute.xlu0 %4533 }
 0x4f2   :  { %4571 = vst.msk [vmem:[#allocation2 + $0x80] sm:$0xff] %vm933_vm9, %v4534_v16 }
 0x4f3   :  { %5717 = vmatmul.mubr.bf16.gmra.mrb[72].mxu1 %v3477_v57 }
 0x4f4   :  { %5425 = vmatprep.mubr.msk.f32.mxu1 %vm2307_vm10, %v4803_v28 }
 0x4f8   :  { %v4590_v39 = vld [vmem:[#allocation2 + $0x88] sm:$0xff] }
 0x4f9   :  { %v4589_v14 = vld [vmem:[#allocation2 + $0x80] sm:$0xff] }
 0x4fa   :  { %v4599_v40 = vpack.c.bf16 %v4590_v39, %v4589_v14 }
 0x4fc   :  { %5769 = vmatmul.mubr.bf16.gmra.mrb[72].mxu0 %v4599_v40 }
 0x4fd   :  { %5804 = vmatprep.mubr.msk.f32.mxu0 %vm6046_vm1, %v6839_v26 }
 0x50f   :  { %v4737_v19 = vpop.f32.mrb[56].mxu0 }
 0x510   :  { %v4738_v62 = vadd.f32 %v9740_v29, %v4737_v19  ;;  %v5754_v9 = vpop.f32.mrb[57].mxu0 }
 0x511   :  { %v4740_v42 = vpop.f32.mrb[58].mxu0 }
 0x512   :  { %v4741_v0 = vadd.f32 %v9740_v29, %v4740_v42  ;;  %v5755_v43 = vpop.f32.mrb[59].mxu0  ;;  %v4784_v37 = vmax.f32 %v4738_v62, 0.0 }
 0x514   :  { %v4785_v33 = vmax.f32 %v4741_v0, 0.0 }
 0x516   :  { %v5898_v25 = vpack.c.bf16 %v4785_v33, %v4784_v37 }
 0x518   :  { %5899 = vmatpush1.bf16.msra.mxu1 %v5898_v25 }
 0x519   :  { %5900 = vmatprep.subr.bf16.mxu1 %v6048_v56 }
 0x54f   :  { %v4745_v51 = vpop.f32.mrb[60].mxu0 }
 0x550   :  { %v4746_v52 = vadd.f32 %v9740_v29, %v4745_v51  ;;  %v5758_v54 = vpop.f32.mrb[61].mxu0 }
 0x551   :  { %v4748_v60 = vpop.f32.mrb[62].mxu0 }
 0x552   :  { %v4749_v26 = vadd.f32 %v9740_v29, %v4748_v60  ;;  %v5759_v27 = vpop.f32.mrb[63].mxu0  ;;  %v4786_v48 = vmax.f32 %v4746_v52, 0.0 }
 0x554   :  { %v4787_v11 = vmax.f32 %v4749_v26, 0.0 }
 0x556   :  { %v5901_v12 = vpack.c.bf16 %v4787_v11, %v4786_v48 }
 0x558   :  { %5902 = vmatpush1.bf16.msra.mxu1 %v5901_v12 }
 0x559   :  { %5903 = vmatprep.subr.bf16.mxu1 %v6048_v56 }
 0x566   :  { %v2545_v32 = vpop.f32.mrb[36].mxu1 }
 0x567   :  { %v2546_v18 = vadd.f32 %v2545_v32, %v2478_v49  ;;  %v5667_v15 = vpop.f32.mrb[37].mxu1 }
 0x569   :  { %2549 = vst [vmem:[#allocation3] sm:$0x1] %v2546_v18 }
 0x586   :  { %v3583_v34 = vpop.f32.mrb[40].mxu1 }
 0x587   :  { %v3584_v24 = vadd.f32 %v9740_v29, %v3583_v34  ;;  %v5686_v41 = vpop.f32.mrb[41].mxu1 }
 0x588   :  { %v3586_v23 = vpop.f32.mrb[42].mxu1 }
 0x589   :  { %v3587_v53 = vadd.f32 %v9740_v29, %v3586_v23  ;;  %v5687_v45 = vpop.f32.mrb[43].mxu1  ;;  %v3654_v8 = vmax.f32 %v3584_v24, 0.0 }
 0x58b   :  { %v3655_v58 = vmax.f32 %v3587_v53, 0.0 }
 0x58d   :  { %v9868_v59 = vpack.c.bf16 %v3655_v58, %v3654_v8 }
 0x58e   :  { %v3591_v61 = vpop.f32.mrb[44].mxu1 }
 0x58f   :  { %v4753_v30 = vpop.f32.mrb[64].mxu0  ;;  %v3592_v4 = vadd.f32 %v9740_v29, %v3591_v61  ;;  %v5690_v5 = vpop.f32.mrb[45].mxu1 }
 0x590   :  { %v4754_v6 = vadd.f32 %v9740_v29, %v4753_v30  ;;  %v5762_v38 = vpop.f32.mrb[65].mxu0  ;;  %v3594_v50 = vpop.f32.mrb[46].mxu1 }
 0x591   :  { %v4756_v17 = vpop.f32.mrb[66].mxu0  ;;  %v3595_v10 = vadd.f32 %v9740_v29, %v3594_v50  ;;  %v5691_v35 = vpop.f32.mrb[47].mxu1  ;;  %v3656_v46 = vmax.f32 %v3592_v4, 0.0 }
 0x592   :  { %v4757_v55 = vadd.f32 %v9740_v29, %v4756_v17  ;;  %v5763_v36 = vpop.f32.mrb[67].mxu0  ;;  %v4788_v63 = vmax.f32 %v4754_v6, 0.0 }
 0x593   :  { %v3657_v31 = vmax.f32 %v3595_v10, 0.0 }
 0x594   :  { %v4789_v2 = vmax.f32 %v4757_v55, 0.0 }
 0x595   :  { %v9874_v1 = vpack.c.bf16 %v3657_v31, %v3656_v46 }
 0x596   :  { %v5904_v20 = vpack.c.bf16 %v4789_v2, %v4788_v63  ;;  %v3599_v3 = vpop.f32.mrb[48].mxu1 }
 0x597   :  { %v3600_v22 = vadd.f32 %v9740_v29, %v3599_v3  ;;  %v5694_v21 = vpop.f32.mrb[49].mxu1 }
 0x598   :  { %5905 = vmatpush1.bf16.msra.mxu1 %v5904_v20  ;;  %v3602_v47 = vpop.f32.mrb[50].mxu1 }
 0x599   :  { %5906 = vmatprep.subr.bf16.mxu1 %v6048_v56  ;;  %v3603_v16 = vadd.f32 %v9740_v29, %v3602_v47  ;;  %v5695_v57 = vpop.f32.mrb[51].mxu1  ;;  %v3658_v39 = vmax.f32 %v3600_v22, 0.0 }
 0x59b   :  { %v3659_v14 = vmax.f32 %v3603_v16, 0.0 }
 0x59d   :  { %v9879_v40 = vpack.c.bf16 %v3659_v14, %v3658_v39 }
 0x59e   :  { %v3607_v19 = vpop.f32.mrb[52].mxu1 }
 0x59f   :  { %v3608_v62 = vadd.f32 %v9740_v29, %v3607_v19  ;;  %v5698_v9 = vpop.f32.mrb[53].mxu1 }
 0x5a0   :  { %v3610_v42 = vpop.f32.mrb[54].mxu1 }
 0x5a1   :  { %v3611_v0 = vadd.f32 %v9740_v29, %v3610_v42  ;;  %v5699_v43 = vpop.f32.mrb[55].mxu1  ;;  %v3660_v37 = vmax.f32 %v3608_v62, 0.0 }
 0x5a3   :  { %v3661_v33 = vmax.f32 %v3611_v0, 0.0 }
 0x5a5   :  { %v9883_v25 = vpack.c.bf16 %v3661_v33, %v3660_v37 }
 0x5a6   :  { %v3615_v51 = vpop.f32.mrb[56].mxu1 }
 0x5a7   :  { %v3616_v52 = vadd.f32 %v9740_v29, %v3615_v51  ;;  %v5702_v54 = vpop.f32.mrb[57].mxu1 }
 0x5a8   :  { %v3618_v60 = vpop.f32.mrb[58].mxu1 }
 0x5a9   :  { %v3619_v26 = vadd.f32 %v9740_v29, %v3618_v60  ;;  %v5703_v27 = vpop.f32.mrb[59].mxu1  ;;  %v3662_v48 = vmax.f32 %v3616_v52, 0.0 }
 0x5ab   :  { %v3663_v11 = vmax.f32 %v3619_v26, 0.0 }
 0x5ad   :  { %v9887_v12 = vpack.c.bf16 %v3663_v11, %v3662_v48  ;;  %v3672_v11 = vld [vmem:[%s9942_s3] ss:$2 sm:$0x3] }
 0x5ae   :  { %v3623_v28 = vpop.f32.mrb[60].mxu1 }
 0x5af   :  { %v3624_v49 = vadd.f32 %v9740_v29, %v3623_v28  ;;  %v5706_v32 = vpop.f32.mrb[61].mxu1  ;;  %v4761_v18 = vpop.f32.mrb[68].mxu0 }
 0x5b0   :  { %v3626_v15 = vpop.f32.mrb[62].mxu1  ;;  %v4762_v34 = vadd.f32 %v9740_v29, %v4761_v18  ;;  %v5766_v24 = vpop.f32.mrb[69].mxu0  ;;  %v4885_v32 = vrot.slane %v3672_v11, %v8495_v44  ;;  %v4881_v44 = vrot.slane %v3672_v11, %v8892_v7 }
 0x5b1   :  { %v3627_v41 = vadd.f32 %v9740_v29, %v3626_v15  ;;  %v5707_v23 = vpop.f32.mrb[63].mxu1  ;;  %v4764_v53 = vpop.f32.mrb[70].mxu0  ;;  %v3664_v58 = vmax.f32 %v3624_v49, 0.0  ;;  %v4799_v49 = vrot.slane %v9858_v13, %v8892_v7 }
 0x5b2   :  { %v4765_v45 = vadd.f32 %v9740_v29, %v4764_v53  ;;  %v5767_v8 = vpop.f32.mrb[71].mxu0  ;;  %v4790_v30 = vmax.f32 %v4762_v34, 0.0 }
 0x5b3   :  { %v3665_v61 = vmax.f32 %v3627_v41, 0.0 }
 0x5b4   :  { %v4791_v4 = vmax.f32 %v4765_v45, 0.0 }
 0x5b5   :  { %v5928_v5 = vpack.c.bf16 %v3665_v61, %v3664_v58 }
 0x5b6   :  { %v5907_v6 = vpack.c.bf16 %v4791_v4, %v4790_v30  ;;  %v3631_v38 = vpop.f32.mrb[64].mxu1 }
 0x5b7   :  { %v3632_v50 = vadd.f32 %v9740_v29, %v3631_v38  ;;  %v5710_v17 = vpop.f32.mrb[65].mxu1 }
 0x5b8   :  { %v3634_v10 = vpop.f32.mrb[66].mxu1  ;;  %5908 = vmatpush1.bf16.msra.mxu1 %v5907_v6 }
 0x5b9   :  { %v3635_v35 = vadd.f32 %v9740_v29, %v3634_v10  ;;  %v5711_v55 = vpop.f32.mrb[67].mxu1  ;;  %5909 = vmatprep.subr.bf16.mxu1 %v6048_v56  ;;  %v3666_v36 = vmax.f32 %v3632_v50, 0.0 }
 0x5bb   :  { %v3667_v46 = vmax.f32 %v3635_v35, 0.0 }
 0x5bd   :  { %v5931_v31 = vpack.c.bf16 %v3667_v46, %v3666_v36 }
 0x5be   :  { %v3639_v63 = vpop.f32.mrb[68].mxu1 }
 0x5bf   :  { %v3640_v2 = vadd.f32 %v9740_v29, %v3639_v63  ;;  %v5714_v20 = vpop.f32.mrb[69].mxu1 }
 0x5c0   :  { %v3642_v3 = vpop.f32.mrb[70].mxu1 }
 0x5c1   :  { %v3643_v22 = vadd.f32 %v9740_v29, %v3642_v3  ;;  %v5715_v21 = vpop.f32.mrb[71].mxu1  ;;  %v3668_v47 = vmax.f32 %v3640_v2, 0.0 }
 0x5c3   :  { %v3669_v16 = vmax.f32 %v3643_v22, 0.0 }
 0x5c5   :  { %v5934_v57 = vpack.c.bf16 %v3669_v16, %v3668_v47 }
 0x5c6   :  { %v3647_v39 = vpop.f32.mrb[72].mxu1 }
 0x5c7   :  { %v3648_v14 = vadd.f32 %v9740_v29, %v3647_v39  ;;  %v5718_v19 = vpop.f32.mrb[73].mxu1 }
 0x5c8   :  { %v3650_v62 = vpop.f32.mrb[74].mxu1 }
 0x5c9   :  { %v3651_v9 = vadd.f32 %v9740_v29, %v3650_v62  ;;  %v5719_v42 = vpop.f32.mrb[75].mxu1  ;;  %v3670_v0 = vmax.f32 %v3648_v14, 0.0 }
 0x5cb   :  { %v3671_v43 = vmax.f32 %v3651_v9, 0.0 }
 0x5cd   :  { %v5937_v37 = vpack.c.bf16 %v3671_v43, %v3670_v0 }
 0x5cf   :  { %v4769_v33 = vpop.f32.mrb[72].mxu0 }
 0x5d0   :  { %v4770_v51 = vadd.f32 %v9740_v29, %v4769_v33  ;;  %v5770_v52 = vpop.f32.mrb[73].mxu0 }
 0x5d1   :  { %v4772_v54 = vpop.f32.mrb[74].mxu0 }
 0x5d2   :  { %v4773_v60 = vadd.f32 %v9740_v29, %v4772_v54  ;;  %v5771_v26 = vpop.f32.mrb[75].mxu0  ;;  %v4792_v27 = vmax.f32 %v4770_v51, 0.0 }
 0x5d4   :  { %v4793_v48 = vmax.f32 %v4773_v60, 0.0 }
 0x5d6   :  { %v5910_v28 = vpack.c.bf16 %v4793_v48, %v4792_v27 }
 0x5d8   :  { %5911 = vmatpush1.bf16.msra.mxu1 %v5910_v28 }
 0x5d9   :  { %5912 = vmatprep.subr.bf16.mxu1 %v6048_v56 }
 0x5db   :  { %4872 = vmatmul.mubr.f32.vlgmr.msra.gmra.mrb[38].mxu1 %v4799_v49 }
 0x5dc   :  { %5914 = vmatpush1.bf16.msra.mxu1 %v9868_v59  ;;  %5426 = vmatprep.mubr.msk.f32.mxu1 %vm2307_vm10, %v4885_v32  ;;  %v4975_v59 = vld [vmem:[%s9944_s5] sm:$0x1] }
 0x5dd   :  { %5915 = vmatprep.subr.bf16.mxu1 %v6048_v56 }
 0x5e0   :  { %5917 = vmatpush1.bf16.msra.mxu1 %v9874_v1 }
 0x5e1   :  { %5918 = vmatprep.subr.bf16.mxu1 %v6048_v56 }
 0x5e4   :  { %5920 = vmatpush1.bf16.msra.mxu1 %v9879_v40 }
 0x5e5   :  { %5921 = vmatprep.subr.bf16.mxu1 %v6048_v56 }
 0x5e8   :  { %5923 = vmatpush1.bf16.msra.mxu1 %v9883_v25 }
 0x5e9   :  { %5924 = vmatprep.subr.bf16.mxu1 %v6048_v56 }
 0x5ec   :  { %5926 = vmatpush1.bf16.msra.mxu1 %v9887_v12 }
 0x5ed   :  { %5927 = vmatprep.subr.bf16.mxu1 %v6048_v56 }
 0x5f0   :  { %5929 = vmatpush1.bf16.msra.mxu1 %v5928_v5 }
 0x5f1   :  { %5930 = vmatprep.subr.bf16.mxu1 %v6048_v56 }
 0x5f4   :  { %5932 = vmatpush1.bf16.msra.mxu1 %v5931_v31 }
 0x5f5   :  { %5933 = vmatprep.subr.bf16.mxu1 %v6048_v56 }
 0x5f8   :  { %5935 = vmatpush1.bf16.msra.mxu1 %v5934_v57 }
 0x5f9   :  { %5936 = vmatprep.subr.bf16.mxu1 %v6048_v56 }
 0x5fc   :  { %5938 = vmatpush1.bf16.msra.mxu1 %v5937_v37 }
 0x5ff   :  { %4954 = vmatmul.mubr.f32.vlgmr.msra.gmra.mrb[38].mxu1 %v4881_v44 }
 0x6d2   :  { %v4955_v29 = vpop.f32.mrb[38].mxu1 }
 0x6d3   :  { %v4957_v13 = vpop.f32.mrb[39].mxu1  ;;  %5805 = vmatmul.mubr.f32.vlgmr.msra.gmra.mrb[38].mxu0 %v4955_v29 }
 0x7a6   :  { %v5042_v1 = vpop.f32.mrb[38].mxu0 }
 0x7a7   :  { %v5043_v40 = vadd.f32 %v5042_v1, %v4975_v59  ;;  %v5806_v25 = vpop.f32.mrb[39].mxu0 }
 0x7a9   :  { %5046 = vst [vmem:[#allocation3 + $0x1] sm:$0x1] %v5043_v40 }
 0x7aa   :  { %6025 = shalt.err (!%p6022_p4)
}
 0x7ab   :  { %s6026_s25 = scalar_lea.hbm %s9945_s6, 32 }
 0x7ac   :  { %p6027_p5 = scmp.ne.s32.totalorder %s9945_s6, %s6026_s25  ;;  %p6030_p6 = scmp.lt.u32.totalorder %s6026_s25, %s9945_s6 }
 0x7ae   :  { %p6032_p7 = pnand %p6030_p6, %p6027_p5 }
 0x7b0   :  { %6035 = shalt.err (!%p6032_p7)
}
 0x7b1   :  { %5056 = dma.vmem_to_hbm [thread:$0]  %s5054_s30, 32, %s9945_s6, [#allocation4]  }
 0x7b2   :  { %6036 = dma.done.wait [#allocation4], 32  }
 0x7b3   :  { %6037 = vsyncadd [#allocation4], 4294967264 }
 0x7b4   :  { %5060 = vsyncpa [#allocation4], 1 }

</bundles_post_ra>
